<compile_context>
chip_gen: v6e
topology: v6e:2x2x1
jax: 0.10.0
libtpu: 0.0.40
codegen_flags: <defaults>
</compile_context>

<pallas_src>
import functools

import jax
import jax.numpy as jnp
from jax import lax
from jax.experimental import pallas as pl
from jax.experimental.pallas import tpu as pltpu


# ---------------------------------------------------------------------------
# Helpers
# ---------------------------------------------------------------------------

def _round_up(x, m):
    return (x + m - 1) // m * m


def _pick_row_tile(m, target):
    """Largest multiple of 8 that divides m and is <= target (falls back to m)."""
    t = (min(m, max(target, 8)) // 8) * 8
    while t >= 8:
        if m % t == 0:
            return t
        t -= 8
    # TODO(synk): pad m / add a remainder block instead of a whole-array fallback.
    return m


# ---------------------------------------------------------------------------
# Pass 1: BN1 batch statistics (row-tiled reduction, resident accumulators)
# ---------------------------------------------------------------------------

def _bn_stats_kernel(x_ref, sum_ref, sq_ref):
    @pl.when(pl.program_id(0) == 0)
    def _init():
        sum_ref[...] = jnp.zeros_like(sum_ref)
        sq_ref[...] = jnp.zeros_like(sq_ref)

    x = x_ref[...]
    sum_ref[...] += jnp.sum(x, axis=0, keepdims=True)
    sq_ref[...] += jnp.sum(x * x, axis=0, keepdims=True)


def _bn_stats(x2d, row_tile):
    m, c = x2d.shape
    tm = _pick_row_tile(m, row_tile)
    return pl.pallas_call(
        _bn_stats_kernel,
        out_shape=(jax.ShapeDtypeStruct((1, c), jnp.float32),
                   jax.ShapeDtypeStruct((1, c), jnp.float32)),
        grid=(m // tm,),
        in_specs=[pl.BlockSpec((tm, c), lambda i: (i, 0))],
        out_specs=(pl.BlockSpec((1, c), lambda i: (0, 0)),
                   pl.BlockSpec((1, c), lambda i: (0, 0))),
        compiler_params=pltpu.CompilerParams(dimension_semantics=("arbitrary",)),
        cost_estimate=pl.CostEstimate(flops=3 * m * c, transcendentals=0,
                                      bytes_accessed=4 * (m * c + 2 * c)),
    )(x2d)


# ---------------------------------------------------------------------------
# Pass 2: fused BN1-apply + conv (K-folded MXU matmuls) + BN2 statistics
# ---------------------------------------------------------------------------

def _conv_bn2_kernel(x_ref, scale1_ref, shift1_ref, w_ref,
                     y_ref, s2_ref, sq2_ref, xp_ref, acc_ref, *,
                     kh, kw, stride, padding, h, w, ho, wo, c_in):
    cp = xp_ref.shape[-1]

    @pl.when(pl.program_id(0) == 0)
    def _init():
        s2_ref[...] = jnp.zeros_like(s2_ref)
        sq2_ref[...] = jnp.zeros_like(sq2_ref)
        # Zero the padded scratch ONCE: the halo border and the padded channel lanes
        # are never written again and the interior is fully overwritten every step.
        xp_ref[...] = jnp.zeros_like(xp_ref)

    # BN1 applied to the unpadded VMEM tile in f32, cast to the bf16 MXU operand, and
    # channel-padded to cp so the interior write is a full lane-width store.
    xn = (x_ref[0] * scale1_ref[...] + shift1_ref[...]).astype(jnp.bfloat16)
    if cp > c_in:
        xn = jnp.concatenate(
            [xn, jnp.zeros((h, w, cp - c_in), jnp.bfloat16)], axis=-1)
    xp_ref[padding:padding + h, padding:padding + w, :] = xn

    # K-folded conv: one MXU matmul per kernel row with K = kw*cp, built from kw
    # shifted VMEM reads (width-only im2col) -- no HBM im2col, kh matmuls total.
    def row_slab(di):
        if stride == 1:
            parts = [xp_ref[di:di + ho, dj:dj + wo, :] for dj in range(kw)]
        else:
            # TODO(synk): strided tap path (stride > 1) is not exercised by the demo.
            parts = [xp_ref[pl.ds(di, ho, stride), pl.ds(dj, wo, stride), :]
                     for dj in range(kw)]
        return jnp.concatenate(parts, axis=-1).reshape(ho * wo, kw * cp)

    acc_ref[...] = jnp.dot(row_slab(0), w_ref[0],
                           preferred_element_type=jnp.float32)
    for di in range(1, kh):
        acc_ref[...] += jnp.dot(row_slab(di), w_ref[di],
                                preferred_element_type=jnp.float32)

    acc = acc_ref[...]
    y_ref[...] = acc.reshape(y_ref.shape)
    s2_ref[...] += jnp.sum(acc, axis=0, keepdims=True)
    sq2_ref[...] += jnp.sum(acc * acc, axis=0, keepdims=True)


def _conv_bn2(x_nhwc, scale1, shift1, w_rows, *,
              kernel_size, stride, padding, ho, wo, cop):
    n, h, w, c_in = x_nhwc.shape
    kh = kw = kernel_size
    cp = w_rows.shape[1] // kw
    hp, wp = h + 2 * padding, w + 2 * padding
    kernel = functools.partial(
        _conv_bn2_kernel, kh=kh, kw=kw, stride=stride, padding=padding,
        h=h, w=w, ho=ho, wo=wo, c_in=c_in)

    flops = 2 * n * ho * wo * kh * kw * cp * cop
    bytes_accessed = int(4 * (n * h * w * c_in + n * ho * wo * cop + 4 * c_in + 2 * cop)
                         + 2 * kh * kw * cp * cop)

    # Per-step VMEM budget (double-buffered blocks + scratch) with headroom; raising
    # the scoped limit matters on v5e (16 MiB default) / v6e (32 MiB) for big images.
    vmem_bytes = (2 * h * w * c_in * 4            # x blocks
                  + 2 * ho * wo * cop * 4         # y blocks
                  + 2 * kh * (kw * cp) * cop * 2  # bf16 weight rows
                  + hp * wp * cp * 2              # padded-image scratch (bf16)
                  + ho * wo * cop * 4             # f32 accumulator scratch
                  + ho * wo * kw * cp * 2         # live im2col slab
                  + (2 << 20))
    vmem_limit = int(min(max(2 * vmem_bytes, 32 * 1024 * 1024), 100 * 1024 * 1024))

    return pl.pallas_call(
        kernel,
        out_shape=(jax.ShapeDtypeStruct((n, ho * wo, cop), jnp.float32),
                   jax.ShapeDtypeStruct((1, cop), jnp.float32),
                   jax.ShapeDtypeStruct((1, cop), jnp.float32)),
        grid=(n,),
        in_specs=[pl.BlockSpec((1, h, w, c_in), lambda i: (i, 0, 0, 0)),
                  pl.BlockSpec((1, 1, c_in), lambda i: (0, 0, 0)),
                  pl.BlockSpec((1, 1, c_in), lambda i: (0, 0, 0)),
                  pl.BlockSpec((kh, kw * cp, cop), lambda i: (0, 0, 0))],
        out_specs=(pl.BlockSpec((1, ho * wo, cop), lambda i: (i, 0, 0)),
                   pl.BlockSpec((1, cop), lambda i: (0, 0)),
                   pl.BlockSpec((1, cop), lambda i: (0, 0))),
        scratch_shapes=[pltpu.VMEM((hp, wp, cp), jnp.bfloat16),
                        pltpu.VMEM((ho * wo, cop), jnp.float32)],
        compiler_params=pltpu.CompilerParams(
            dimension_semantics=("arbitrary",),
            vmem_limit_bytes=vmem_limit),
        cost_estimate=pl.CostEstimate(flops=flops, transcendentals=0,
                                      bytes_accessed=bytes_accessed),
    )(x_nhwc, scale1, shift1, w_rows)


# ---------------------------------------------------------------------------
# Pass 3: BN2-apply + PReLU (elementwise), writing only the true C_out channels
# ---------------------------------------------------------------------------

def _bn_prelu_kernel(y_ref, scale_ref, shift_ref, alpha_ref, o_ref, *, c_out):
    z = y_ref[...] * scale_ref[...] + shift_ref[...]
    z = jnp.where(z > 0, z, alpha_ref[...] * z)
    o_ref[...] = z[:, :c_out]


def _bn_prelu(y2d, scale2, shift2, alpha, c_out, row_tile):
    m, c = y2d.shape
    tm = _pick_row_tile(m, row_tile)
    kernel = functools.partial(_bn_prelu_kernel, c_out=c_out)
    return pl.pallas_call(
        kernel,
        out_shape=jax.ShapeDtypeStruct((m, c_out), jnp.float32),
        grid=(m // tm,),
        in_specs=[pl.BlockSpec((tm, c), lambda i: (i, 0)),
                  pl.BlockSpec((1, c), lambda i: (0, 0)),
                  pl.BlockSpec((1, c), lambda i: (0, 0)),
                  pl.BlockSpec((1, c), lambda i: (0, 0))],
        out_specs=pl.BlockSpec((tm, c_out), lambda i: (i, 0)),
        compiler_params=pltpu.CompilerParams(dimension_semantics=("parallel",)),
        cost_estimate=pl.CostEstimate(flops=4 * m * c, transcendentals=0,
                                      bytes_accessed=4 * (m * c + m * c_out + 3 * c)),
    )(y2d, scale2, shift2, alpha)


# ---------------------------------------------------------------------------
# StdConv forward (NCHW in, NCHW out)
# ---------------------------------------------------------------------------

@functools.partial(jax.jit,
                   static_argnames=("kernel_size", "stride", "padding", "row_tile"))
def std_conv_forward(x_nchw, params, *, kernel_size, stride, padding, row_tile=1024):
    eps1, eps2 = 1e-5, 1e-3
    conv_w = params["conv_w"]                              # (C_out, C_in, kh, kw) OIHW
    n, c_in, h, w = x_nchw.shape
    c_out = conv_w.shape[0]
    kh = kw = kernel_size
    ho = (h + 2 * padding - kh) // stride + 1
    wo = (w + 2 * padding - kw) // stride + 1
    cp = _round_up(c_in, 128)                              # lane-dense K inside VMEM only
    cop = _round_up(c_out, 128)                            # lane-dense MXU output width

    # Single entry transpose NCHW -> NHWC.  No channel padding in HBM.
    x_nhwc = jnp.transpose(x_nchw, (0, 2, 3, 1)).astype(jnp.float32)
    x2d = x_nhwc.reshape(n * h * w, c_in)

    # --- Pass 1: BN1 batch statistics ---
    s1, sq1 = _bn_stats(x2d, row_tile)
    cnt1 = jnp.float32(n * h * w)
    mu1 = s1[0] / cnt1
    var1 = sq1[0] / cnt1 - mu1 * mu1
    g1 = params["bn1_gamma"].astype(jnp.float32)
    b1 = params["bn1_beta"].astype(jnp.float32)
    scale1 = g1 / jnp.sqrt(var1 + eps1)
    shift1 = b1 - mu1 * scale1

    # Weight rows (kh, kw*Cp, Cop): HWIO, channel zero-pad (parameter-sized), bf16
    # MXU operands with f32 accumulation in the kernel.
    w_hwio = jnp.transpose(conv_w.astype(jnp.float32), (2, 3, 1, 0))
    w_rows = jnp.pad(w_hwio, ((0, 0), (0, 0), (0, cp - c_in), (0, cop - c_out)))
    w_rows = w_rows.reshape(kh, kw * cp, cop).astype(jnp.bfloat16)

    # --- Pass 2: fused BN1-apply + conv (K-folded taps) + BN2 statistics ---
    y3, s2, sq2 = _conv_bn2(
        x_nhwc, scale1.reshape(1, 1, c_in), shift1.reshape(1, 1, c_in), w_rows,
        kernel_size=kernel_size, stride=stride, padding=padding,
        ho=ho, wo=wo, cop=cop)
    cnt2 = jnp.float32(n * ho * wo)
    mu2 = s2[0] / cnt2
    var2 = sq2[0] / cnt2 - mu2 * mu2
    g2 = jnp.pad(params["bn2_gamma"].astype(jnp.float32), (0, cop - c_out))
    b2 = jnp.pad(params["bn2_beta"].astype(jnp.float32), (0, cop - c_out))
    alpha = jnp.pad(params["prelu_alpha"].astype(jnp.float32), (0, cop - c_out))
    scale2 = g2 / jnp.sqrt(var2 + eps2)
    shift2 = b2 - mu2 * scale2

    # --- Pass 3: BN2-apply + PReLU (tiled elementwise, true-C_out output) ---
    out2d = _bn_prelu(y3.reshape(n * ho * wo, cop), scale2.reshape(1, cop),
                      shift2.reshape(1, cop), alpha.reshape(1, cop), c_out, row_tile)

    out = out2d.reshape(n, ho, wo, c_out)
    return jnp.transpose(out, (0, 3, 1, 2))                # single exit transpose


# ---------------------------------------------------------------------------
# Pure-JAX reference (mirrors the PyTorch module in training mode)
# ---------------------------------------------------------------------------

def std_conv_reference(x, params, *, kernel_size, stride, padding):
    eps1, eps2 = 1e-5, 1e-3
    w = params["conv_w"]
    g1, b1 = params["bn1_gamma"], params["bn1_beta"]
    g2, b2 = params["bn2_gamma"], params["bn2_beta"]
    alpha = params["prelu_alpha"]

    mu1 = x.mean((0, 2, 3))
    var1 = x.var((0, 2, 3))
    xn = (x - mu1[None, :, None, None]) / jnp.sqrt(var1 + eps1)[None, :, None, None]
    xn = xn * g1[None, :, None, None] + b1[None, :, None, None]

    y = lax.conv_general_dilated(
        xn, w, (stride, stride), [(padding, padding), (padding, padding)],
        dimension_numbers=("NCHW", "OIHW", "NCHW"),
        precision=lax.Precision.HIGHEST)

    mu2 = y.mean((0, 2, 3))
    var2 = y.var((0, 2, 3))
    yn = (y - mu2[None, :, None, None]) / jnp.sqrt(var2 + eps2)[None, :, None, None]
    yn = yn * g2[None, :, None, None] + b2[None, :, None, None]

    return jnp.where(yn > 0, yn, alpha[None, :, None, None] * yn)


# ---------------------------------------------------------------------------
# Demo
# ---------------------------------------------------------------------------

if __name__ == "__main__":
    N, C_IN, C_OUT, H, W = 2, 4, 8, 16, 16
    KERNEL, STRIDE, PAD = 3, 1, 1

    key = jax.random.PRNGKey(0)
    kx, kw_key = jax.random.split(key)
    x = jax.random.normal(kx, (N, C_IN, H, W), dtype=jnp.float32)

    params = {
        "conv_w": 0.1 * jax.random.normal(kw_key, (C_OUT, C_IN, KERNEL, KERNEL),
                                          jnp.float32),
        "bn1_gamma": jnp.ones((C_IN,), jnp.float32),
        "bn1_beta": jnp.zeros((C_IN,), jnp.float32),
        "bn2_gamma": jnp.ones((C_OUT,), jnp.float32),
        "bn2_beta": jnp.zeros((C_OUT,), jnp.float32),
        "prelu_alpha": 0.25 * jnp.ones((C_OUT,), jnp.float32),
    }

    # Small row_tile so the demo exercises multi-step grid accumulation.
    out = std_conv_forward(x, params, kernel_size=KERNEL, stride=STRIDE, padding=PAD,
                           row_tile=128)
    out = jax.block_until_ready(out)

    ref = std_conv_reference(x, params, kernel_size=KERNEL, stride=STRIDE, padding=PAD)
    assert out.shape == (N, C_OUT, H, W), out.shape
    max_err = float(jnp.max(jnp.abs(out - ref)))
    # bf16 MXU operands with f32 accumulation -> bf16-appropriate tolerance.
    assert jnp.allclose(out, ref, atol=2e-2, rtol=2e-2), max_err

    print("KERNEL_OK")
</pallas_src>

<mosaic_0001>
module attributes {stable_mosaic.version = 11 : i64} {
  func.func @_bn_stats_kernel(%arg0: i32, %arg1: memref<128x4xf32, #tpu.memory_space<vmem>>, %arg2: memref<1x4xf32, #tpu.memory_space<vmem>>, %arg3: memref<1x4xf32, #tpu.memory_space<vmem>>) attributes {dimension_semantics = [#tpu.dimension_semantics<arbitrary>], iteration_bounds = array<i64: 4>, scalar_prefetch = 0 : i64, scratch_operands = 0 : i64, tpu.core_type = #tpu.core_type<tc>, window_params = [{transform_indices = @transform_0, window_bounds = array<i64: 128, 4>}, {pipeline_mode = #tpu.pipeline_mode<synchronous>, transform_indices = @transform_1, window_bounds = array<i64: 1, 4>}, {pipeline_mode = #tpu.pipeline_mode<synchronous>, transform_indices = @transform_2, window_bounds = array<i64: 1, 4>}]} {
    %c0_i32 = arith.constant 0 : i32
    %0 = arith.cmpi eq, %arg0, %c0_i32 : i32
    %1 = arith.extui %0 : i1 to i32
    %c0_i32_0 = arith.constant 0 : i32
    %2 = arith.cmpi ne, %1, %c0_i32_0 : i32
    scf.if %2 {
      %cst_11 = arith.constant 0.000000e+00 : f32
      %15 = vector.broadcast %cst_11 : f32 to vector<1x4xf32>
      %c0_12 = arith.constant 0 : index
      %c0_13 = arith.constant 0 : index
      %16 = vector.load %arg2[%c0_12, %c0_13] : memref<1x4xf32, #tpu.memory_space<vmem>>, vector<1x4xf32>
      tpu.vector_store %arg2[%c0_12, %c0_13], %15 {strides = array<i32>} : memref<1x4xf32, #tpu.memory_space<vmem>>, vector<1x4xf32>,
      %cst_14 = arith.constant 0.000000e+00 : f32
      %17 = vector.broadcast %cst_14 : f32 to vector<1x4xf32>
      %c0_15 = arith.constant 0 : index
      %c0_16 = arith.constant 0 : index
      %18 = vector.load %arg3[%c0_15, %c0_16] : memref<1x4xf32, #tpu.memory_space<vmem>>, vector<1x4xf32>
      tpu.vector_store %arg3[%c0_15, %c0_16], %17 {strides = array<i32>} : memref<1x4xf32, #tpu.memory_space<vmem>>, vector<1x4xf32>,
    } else {
    }
    %c0 = arith.constant 0 : index
    %c0_1 = arith.constant 0 : index
    %3 = vector.load %arg1[%c0, %c0_1] : memref<128x4xf32, #tpu.memory_space<vmem>>, vector<128x4xf32>
    %c0_2 = arith.constant 0 : index
    %c0_3 = arith.constant 0 : index
    %4 = vector.load %arg2[%c0_2, %c0_3] : memref<1x4xf32, #tpu.memory_space<vmem>>, vector<1x4xf32>
    %cst = arith.constant dense<0.000000e+00> : vector<4xf32>
    %5 = vector.multi_reduction <add>, %3, %cst [0] : vector<128x4xf32> to vector<4xf32>
    %6 = vector.shape_cast %5 : vector<4xf32> to vector<1x4xf32>
    %7 = arith.addf %4, %6 : vector<1x4xf32>
    %c0_4 = arith.constant 0 : index
    %c0_5 = arith.constant 0 : index
    %8 = vector.load %arg2[%c0_4, %c0_5] : memref<1x4xf32, #tpu.memory_space<vmem>>, vector<1x4xf32>
    tpu.vector_store %arg2[%c0_4, %c0_5], %7 {strides = array<i32>} : memref<1x4xf32, #tpu.memory_space<vmem>>, vector<1x4xf32>,
    %c0_6 = arith.constant 0 : index
    %c0_7 = arith.constant 0 : index
    %9 = vector.load %arg3[%c0_6, %c0_7] : memref<1x4xf32, #tpu.memory_space<vmem>>, vector<1x4xf32>
    %10 = arith.mulf %3, %3 : vector<128x4xf32>
    %cst_8 = arith.constant dense<0.000000e+00> : vector<4xf32>
    %11 = vector.multi_reduction <add>, %10, %cst_8 [0] : vector<128x4xf32> to vector<4xf32>
    %12 = vector.shape_cast %11 : vector<4xf32> to vector<1x4xf32>
    %13 = arith.addf %9, %12 : vector<1x4xf32>
    %c0_9 = arith.constant 0 : index
    %c0_10 = arith.constant 0 : index
    %14 = vector.load %arg3[%c0_9, %c0_10] : memref<1x4xf32, #tpu.memory_space<vmem>>, vector<1x4xf32>
    tpu.vector_store %arg3[%c0_9, %c0_10], %13 {strides = array<i32>} : memref<1x4xf32, #tpu.memory_space<vmem>>, vector<1x4xf32>,
    return
  }
  func.func @transform_0(%arg0: i32) -> (i32, i32) {
    %c0_i32 = arith.constant 0 : i32
    %c0_i32_0 = arith.constant 0 : i32
    return %arg0, %c0_i32 : i32, i32
  }
  func.func @transform_1(%arg0: i32) -> (i32, i32) {
    %c0_i32 = arith.constant 0 : i32
    %c0_i32_0 = arith.constant 0 : i32
    %c0_i32_1 = arith.constant 0 : i32
    return %c0_i32, %c0_i32_0 : i32, i32
  }
  func.func @transform_2(%arg0: i32) -> (i32, i32) {
    %c0_i32 = arith.constant 0 : i32
    %c0_i32_0 = arith.constant 0 : i32
    %c0_i32_1 = arith.constant 0 : i32
    return %c0_i32, %c0_i32_0 : i32, i32
  }
}

module attributes {stable_mosaic.version = 11 : i64} {
  func.func @_conv_bn2_kernel(%arg0: i32, %arg1: memref<1x16x16x4xf32, #tpu.memory_space<vmem>>, %arg2: memref<1x1x4xf32, #tpu.memory_space<vmem>>, %arg3: memref<1x1x4xf32, #tpu.memory_space<vmem>>, %arg4: memref<3x384x128xbf16, #tpu.memory_space<vmem>>, %arg5: memref<1x256x128xf32, #tpu.memory_space<vmem>>, %arg6: memref<1x128xf32, #tpu.memory_space<vmem>>, %arg7: memref<1x128xf32, #tpu.memory_space<vmem>>, %arg8: memref<18x18x128xbf16, #tpu.memory_space<vmem>>, %arg9: memref<256x128xf32, #tpu.memory_space<vmem>>) attributes {dimension_semantics = [#tpu.dimension_semantics<arbitrary>], iteration_bounds = array<i64: 2>, scalar_prefetch = 0 : i64, scratch_operands = 2 : i64, tpu.core_type = #tpu.core_type<tc>, window_params = [{transform_indices = @transform_0, window_bounds = array<i64: 1, 16, 16, 4>}, {pipeline_mode = #tpu.pipeline_mode<synchronous>, transform_indices = @transform_1, window_bounds = array<i64: 1, 1, 4>}, {pipeline_mode = #tpu.pipeline_mode<synchronous>, transform_indices = @transform_2, window_bounds = array<i64: 1, 1, 4>}, {pipeline_mode = #tpu.pipeline_mode<synchronous>, transform_indices = @transform_3, window_bounds = array<i64: 3, 384, 128>}, {transform_indices = @transform_4, window_bounds = array<i64: 1, 256, 128>}, {pipeline_mode = #tpu.pipeline_mode<synchronous>, transform_indices = @transform_5, window_bounds = array<i64: 1, 128>}, {pipeline_mode = #tpu.pipeline_mode<synchronous>, transform_indices = @transform_6, window_bounds = array<i64: 1, 128>}]} {
    %c0_i32 = arith.constant 0 : i32
    %0 = arith.cmpi eq, %arg0, %c0_i32 : i32
    %1 = arith.extui %0 : i1 to i32
    %c0_i32_0 = arith.constant 0 : i32
    %2 = arith.cmpi ne, %1, %c0_i32_0 : i32
    scf.if %2 {
      %cst_75 = arith.constant 0.000000e+00 : f32
      %60 = vector.broadcast %cst_75 : f32 to vector<1x128xf32>
      %c0_76 = arith.constant 0 : index
      %c0_77 = arith.constant 0 : index
      %61 = vector.load %arg6[%c0_76, %c0_77] : memref<1x128xf32, #tpu.memory_space<vmem>>, vector<1x128xf32>
      tpu.vector_store %arg6[%c0_76, %c0_77], %60 {strides = array<i32>} : memref<1x128xf32, #tpu.memory_space<vmem>>, vector<1x128xf32>,
      %cst_78 = arith.constant 0.000000e+00 : f32
      %62 = vector.broadcast %cst_78 : f32 to vector<1x128xf32>
      %c0_79 = arith.constant 0 : index
      %c0_80 = arith.constant 0 : index
      %63 = vector.load %arg7[%c0_79, %c0_80] : memref<1x128xf32, #tpu.memory_space<vmem>>, vector<1x128xf32>
      tpu.vector_store %arg7[%c0_79, %c0_80], %62 {strides = array<i32>} : memref<1x128xf32, #tpu.memory_space<vmem>>, vector<1x128xf32>,
      %cst_81 = arith.constant 0.000000e+00 : bf16
      %64 = vector.broadcast %cst_81 : bf16 to vector<18x18x128xbf16>
      %c0_82 = arith.constant 0 : index
      %c0_83 = arith.constant 0 : index
      %c0_84 = arith.constant 0 : index
      %65 = vector.load %arg8[%c0_82, %c0_83, %c0_84] : memref<18x18x128xbf16, #tpu.memory_space<vmem>>, vector<18x18x128xbf16>
      tpu.vector_store %arg8[%c0_82, %c0_83, %c0_84], %64 {strides = array<i32>} : memref<18x18x128xbf16, #tpu.memory_space<vmem>>, vector<18x18x128xbf16>,
    } else {
    }
    %c0 = arith.constant 0 : index
    %c0_1 = arith.constant 0 : index
    %c0_2 = arith.constant 0 : index
    %c0_3 = arith.constant 0 : index
    %3 = vector.load %arg1[%c0, %c0_1, %c0_2, %c0_3] : memref<1x16x16x4xf32, #tpu.memory_space<vmem>>, vector<1x16x16x4xf32>
    %4 = vector.shape_cast %3 : vector<1x16x16x4xf32> to vector<16x16x4xf32>
    %c0_4 = arith.constant 0 : index
    %c0_5 = arith.constant 0 : index
    %c0_6 = arith.constant 0 : index
    %5 = vector.load %arg2[%c0_4, %c0_5, %c0_6] : memref<1x1x4xf32, #tpu.memory_space<vmem>>, vector<1x1x4xf32>
    %6 = vector.broadcast %5 : vector<1x1x4xf32> to vector<16x16x4xf32>
    %7 = arith.mulf %4, %6 : vector<16x16x4xf32>
    %c0_7 = arith.constant 0 : index
    %c0_8 = arith.constant 0 : index
    %c0_9 = arith.constant 0 : index
    %8 = vector.load %arg3[%c0_7, %c0_8, %c0_9] : memref<1x1x4xf32, #tpu.memory_space<vmem>>, vector<1x1x4xf32>
    %9 = vector.broadcast %8 : vector<1x1x4xf32> to vector<16x16x4xf32>
    %10 = arith.addf %7, %9 : vector<16x16x4xf32>
    %11 = arith.truncf %10 : vector<16x16x4xf32> to vector<16x16x4xbf16>
    %cst = arith.constant 0.000000e+00 : bf16
    %12 = vector.broadcast %cst : bf16 to vector<16x16x124xbf16>
    %13 = tpu.concatenate %11, %12 in 2 : vector<16x16x4xbf16>, vector<16x16x124xbf16> -> vector<16x16x128xbf16>
    %c1 = arith.constant 1 : index
    %c1_10 = arith.constant 1 : index
    %c0_11 = arith.constant 0 : index
    %14 = vector.load %arg8[%c1, %c1_10, %c0_11] : memref<18x18x128xbf16, #tpu.memory_space<vmem>>, vector<16x16x128xbf16>
    tpu.vector_store %arg8[%c1, %c1_10, %c0_11], %13 {strides = array<i32>} : memref<18x18x128xbf16, #tpu.memory_space<vmem>>, vector<16x16x128xbf16>,
    %c0_12 = arith.constant 0 : index
    %c0_13 = arith.constant 0 : index
    %c0_14 = arith.constant 0 : index
    %15 = vector.load %arg8[%c0_12, %c0_13, %c0_14] : memref<18x18x128xbf16, #tpu.memory_space<vmem>>, vector<16x16x128xbf16>
    %c0_15 = arith.constant 0 : index
    %c1_16 = arith.constant 1 : index
    %c0_17 = arith.constant 0 : index
    %16 = vector.load %arg8[%c0_15, %c1_16, %c0_17] : memref<18x18x128xbf16, #tpu.memory_space<vmem>>, vector<16x16x128xbf16>
    %c0_18 = arith.constant 0 : index
    %c2 = arith.constant 2 : index
    %c0_19 = arith.constant 0 : index
    %17 = vector.load %arg8[%c0_18, %c2, %c0_19] : memref<18x18x128xbf16, #tpu.memory_space<vmem>>, vector<16x16x128xbf16>
    %18 = tpu.concatenate %15, %16, %17 in 2 : vector<16x16x128xbf16>, vector<16x16x128xbf16>, vector<16x16x128xbf16> -> vector<16x16x384xbf16>
    %19 = vector.shape_cast %18 : vector<16x16x384xbf16> to vector<256x384xbf16>
    %c0_20 = arith.constant 0 : index
    %c0_21 = arith.constant 0 : index
    %c0_22 = arith.constant 0 : index
    %20 = vector.load %arg4[%c0_20, %c0_21, %c0_22] : memref<3x384x128xbf16, #tpu.memory_space<vmem>>, vector<1x384x128xbf16>
    %21 = vector.shape_cast %20 : vector<1x384x128xbf16> to vector<384x128xbf16>
    %cst_23 = arith.constant dense<0.000000e+00> : vector<256x128xf32>
    %22 = tpu.matmul %19, %21, %cst_23 {dimension_numbers = #tpu.dot_dimension_numbers<[1], [0], [0], [1], [0, 0, 1, 1], [], []>} : vector<256x384xbf16>, vector<384x128xbf16>, vector<256x128xf32> -> vector<256x128xf32>
    %c0_24 = arith.constant 0 : index
    %c0_25 = arith.constant 0 : index
    %23 = vector.load %arg9[%c0_24, %c0_25] : memref<256x128xf32, #tpu.memory_space<vmem>>, vector<256x128xf32>
    tpu.vector_store %arg9[%c0_24, %c0_25], %22 {strides = array<i32>} : memref<256x128xf32, #tpu.memory_space<vmem>>, vector<256x128xf32>,
    %c0_26 = arith.constant 0 : index
    %c0_27 = arith.constant 0 : index
    %24 = vector.load %arg9[%c0_26, %c0_27] : memref<256x128xf32, #tpu.memory_space<vmem>>, vector<256x128xf32>
    %c1_28 = arith.constant 1 : index
    %c0_29 = arith.constant 0 : index
    %c0_30 = arith.constant 0 : index
    %25 = vector.load %arg8[%c1_28, %c0_29, %c0_30] : memref<18x18x128xbf16, #tpu.memory_space<vmem>>, vector<16x16x128xbf16>
    %c1_31 = arith.constant 1 : index
    %c1_32 = arith.constant 1 : index
    %c0_33 = arith.constant 0 : index
    %26 = vector.load %arg8[%c1_31, %c1_32, %c0_33] : memref<18x18x128xbf16, #tpu.memory_space<vmem>>, vector<16x16x128xbf16>
    %c1_34 = arith.constant 1 : index
    %c2_35 = arith.constant 2 : index
    %c0_36 = arith.constant 0 : index
    %27 = vector.load %arg8[%c1_34, %c2_35, %c0_36] : memref<18x18x128xbf16, #tpu.memory_space<vmem>>, vector<16x16x128xbf16>
    %28 = tpu.concatenate %25, %26, %27 in 2 : vector<16x16x128xbf16>, vector<16x16x128xbf16>, vector<16x16x128xbf16> -> vector<16x16x384xbf16>
    %29 = vector.shape_cast %28 : vector<16x16x384xbf16> to vector<256x384xbf16>
    %c1_37 = arith.constant 1 : index
    %c0_38 = arith.constant 0 : index
    %c0_39 = arith.constant 0 : index
    %30 = vector.load %arg4[%c1_37, %c0_38, %c0_39] : memref<3x384x128xbf16, #tpu.memory_space<vmem>>, vector<1x384x128xbf16>
    %31 = vector.shape_cast %30 : vector<1x384x128xbf16> to vector<384x128xbf16>
    %cst_40 = arith.constant dense<0.000000e+00> : vector<256x128xf32>
    %32 = tpu.matmul %29, %31, %cst_40 {dimension_numbers = #tpu.dot_dimension_numbers<[1], [0], [0], [1], [0, 0, 1, 1], [], []>} : vector<256x384xbf16>, vector<384x128xbf16>, vector<256x128xf32> -> vector<256x128xf32>
    %33 = arith.addf %24, %32 : vector<256x128xf32>
    %c0_41 = arith.constant 0 : index
    %c0_42 = arith.constant 0 : index
    %34 = vector.load %arg9[%c0_41, %c0_42] : memref<256x128xf32, #tpu.memory_space<vmem>>, vector<256x128xf32>
    tpu.vector_store %arg9[%c0_41, %c0_42], %33 {strides = array<i32>} : memref<256x128xf32, #tpu.memory_space<vmem>>, vector<256x128xf32>,
    %c0_43 = arith.constant 0 : index
    %c0_44 = arith.constant 0 : index
    %35 = vector.load %arg9[%c0_43, %c0_44] : memref<256x128xf32, #tpu.memory_space<vmem>>, vector<256x128xf32>
    %c2_45 = arith.constant 2 : index
    %c0_46 = arith.constant 0 : index
    %c0_47 = arith.constant 0 : index
    %36 = vector.load %arg8[%c2_45, %c0_46, %c0_47] : memref<18x18x128xbf16, #tpu.memory_space<vmem>>, vector<16x16x128xbf16>
    %c2_48 = arith.constant 2 : index
    %c1_49 = arith.constant 1 : index
    %c0_50 = arith.constant 0 : index
    %37 = vector.load %arg8[%c2_48, %c1_49, %c0_50] : memref<18x18x128xbf16, #tpu.memory_space<vmem>>, vector<16x16x128xbf16>
    %c2_51 = arith.constant 2 : index
    %c2_52 = arith.constant 2 : index
    %c0_53 = arith.constant 0 : index
    %38 = vector.load %arg8[%c2_51, %c2_52, %c0_53] : memref<18x18x128xbf16, #tpu.memory_space<vmem>>, vector<16x16x128xbf16>
    %39 = tpu.concatenate %36, %37, %38 in 2 : vector<16x16x128xbf16>, vector<16x16x128xbf16>, vector<16x16x128xbf16> -> vector<16x16x384xbf16>
    %40 = vector.shape_cast %39 : vector<16x16x384xbf16> to vector<256x384xbf16>
    %c2_54 = arith.constant 2 : index
    %c0_55 = arith.constant 0 : index
    %c0_56 = arith.constant 0 : index
    %41 = vector.load %arg4[%c2_54, %c0_55, %c0_56] : memref<3x384x128xbf16, #tpu.memory_space<vmem>>, vector<1x384x128xbf16>
    %42 = vector.shape_cast %41 : vector<1x384x128xbf16> to vector<384x128xbf16>
    %cst_57 = arith.constant dense<0.000000e+00> : vector<256x128xf32>
    %43 = tpu.matmul %40, %42, %cst_57 {dimension_numbers = #tpu.dot_dimension_numbers<[1], [0], [0], [1], [0, 0, 1, 1], [], []>} : vector<256x384xbf16>, vector<384x128xbf16>, vector<256x128xf32> -> vector<256x128xf32>
    %44 = arith.addf %35, %43 : vector<256x128xf32>
    %c0_58 = arith.constant 0 : index
    %c0_59 = arith.constant 0 : index
    %45 = vector.load %arg9[%c0_58, %c0_59] : memref<256x128xf32, #tpu.memory_space<vmem>>, vector<256x128xf32>
    tpu.vector_store %arg9[%c0_58, %c0_59], %44 {strides = array<i32>} : memref<256x128xf32, #tpu.memory_space<vmem>>, vector<256x128xf32>,
    %c0_60 = arith.constant 0 : index
    %c0_61 = arith.constant 0 : index
    %46 = vector.load %arg9[%c0_60, %c0_61] : memref<256x128xf32, #tpu.memory_space<vmem>>, vector<256x128xf32>
    %47 = vector.shape_cast %46 : vector<256x128xf32> to vector<1x256x128xf32>
    %c0_62 = arith.constant 0 : index
    %c0_63 = arith.constant 0 : index
    %c0_64 = arith.constant 0 : index
    %48 = vector.load %arg5[%c0_62, %c0_63, %c0_64] : memref<1x256x128xf32, #tpu.memory_space<vmem>>, vector<1x256x128xf32>
    tpu.vector_store %arg5[%c0_62, %c0_63, %c0_64], %47 {strides = array<i32>} : memref<1x256x128xf32, #tpu.memory_space<vmem>>, vector<1x256x128xf32>,
    %c0_65 = arith.constant 0 : index
    %c0_66 = arith.constant 0 : index
    %49 = vector.load %arg6[%c0_65, %c0_66] : memref<1x128xf32, #tpu.memory_space<vmem>>, vector<1x128xf32>
    %cst_67 = arith.constant dense<0.000000e+00> : vector<128xf32>
    %50 = vector.multi_reduction <add>, %46, %cst_67 [0] : vector<256x128xf32> to vector<128xf32>
    %51 = vector.shape_cast %50 : vector<128xf32> to vector<1x128xf32>
    %52 = arith.addf %49, %51 : vector<1x128xf32>
    %c0_68 = arith.constant 0 : index
    %c0_69 = arith.constant 0 : index
    %53 = vector.load %arg6[%c0_68, %c0_69] : memref<1x128xf32, #tpu.memory_space<vmem>>, vector<1x128xf32>
    tpu.vector_store %arg6[%c0_68, %c0_69], %52 {strides = array<i32>} : memref<1x128xf32, #tpu.memory_space<vmem>>, vector<1x128xf32>,
    %c0_70 = arith.constant 0 : index
    %c0_71 = arith.constant 0 : index
    %54 = vector.load %arg7[%c0_70, %c0_71] : memref<1x128xf32, #tpu.memory_space<vmem>>, vector<1x128xf32>
    %55 = arith.mulf %46, %46 : vector<256x128xf32>
    %cst_72 = arith.constant dense<0.000000e+00> : vector<128xf32>
    %56 = vector.multi_reduction <add>, %55, %cst_72 [0] : vector<256x128xf32> to vector<128xf32>
    %57 = vector.shape_cast %56 : vector<128xf32> to vector<1x128xf32>
    %58 = arith.addf %54, %57 : vector<1x128xf32>
    %c0_73 = arith.constant 0 : index
    %c0_74 = arith.constant 0 : index
    %59 = vector.load %arg7[%c0_73, %c0_74] : memref<1x128xf32, #tpu.memory_space<vmem>>, vector<1x128xf32>
    tpu.vector_store %arg7[%c0_73, %c0_74], %58 {strides = array<i32>} : memref<1x128xf32, #tpu.memory_space<vmem>>, vector<1x128xf32>,
    return
  }
  func.func @transform_0(%arg0: i32) -> (i32, i32, i32, i32) {
    %c0_i32 = arith.constant 0 : i32
    %c0_i32_0 = arith.constant 0 : i32
    %c0_i32_1 = arith.constant 0 : i32
    %c0_i32_2 = arith.constant 0 : i32
    return %arg0, %c0_i32, %c0_i32_0, %c0_i32_1 : i32, i32, i32, i32
  }
  func.func @transform_1(%arg0: i32) -> (i32, i32, i32) {
    %c0_i32 = arith.constant 0 : i32
    %c0_i32_0 = arith.constant 0 : i32
    %c0_i32_1 = arith.constant 0 : i32
    %c0_i32_2 = arith.constant 0 : i32
    return %c0_i32, %c0_i32_0, %c0_i32_1 : i32, i32, i32
  }
  func.func @transform_2(%arg0: i32) -> (i32, i32, i32) {
    %c0_i32 = arith.constant 0 : i32
    %c0_i32_0 = arith.constant 0 : i32
    %c0_i32_1 = arith.constant 0 : i32
    %c0_i32_2 = arith.constant 0 : i32
    return %c0_i32, %c0_i32_0, %c0_i32_1 : i32, i32, i32
  }
  func.func @transform_3(%arg0: i32) -> (i32, i32, i32) {
    %c0_i32 = arith.constant 0 : i32
    %c0_i32_0 = arith.constant 0 : i32
    %c0_i32_1 = arith.constant 0 : i32
    %c0_i32_2 = arith.constant 0 : i32
    return %c0_i32, %c0_i32_0, %c0_i32_1 : i32, i32, i32
  }
  func.func @transform_4(%arg0: i32) -> (i32, i32, i32) {
    %c0_i32 = arith.constant 0 : i32
    %c0_i32_0 = arith.constant 0 : i32
    %c0_i32_1 = arith.constant 0 : i32
    return %arg0, %c0_i32, %c0_i32_0 : i32, i32, i32
  }
  func.func @transform_5(%arg0: i32) -> (i32, i32) {
    %c0_i32 = arith.constant 0 : i32
    %c0_i32_0 = arith.constant 0 : i32
    %c0_i32_1 = arith.constant 0 : i32
    return %c0_i32, %c0_i32_0 : i32, i32
  }
  func.func @transform_6(%arg0: i32) -> (i32, i32) {
    %c0_i32 = arith.constant 0 : i32
    %c0_i32_0 = arith.constant 0 : i32
    %c0_i32_1 = arith.constant 0 : i32
    return %c0_i32, %c0_i32_0 : i32, i32
  }
}

module attributes {stable_mosaic.version = 11 : i64} {
  func.func @_bn_prelu_kernel(%arg0: i32, %arg1: memref<128x128xf32, #tpu.memory_space<vmem>>, %arg2: memref<1x128xf32, #tpu.memory_space<vmem>>, %arg3: memref<1x128xf32, #tpu.memory_space<vmem>>, %arg4: memref<1x128xf32, #tpu.memory_space<vmem>>, %arg5: memref<128x8xf32, #tpu.memory_space<vmem>>) attributes {dimension_semantics = [#tpu.dimension_semantics<parallel>], iteration_bounds = array<i64: 4>, scalar_prefetch = 0 : i64, scratch_operands = 0 : i64, tpu.core_type = #tpu.core_type<tc>, window_params = [{transform_indices = @transform_0, window_bounds = array<i64: 128, 128>}, {pipeline_mode = #tpu.pipeline_mode<synchronous>, transform_indices = @transform_1, window_bounds = array<i64: 1, 128>}, {pipeline_mode = #tpu.pipeline_mode<synchronous>, transform_indices = @transform_2, window_bounds = array<i64: 1, 128>}, {pipeline_mode = #tpu.pipeline_mode<synchronous>, transform_indices = @transform_3, window_bounds = array<i64: 1, 128>}, {transform_indices = @transform_4, window_bounds = array<i64: 128, 8>}]} {
    %c0 = arith.constant 0 : index
    %c0_0 = arith.constant 0 : index
    %0 = vector.load %arg1[%c0, %c0_0] : memref<128x128xf32, #tpu.memory_space<vmem>>, vector<128x128xf32>
    %c0_1 = arith.constant 0 : index
    %c0_2 = arith.constant 0 : index
    %1 = vector.load %arg2[%c0_1, %c0_2] : memref<1x128xf32, #tpu.memory_space<vmem>>, vector<1x128xf32>
    %2 = vector.broadcast %1 : vector<1x128xf32> to vector<128x128xf32>
    %3 = arith.mulf %0, %2 : vector<128x128xf32>
    %c0_3 = arith.constant 0 : index
    %c0_4 = arith.constant 0 : index
    %4 = vector.load %arg3[%c0_3, %c0_4] : memref<1x128xf32, #tpu.memory_space<vmem>>, vector<1x128xf32>
    %5 = vector.broadcast %4 : vector<1x128xf32> to vector<128x128xf32>
    %6 = arith.addf %3, %5 : vector<128x128xf32>
    %cst = arith.constant 0.000000e+00 : f32
    %7 = vector.broadcast %cst : f32 to vector<128x128xf32>
    %8 = arith.cmpf ogt, %6, %7 : vector<128x128xf32>
    %c0_5 = arith.constant 0 : index
    %c0_6 = arith.constant 0 : index
    %9 = vector.load %arg4[%c0_5, %c0_6] : memref<1x128xf32, #tpu.memory_space<vmem>>, vector<1x128xf32>
    %10 = vector.broadcast %9 : vector<1x128xf32> to vector<128x128xf32>
    %11 = arith.mulf %10, %6 : vector<128x128xf32>
    %12 = arith.select %8, %6, %11 : vector<128x128xi1>, vector<128x128xf32>
    %13 = vector.extract_strided_slice %12 {offsets = [0, 0], sizes = [128, 8], strides = [1, 1]} : vector<128x128xf32> to vector<128x8xf32>
    %c0_7 = arith.constant 0 : index
    %c0_8 = arith.constant 0 : index
    %14 = vector.load %arg5[%c0_7, %c0_8] : memref<128x8xf32, #tpu.memory_space<vmem>>, vector<128x8xf32>
    tpu.vector_store %arg5[%c0_7, %c0_8], %13 {strides = array<i32>} : memref<128x8xf32, #tpu.memory_space<vmem>>, vector<128x8xf32>,
    return
  }
  func.func @transform_0(%arg0: i32) -> (i32, i32) {
    %c0_i32 = arith.constant 0 : i32
    %c0_i32_0 = arith.constant 0 : i32
    return %arg0, %c0_i32 : i32, i32
  }
  func.func @transform_1(%arg0: i32) -> (i32, i32) {
    %c0_i32 = arith.constant 0 : i32
    %c0_i32_0 = arith.constant 0 : i32
    %c0_i32_1 = arith.constant 0 : i32
    return %c0_i32, %c0_i32_0 : i32, i32
  }
  func.func @transform_2(%arg0: i32) -> (i32, i32) {
    %c0_i32 = arith.constant 0 : i32
    %c0_i32_0 = arith.constant 0 : i32
    %c0_i32_1 = arith.constant 0 : i32
    return %c0_i32, %c0_i32_0 : i32, i32
  }
  func.func @transform_3(%arg0: i32) -> (i32, i32) {
    %c0_i32 = arith.constant 0 : i32
    %c0_i32_0 = arith.constant 0 : i32
    %c0_i32_1 = arith.constant 0 : i32
    return %c0_i32, %c0_i32_0 : i32, i32
  }
  func.func @transform_4(%arg0: i32) -> (i32, i32) {
    %c0_i32 = arith.constant 0 : i32
    %c0_i32_0 = arith.constant 0 : i32
    return %arg0, %c0_i32 : i32, i32
  }
}

</mosaic_0001>

<bundles_post_ra>
// kernel: std_conv_forward.3
= control target key start
LH: loop header
LB: loop body
LE: loop exit
PB: predicated region body
PF: predicated region fallthrough
CT: control target
= control target key end

     0   :  { %s326_s9 = smov 0   ;;  %s408_s0 = inlined_call_operand.vmem [shape: f32[512,4], index: 0, kind: input, shape index: {}]   ;;  %s409_s1 = inlined_call_operand.vmem [shape: f32[1,4], index: 1, kind: output, shape index: {0}]   ;;  %s410_s2 = inlined_call_operand.vmem [shape: f32[1,4], index: 2, kind: output, shape index: {1}]  }
   0x1 LB: > { %s284_s10 = sadd.s32 4294967295, %s308_s9   ;;  %p287_p0 = scmp.ge.s32.totalorder %s308_s9, 1  ;;  %s308_s9 = sphi %s326_s9, %s13_s9  }
   0x2   : > { %p106_p1 = scmp.lt.s32.totalorder %s308_s9, 5 }
   0x4   : > { %p107_p2 = pnand %p287_p0, %p106_p1 }
   0x5   : > { %s288_s11 = sshll.u32 (!%p107_p2), %s284_s10, 4  ;;  %p290_p4 = scmp.ne.s32.totalorder (!%p107_p2), %s284_s10, 0 }
   0x6   : > { %110 = sbr.rel (%p107_p2) target bundleno = 68 (0x44), region = 24  ;;  %p124_p3 = scmp.lt.s32.totalorder (!%p107_p2), %s288_s11, 63 }
   0xb   : > { %s412_s11 = smov (!%p124_p3, %s288_s11), 63  ;;  %132 = sbr.rel (%p290_p4) target bundleno = 18 (0x12), region = 28 }
   0xc   : > { %s289_s12 = sshll.u32 %s412_s11, 3 }
   0xd   : > { %s337_s15 = scalar_lea.vmem %s408_s0, %s289_s12 }
  0x10   : > { %vm133_vm0 = vcmask 24576   ;;  %v310_v0 = vmov 0.0  }
  0x11   : > { %134 = vst.msk [vmem:[%s409_s1] sm:$0x1] %vm133_vm0, %v310_v0  ;;  %135 = vst.msk [vmem:[%s410_s2] sm:$0x1] %vm133_vm0, %v310_v0 }
  0x12 PF: > { %v136_v1 = vld [vmem:[%s337_s15] sm:$0xff]  ;;  %v137_v2 = vld [vmem:[%s337_s15 + $0x8] sm:$0xff]  ;;  %v138_v3 = vld [vmem:[%s337_s15 + $0x10] sm:$0xff]  ;;  %vm153_vm1 = vcmask 31744   ;;  %vm192_vm2 = vcmask 24576  }
  0x13   : > { %v154_v4 = vsel %vm153_vm1, %v136_v1, 0.0  ;;  %v155_v5 = vsel %vm153_vm1, %v137_v2, 0.0  ;;  %v157_v6 = vsel %vm153_vm1, %v138_v3, 0.0  ;;  %v139_v7 = vld [vmem:[%s337_s15 + $0x18] sm:$0xff]  ;;  %v140_v10 = vld [vmem:[%s337_s15 + $0x20] sm:$0xff]  ;;  %v141_v13 = vld [vmem:[%s337_s15 + $0x28] sm:$0xff]  ;;  %v195_v15 = vmul.f32 %v136_v1, %v136_v1 }
  0x14   : > { %v156_v8 = vadd.f32 %v155_v5, %v154_v4  ;;  %v159_v9 = vsel %vm153_vm1, %v139_v7, 0.0  ;;  %v161_v12 = vsel %vm153_vm1, %v140_v10, 0.0  ;;  %v196_v16 = vmul.f32 %v137_v2, %v137_v2  ;;  %v142_v19 = vld [vmem:[%s337_s15 + $0x30] sm:$0xff]  ;;  %v143_v24 = vld [vmem:[%s337_s15 + $0x38] sm:$0xff]  ;;  %v144_v31 = vld [vmem:[%s337_s15 + $0x40] sm:$0xff] }
  0x15   : > { %v197_v17 = vmul.f32 %v138_v3, %v138_v3  ;;  %v163_v18 = vsel %vm153_vm1, %v141_v13, 0.0  ;;  %v198_v21 = vmul.f32 %v139_v7, %v139_v7  ;;  %v165_v22 = vsel %vm153_vm1, %v142_v19, 0.0  ;;  %v145_v37 = vld [vmem:[%s337_s15 + $0x48] sm:$0xff]  ;;  %v146_v43 = vld [vmem:[%s337_s15 + $0x50] sm:$0xff]  ;;  %v147_v49 = vld [vmem:[%s337_s15 + $0x58] sm:$0xff] }
  0x16   : > { %v158_v11 = vadd.f32 %v157_v6, %v156_v8  ;;  %v199_v23 = vmul.f32 %v140_v10, %v140_v10  ;;  %v211_v26 = vsel %vm153_vm1, %v195_v15, 0.0  ;;  %v212_v27 = vsel %vm153_vm1, %v196_v16, 0.0  ;;  %v148_v55 = vld [vmem:[%s337_s15 + $0x60] sm:$0xff]  ;;  %v149_v61 = vld [vmem:[%s337_s15 + $0x68] sm:$0xff]  ;;  %v150_v3 = vld [vmem:[%s337_s15 + $0x70] sm:$0xff] }
  0x17   : > { %v214_v28 = vsel %vm153_vm1, %v197_v17, 0.0  ;;  %v167_v29 = vsel %vm153_vm1, %v143_v24, 0.0  ;;  %v213_v30 = vadd.f32 %v212_v27, %v211_v26  ;;  %v200_v33 = vmul.f32 %v141_v13, %v141_v13 }
  0x18   : > { %v160_v14 = vadd.f32 %v159_v9, %v158_v11  ;;  %v216_v34 = vsel %vm153_vm1, %v198_v21, 0.0  ;;  %v169_v35 = vsel %vm153_vm1, %v144_v31, 0.0  ;;  %v201_v39 = vmul.f32 %v142_v19, %v142_v19  ;;  %v151_v9 = vld [vmem:[%s337_s15 + $0x78] sm:$0xff] }
  0x19   : > { %v215_v36 = vadd.f32 %v214_v28, %v213_v30  ;;  %v218_v40 = vsel %vm153_vm1, %v199_v23, 0.0  ;;  %v171_v41 = vsel %vm153_vm1, %v145_v37, 0.0  ;;  %v202_v45 = vmul.f32 %v143_v24, %v143_v24 }
  0x1a   : > { %v162_v20 = vadd.f32 %v161_v12, %v160_v14  ;;  %v220_v46 = vsel %vm153_vm1, %v200_v33, 0.0  ;;  %v173_v47 = vsel %vm153_vm1, %v146_v43, 0.0  ;;  %v203_v51 = vmul.f32 %v144_v31, %v144_v31 }
  0x1b   : > { %v217_v42 = vadd.f32 %v216_v34, %v215_v36  ;;  %v222_v52 = vsel %vm153_vm1, %v201_v39, 0.0  ;;  %v175_v53 = vsel %vm153_vm1, %v147_v49, 0.0  ;;  %v204_v57 = vmul.f32 %v145_v37, %v145_v37  ;;  %v152_v36 = vld [vmem:[%s409_s1] sm:$0x1] }
  0x1c   : > { %v164_v25 = vadd.f32 %v163_v18, %v162_v20  ;;  %v224_v58 = vsel %vm153_vm1, %v202_v45, 0.0  ;;  %v177_v59 = vsel %vm153_vm1, %v148_v55, 0.0  ;;  %v205_v63 = vmul.f32 %v146_v43, %v146_v43 }
  0x1d   : > { %v219_v48 = vadd.f32 %v218_v40, %v217_v42  ;;  %v226_v0 = vsel %vm153_vm1, %v203_v51, 0.0  ;;  %v179_v1 = vsel %vm153_vm1, %v149_v61, 0.0  ;;  %v206_v5 = vmul.f32 %v147_v49, %v147_v49 }
  0x1e   : > { %v166_v32 = vadd.f32 %v165_v22, %v164_v25  ;;  %v228_v6 = vsel %vm153_vm1, %v204_v57, 0.0  ;;  %v181_v7 = vsel %vm153_vm1, %v150_v3, 0.0  ;;  %v207_v11 = vmul.f32 %v148_v55, %v148_v55 }
  0x1f   : > { %v221_v54 = vadd.f32 %v220_v46, %v219_v48  ;;  %v230_v12 = vsel %vm153_vm1, %v205_v63, 0.0  ;;  %v183_v13 = vsel %vm153_vm1, %v151_v9, 0.0  ;;  %v208_v16 = vmul.f32 %v149_v61, %v149_v61 }
  0x20   : > { %v168_v38 = vadd.f32 %v167_v29, %v166_v32  ;;  %v232_v17 = vsel %vm153_vm1, %v206_v5, 0.0  ;;  %v209_v20 = vmul.f32 %v150_v3, %v150_v3  ;;  %v234_v21 = vsel %vm153_vm1, %v207_v11, 0.0 }
  0x21   : > { %v223_v60 = vadd.f32 %v222_v52, %v221_v54  ;;  %v210_v24 = vmul.f32 %v151_v9, %v151_v9  ;;  %v236_v25 = vsel %vm153_vm1, %v208_v16, 0.0 }
  0x22   : > { %v170_v44 = vadd.f32 %v169_v35, %v168_v38  ;;  %v238_v28 = vsel %vm153_vm1, %v209_v20, 0.0 }
  0x23   : > { %v225_v2 = vadd.f32 %v224_v58, %v223_v60  ;;  %v240_v31 = vsel %vm153_vm1, %v210_v24, 0.0 }
  0x24   : > { %v172_v50 = vadd.f32 %v171_v41, %v170_v44  ;;  %v194_v44 = vld [vmem:[%s410_s2] sm:$0x1] }
  0x25   : > { %v227_v8 = vadd.f32 %v226_v0, %v225_v2 }
  0x26   : > { %v174_v56 = vadd.f32 %v173_v47, %v172_v50 }
  0x27   : > { %v229_v14 = vadd.f32 %v228_v6, %v227_v8 }
  0x28   : > { %v176_v62 = vadd.f32 %v175_v53, %v174_v56 }
  0x29   : > { %v231_v18 = vadd.f32 %v230_v12, %v229_v14 }
  0x2a   : > { %v178_v4 = vadd.f32 %v177_v59, %v176_v62 }
  0x2b   : > { %v233_v22 = vadd.f32 %v232_v17, %v231_v18 }
  0x2c   : > { %v180_v10 = vadd.f32 %v179_v1, %v178_v4 }
  0x2d   : > { %v235_v26 = vadd.f32 %v234_v21, %v233_v22 }
  0x2e   : > { %v182_v15 = vadd.f32 %v181_v7, %v180_v10 }
  0x2f   : > { %v237_v29 = vadd.f32 %v236_v25, %v235_v26 }
  0x30   : > { %v184_v19 = vadd.f32 %v183_v13, %v182_v15 }
  0x31   : > { %v239_v32 = vadd.f32 %v238_v28, %v237_v29 }
  0x32   : > { %v185_v23 = vrot.slane %v184_v19, 4 }
  0x33   : > { %v241_v34 = vadd.f32 %v240_v31, %v239_v32 }
  0x34   : > { %v186_v27 = vadd.f32 %v185_v23, %v184_v19 }
  0x35   : > { %v242_v37 = vrot.slane %v241_v34, 4 }
  0x36   : > { %v187_v30 = vrot.slane %v186_v27, 2 }
  0x37   : > { %v243_v39 = vadd.f32 %v242_v37, %v241_v34 }
  0x38   : > { %v188_v33 = vadd.f32 %v187_v30, %v186_v27 }
  0x39   : > { %v244_v41 = vrot.slane %v243_v39, 2 }
  0x3a   : > { %v189_v35 = vrot.slane %v188_v33, 1 }
  0x3b   : > { %v245_v42 = vadd.f32 %v244_v41, %v243_v39 }
  0x3c   : > { %v190_v38 = vadd.f32 %v189_v35, %v188_v33 }
  0x3d   : > { %v246_v43 = vrot.slane %v245_v42, 1 }
  0x3e   : > { %v191_v40 = vadd.f32 %v190_v38, %v152_v36 }
  0x3f   : > { %v247_v45 = vadd.f32 %v246_v43, %v245_v42 }
  0x40   : > { %193 = vst.msk [vmem:[%s409_s1] sm:$0x1] %vm192_vm2, %v191_v40 }
  0x41   : > { %v248_v46 = vadd.f32 %v247_v45, %v194_v44 }
  0x43   : > { %249 = vst.msk [vmem:[%s410_s2] sm:$0x1] %vm192_vm2, %v248_v46 }
  0x44 PF: > { %s13_s9 = sadd.s32 1, %s308_s9  }
  0x45   : > { %p10_p5 = scmp.ge.s32.totalorder %s13_s9, 6  }
  0x47   :  { %12 = sbr.rel (!%p10_p5) target bundleno = 1 (0x1), region = 62 }

// kernel: std_conv_forward.5
= control target key start
LH: loop header
LB: loop body
LE: loop exit
PB: predicated region body
PF: predicated region fallthrough
CT: control target
= control target key end

     0   :  { %s446_s15 = smov 0   ;;  %s581_s0 = inlined_call_operand.vmem [shape: f32[512,128], index: 0, kind: input, shape index: {}]   ;;  %s582_s1 = inlined_call_operand.vmem [shape: f32[1,128], index: 1, kind: input, shape index: {}]   ;;  %s583_s2 = inlined_call_operand.vmem [shape: f32[1,128], index: 2, kind: input, shape index: {}]   ;;  %s584_s3 = inlined_call_operand.vmem [shape: f32[1,128], index: 3, kind: input, shape index: {}]   ;;  %s585_s4 = inlined_call_operand.vmem [shape: f32[512,8], index: 4, kind: output, shape index: {}]  }
   0x1 LB: > { %s391_s16 = sadd.s32 4294967295, %s419_s15   ;;  %p395_p0 = scmp.ge.s32.totalorder %s419_s15, 1  ;;  %s419_s15 = sphi %s446_s15, %s14_s15  }
   0x2   : > { %p163_p1 = scmp.lt.s32.totalorder %s419_s15, 5 }
   0x4   : > { %p164_p2 = pnand %p395_p0, %p163_p1 }
   0x5   : > { %s396_s17 = sshll.u32 (!%p164_p2), %s391_s16, 4 }
   0x6   : > { %167 = sbr.rel (%p164_p2) target bundleno = 40 (0x28), region = 36  ;;  %p190_p3 = scmp.lt.s32.totalorder (!%p164_p2), %s396_s17, 63 }
   0xb   : > { %s587_s17 = smov (!%p190_p3, %s396_s17), 63  ;;  %v460_v0 = vld [vmem:[%s582_s1] ss:$0 sm:$0xff]  ;;  %vm318_vm0 = vcmask 64512  }
   0xc   : > { %s397_s18 = sshll.u32 %s587_s17, 3  ;;  %v470_v1 = vld [vmem:[%s583_s2] ss:$0 sm:$0xff] }
   0xd   : > { %s465_s23 = scalar_lea.vmem %s581_s0, %s397_s18  ;;  %v484_v11 = vld [vmem:[%s584_s3] ss:$0 sm:$0xff]  ;;  %s502_s30 = scalar_lea.vmem %s585_s4, %s397_s18 }
   0xe   : > { %v201_v2 = vld [vmem:[%s465_s23] sm:$0xff]  ;;  %v202_v3 = vld [vmem:[%s465_s23 + $0x8] sm:$0xff]  ;;  %v203_v4 = vld [vmem:[%s465_s23 + $0x10] sm:$0xff] }
   0xf   : > { %v224_v5 = vmul.f32 %v460_v0, %v201_v2  ;;  %v225_v6 = vmul.f32 %v460_v0, %v202_v3  ;;  %v226_v7 = vmul.f32 %v460_v0, %v203_v4  ;;  %v204_v8 = vld [vmem:[%s465_s23 + $0x18] sm:$0xff]  ;;  %v205_v9 = vld [vmem:[%s465_s23 + $0x20] sm:$0xff]  ;;  %v206_v10 = vld [vmem:[%s465_s23 + $0x28] sm:$0xff] }
  0x10   : > { %v227_v12 = vmul.f32 %v460_v0, %v204_v8  ;;  %v228_v13 = vmul.f32 %v460_v0, %v205_v9  ;;  %v229_v14 = vmul.f32 %v460_v0, %v206_v10  ;;  %v207_v15 = vld [vmem:[%s465_s23 + $0x30] sm:$0xff]  ;;  %v208_v16 = vld [vmem:[%s465_s23 + $0x38] sm:$0xff]  ;;  %v209_v29 = vld [vmem:[%s465_s23 + $0x40] sm:$0xff] }
  0x11   : > { %v247_v17 = vadd.f32 %v470_v1, %v224_v5  ;;  %v248_v18 = vadd.f32 %v470_v1, %v225_v6  ;;  %v249_v19 = vadd.f32 %v470_v1, %v226_v7  ;;  %v230_v20 = vmul.f32 %v460_v0, %v207_v15  ;;  %v210_v33 = vld [vmem:[%s465_s23 + $0x48] sm:$0xff]  ;;  %v211_v34 = vld [vmem:[%s465_s23 + $0x50] sm:$0xff]  ;;  %v212_v35 = vld [vmem:[%s465_s23 + $0x58] sm:$0xff] }
  0x12   : > { %v250_v21 = vadd.f32 %v470_v1, %v227_v12  ;;  %v251_v22 = vadd.f32 %v470_v1, %v228_v13  ;;  %v252_v23 = vadd.f32 %v470_v1, %v229_v14  ;;  %v231_v24 = vmul.f32 %v460_v0, %v208_v16  ;;  %v213_v47 = vld [vmem:[%s465_s23 + $0x60] sm:$0xff]  ;;  %v214_v48 = vld [vmem:[%s465_s23 + $0x68] sm:$0xff]  ;;  %v215_v61 = vld [vmem:[%s465_s23 + $0x70] sm:$0xff] }
  0x13   : > { %vm263_vm1 = vcmp.gt.f32.partialorder %v247_v17, 0.0  ;;  %v286_v25 = vmul.f32 %v484_v11, %v247_v17  ;;  %vm264_vm2 = vcmp.gt.f32.partialorder %v248_v18, 0.0  ;;  %v287_v26 = vmul.f32 %v484_v11, %v248_v18  ;;  %v216_v62 = vld [vmem:[%s465_s23 + $0x78] sm:$0xff] }
  0x14   : > { %vm265_vm3 = vcmp.gt.f32.partialorder %v249_v19, 0.0  ;;  %v288_v27 = vmul.f32 %v484_v11, %v249_v19  ;;  %vm266_vm4 = vcmp.gt.f32.partialorder %v250_v21, 0.0  ;;  %v289_v28 = vmul.f32 %v484_v11, %v250_v21 }
  0x15   : > { %v302_v30 = vsel %vm263_vm1, %v247_v17, %v286_v25  ;;  %v303_v31 = vsel %vm264_vm2, %v248_v18, %v287_v26  ;;  %vm267_vm5 = vcmp.gt.f32.partialorder %v251_v22, 0.0  ;;  %v290_v32 = vmul.f32 %v484_v11, %v251_v22 }
  0x16   : > { %319 = vst.msk [vmem:[%s502_s30] sm:$0xff] %vm318_vm0, %v302_v30  ;;  %320 = vst.msk [vmem:[%s502_s30 + $0x8] sm:$0xff] %vm318_vm0, %v303_v31  ;;  %v304_v36 = vsel %vm265_vm3, %v249_v19, %v288_v27  ;;  %v305_v37 = vsel %vm266_vm4, %v250_v21, %v289_v28  ;;  %vm268_vm6 = vcmp.gt.f32.partialorder %v252_v23, 0.0  ;;  %v291_v38 = vmul.f32 %v484_v11, %v252_v23 }
  0x17   : > { %321 = vst.msk [vmem:[%s502_s30 + $0x10] sm:$0xff] %vm318_vm0, %v304_v36  ;;  %322 = vst.msk [vmem:[%s502_s30 + $0x18] sm:$0xff] %vm318_vm0, %v305_v37  ;;  %v306_v39 = vsel %vm267_vm5, %v251_v22, %v290_v32  ;;  %v253_v40 = vadd.f32 %v470_v1, %v230_v20  ;;  %v254_v41 = vadd.f32 %v470_v1, %v231_v24 }
  0x18   : > { %v232_v42 = vmul.f32 %v460_v0, %v209_v29  ;;  %323 = vst.msk [vmem:[%s502_s30 + $0x20] sm:$0xff] %vm318_vm0, %v306_v39  ;;  %v307_v43 = vsel %vm268_vm6, %v252_v23, %v291_v38  ;;  %v233_v44 = vmul.f32 %v460_v0, %v210_v33  ;;  %v234_v45 = vmul.f32 %v460_v0, %v211_v34 }
  0x19   : > { %v235_v46 = vmul.f32 %v460_v0, %v212_v35  ;;  %324 = vst.msk [vmem:[%s502_s30 + $0x28] sm:$0xff] %vm318_vm0, %v307_v43  ;;  %vm269_vm7 = vcmp.gt.f32.partialorder %v253_v40, 0.0  ;;  %v292_v49 = vmul.f32 %v484_v11, %v253_v40  ;;  %vm270_vm8 = vcmp.gt.f32.partialorder %v254_v41, 0.0 }
  0x1a   : > { %v293_v50 = vmul.f32 %v484_v11, %v254_v41  ;;  %v255_v51 = vadd.f32 %v470_v1, %v232_v42  ;;  %v256_v52 = vadd.f32 %v470_v1, %v233_v44  ;;  %v257_v53 = vadd.f32 %v470_v1, %v234_v45 }
  0x1b   : > { %v258_v54 = vadd.f32 %v470_v1, %v235_v46  ;;  %v308_v55 = vsel %vm269_vm7, %v253_v40, %v292_v49  ;;  %v236_v57 = vmul.f32 %v460_v0, %v213_v47  ;;  %v237_v58 = vmul.f32 %v460_v0, %v214_v48 }
  0x1c   : > { %v309_v56 = vsel %vm270_vm8, %v254_v41, %v293_v50  ;;  %325 = vst.msk [vmem:[%s502_s30 + $0x30] sm:$0xff] %vm318_vm0, %v308_v55  ;;  %vm271_vm9 = vcmp.gt.f32.partialorder %v255_v51, 0.0  ;;  %v294_v59 = vmul.f32 %v484_v11, %v255_v51  ;;  %vm272_vm10 = vcmp.gt.f32.partialorder %v256_v52, 0.0 }
  0x1d   : > { %326 = vst.msk [vmem:[%s502_s30 + $0x38] sm:$0xff] %vm318_vm0, %v309_v56  ;;  %v295_v60 = vmul.f32 %v484_v11, %v256_v52  ;;  %vm273_vm11 = vcmp.gt.f32.partialorder %v257_v53, 0.0  ;;  %v296_v63 = vmul.f32 %v484_v11, %v257_v53  ;;  %vm274_vm12 = vcmp.gt.f32.partialorder %v258_v54, 0.0 }
  0x1e   : > { %v297_v2 = vmul.f32 %v484_v11, %v258_v54  ;;  %v310_v3 = vsel %vm271_vm9, %v255_v51, %v294_v59  ;;  %v259_v5 = vadd.f32 %v470_v1, %v236_v57  ;;  %v260_v6 = vadd.f32 %v470_v1, %v237_v58 }
  0x1f   : > { %v311_v4 = vsel %vm272_vm10, %v256_v52, %v295_v60  ;;  %327 = vst.msk [vmem:[%s502_s30 + $0x40] sm:$0xff] %vm318_vm0, %v310_v3  ;;  %v312_v7 = vsel %vm273_vm11, %v257_v53, %v296_v63  ;;  %v238_v9 = vmul.f32 %v460_v0, %v215_v61  ;;  %v239_v10 = vmul.f32 %v460_v0, %v216_v62 }
  0x20   : > { %328 = vst.msk [vmem:[%s502_s30 + $0x48] sm:$0xff] %vm318_vm0, %v311_v4  ;;  %v313_v8 = vsel %vm274_vm12, %v258_v54, %v297_v2  ;;  %329 = vst.msk [vmem:[%s502_s30 + $0x50] sm:$0xff] %vm318_vm0, %v312_v7  ;;  %vm275_vm13 = vcmp.gt.f32.partialorder %v259_v5, 0.0  ;;  %v298_v12 = vmul.f32 %v484_v11, %v259_v5  ;;  %vm276_vm14 = vcmp.gt.f32.partialorder %v260_v6, 0.0 }
  0x21   : > { %330 = vst.msk [vmem:[%s502_s30 + $0x58] sm:$0xff] %vm318_vm0, %v313_v8  ;;  %v299_v13 = vmul.f32 %v484_v11, %v260_v6  ;;  %v261_v14 = vadd.f32 %v470_v1, %v238_v9  ;;  %v262_v15 = vadd.f32 %v470_v1, %v239_v10 }
  0x22   : > { %v314_v16 = vsel %vm275_vm13, %v259_v5, %v298_v12 }
  0x23   : > { %v315_v17 = vsel %vm276_vm14, %v260_v6, %v299_v13  ;;  %331 = vst.msk [vmem:[%s502_s30 + $0x60] sm:$0xff] %vm318_vm0, %v314_v16  ;;  %vm277_vm15 = vcmp.gt.f32.partialorder %v261_v14, 0.0  ;;  %v300_v0 = vmul.f32 %v484_v11, %v261_v14  ;;  %vm278_vm1 = vcmp.gt.f32.partialorder %v262_v15, 0.0 }
  0x24   : > { %332 = vst.msk [vmem:[%s502_s30 + $0x68] sm:$0xff] %vm318_vm0, %v315_v17  ;;  %v301_v18 = vmul.f32 %v484_v11, %v262_v15 }
  0x25   : > { %v316_v19 = vsel %vm277_vm15, %v261_v14, %v300_v0 }
  0x26   : > { %v317_v20 = vsel %vm278_vm1, %v262_v15, %v301_v18  ;;  %333 = vst.msk [vmem:[%s502_s30 + $0x70] sm:$0xff] %vm318_vm0, %v316_v19 }
  0x27   : > { %334 = vst.msk [vmem:[%s502_s30 + $0x78] sm:$0xff] %vm318_vm0, %v317_v20 }
  0x28 PF: > { %s14_s15 = sadd.s32 1, %s419_s15  }
  0x29   : > { %p11_p4 = scmp.ge.s32.totalorder %s14_s15, 6  }
  0x2b   :  { %13 = sbr.rel (!%p11_p4) target bundleno = 1 (0x1), region = 66 }

// kernel: std_conv_forward.4
= control target key start
LH: loop header
LB: loop body
LE: loop exit
PB: predicated region body
PF: predicated region fallthrough
CT: control target
= control target key end

     0   :  { %s5794_s21 = smov 0   ;;  %s7458_s0 = inlined_call_operand.vmem [shape: f32[2,16,16,4], index: 0, kind: input, shape index: {}]   ;;  %s7459_s1 = inlined_call_operand.vmem [shape: f32[1,1,4], index: 1, kind: input, shape index: {}]   ;;  %s7460_s2 = inlined_call_operand.vmem [shape: f32[1,1,4], index: 2, kind: input, shape index: {}]   ;;  %s7461_s3 = inlined_call_operand.vmem [shape: bf16[3,384,128], index: 3, kind: input, shape index: {}]   ;;  %s7462_s4 = inlined_call_operand.vmem [shape: f32[2,256,128], index: 4, kind: output, shape index: {0}]   ;;  %s7463_s5 = inlined_call_operand.vmem [shape: f32[1,128], index: 5, kind: output, shape index: {1}]   ;;  %s7464_s6 = inlined_call_operand.vmem [shape: f32[1,128], index: 6, kind: output, shape index: {2}]  }
   0x1 LB: > { %s4587_s22 = sadd.s32 4294967295, %s5755_s21   ;;  %p4591_p0 = scmp.ge.s32.totalorder %s5755_s21, 1  ;;  %s5755_s21 = sphi %s5794_s21, %s17_s21  }
   0x2   : > { %p207_p1 = scmp.lt.s32.totalorder %s5755_s21, 3 }
   0x4   : > { %p208_p2 = pnand %p4591_p0, %p207_p1 }
   0x6   : > { %211 = sbr.rel (%p208_p2) target bundleno = 636 (0x27c), region = 36 }
   0xb   : > { %p237_p3 = scmp.lt.s32.totalorder %s4587_s22, 1  ;;  %p4596_p4 = scmp.ne.s32.totalorder %s4587_s22, 0 }
   0xd   : > { %s238_s23 = scalar_select %p237_p3, %s4587_s22, 1 }
   0xe   : > { %251 = sbr.rel (%p4596_p4) target bundleno = 48 (0x30), region = 40 }
   0xf   : > { %s4945_s24 = sshll.u32 %s238_s23, 8 }
  0x10   : > { %s5805_s27 = scalar_lea.vmem %s7458_s0, %s4945_s24  ;;  %s5810_s30 = scalar_lea.vmem %s7462_s4, %s4945_s24 }
  0x13   : > { %v5757_v0 = vmov 0.0   ;;  %v5758_v1 = vmov 0  }
  0x14   : > { %252 = vst [vmem:[%s7463_s5] sm:$0x1] %v5757_v0  ;;  %253 = vst [vmem:[%s7464_s6] sm:$0x1] %v5757_v0 }
  0x15   : > { %254 = vst [vmem:[#allocation2] sm:$0xf] %v5758_v1  ;;  %255 = vst [vmem:[#allocation2 + $0x4] sm:$0xf] %v5758_v1 }
  0x16   : > { %256 = vst [vmem:[#allocation2 + $0x8] sm:$0x1] %v5758_v1  ;;  %257 = vst [vmem:[#allocation2 + $0xc] sm:$0xf] %v5758_v1 }
  0x17   : > { %258 = vst [vmem:[#allocation2 + $0x10] sm:$0xf] %v5758_v1  ;;  %259 = vst [vmem:[#allocation2 + $0x14] sm:$0x1] %v5758_v1 }
  0x18   : > { %260 = vst [vmem:[#allocation2 + $0x18] sm:$0xf] %v5758_v1  ;;  %261 = vst [vmem:[#allocation2 + $0x1c] sm:$0xf] %v5758_v1 }
  0x19   : > { %262 = vst [vmem:[#allocation2 + $0x20] sm:$0x1] %v5758_v1  ;;  %263 = vst [vmem:[#allocation2 + $0x24] sm:$0xf] %v5758_v1 }
  0x1a   : > { %264 = vst [vmem:[#allocation2 + $0x28] sm:$0xf] %v5758_v1  ;;  %265 = vst [vmem:[#allocation2 + $0x2c] sm:$0x1] %v5758_v1 }
  0x1b   : > { %266 = vst [vmem:[#allocation2 + $0x30] sm:$0xf] %v5758_v1  ;;  %267 = vst [vmem:[#allocation2 + $0x34] sm:$0xf] %v5758_v1 }
  0x1c   : > { %268 = vst [vmem:[#allocation2 + $0x38] sm:$0x1] %v5758_v1  ;;  %269 = vst [vmem:[#allocation2 + $0x3c] sm:$0xf] %v5758_v1 }
  0x1d   : > { %270 = vst [vmem:[#allocation2 + $0x40] sm:$0xf] %v5758_v1  ;;  %271 = vst [vmem:[#allocation2 + $0x44] sm:$0x1] %v5758_v1 }
  0x1e   : > { %272 = vst [vmem:[#allocation2 + $0x48] sm:$0xf] %v5758_v1  ;;  %273 = vst [vmem:[#allocation2 + $0x4c] sm:$0xf] %v5758_v1 }
  0x1f   : > { %274 = vst [vmem:[#allocation2 + $0x50] sm:$0x1] %v5758_v1  ;;  %275 = vst [vmem:[#allocation2 + $0x54] sm:$0xf] %v5758_v1 }
  0x20   : > { %276 = vst [vmem:[#allocation2 + $0x58] sm:$0xf] %v5758_v1  ;;  %277 = vst [vmem:[#allocation2 + $0x5c] sm:$0x1] %v5758_v1 }
  0x21   : > { %278 = vst [vmem:[#allocation2 + $0x60] sm:$0xf] %v5758_v1  ;;  %279 = vst [vmem:[#allocation2 + $0x64] sm:$0xf] %v5758_v1 }
  0x22   : > { %280 = vst [vmem:[#allocation2 + $0x68] sm:$0x1] %v5758_v1  ;;  %281 = vst [vmem:[#allocation2 + $0x6c] sm:$0xf] %v5758_v1 }
  0x23   : > { %282 = vst [vmem:[#allocation2 + $0x70] sm:$0xf] %v5758_v1  ;;  %283 = vst [vmem:[#allocation2 + $0x74] sm:$0x1] %v5758_v1 }
  0x24   : > { %284 = vst [vmem:[#allocation2 + $0x78] sm:$0xf] %v5758_v1  ;;  %285 = vst [vmem:[#allocation2 + $0x7c] sm:$0xf] %v5758_v1 }
  0x25   : > { %286 = vst [vmem:[#allocation2 + $0x80] sm:$0x1] %v5758_v1  ;;  %287 = vst [vmem:[#allocation2 + $0x84] sm:$0xf] %v5758_v1 }
  0x26   : > { %288 = vst [vmem:[#allocation2 + $0x88] sm:$0xf] %v5758_v1  ;;  %289 = vst [vmem:[#allocation2 + $0x8c] sm:$0x1] %v5758_v1 }
  0x27   : > { %290 = vst [vmem:[#allocation2 + $0x90] sm:$0xf] %v5758_v1  ;;  %291 = vst [vmem:[#allocation2 + $0x94] sm:$0xf] %v5758_v1 }
  0x28   : > { %292 = vst [vmem:[#allocation2 + $0x98] sm:$0x1] %v5758_v1  ;;  %293 = vst [vmem:[#allocation2 + $0x9c] sm:$0xf] %v5758_v1 }
  0x29   : > { %294 = vst [vmem:[#allocation2 + $0xa0] sm:$0xf] %v5758_v1  ;;  %295 = vst [vmem:[#allocation2 + $0xa4] sm:$0x1] %v5758_v1 }
  0x2a   : > { %296 = vst [vmem:[#allocation2 + $0xa8] sm:$0xf] %v5758_v1  ;;  %297 = vst [vmem:[#allocation2 + $0xac] sm:$0xf] %v5758_v1 }
  0x2b   : > { %298 = vst [vmem:[#allocation2 + $0xb0] sm:$0x1] %v5758_v1  ;;  %299 = vst [vmem:[#allocation2 + $0xb4] sm:$0xf] %v5758_v1 }
  0x2c   : > { %300 = vst [vmem:[#allocation2 + $0xb8] sm:$0xf] %v5758_v1  ;;  %301 = vst [vmem:[#allocation2 + $0xbc] sm:$0x1] %v5758_v1 }
  0x2d   : > { %302 = vst [vmem:[#allocation2 + $0xc0] sm:$0xf] %v5758_v1  ;;  %303 = vst [vmem:[#allocation2 + $0xc4] sm:$0xf] %v5758_v1 }
  0x2e   : > { %304 = vst [vmem:[#allocation2 + $0xc8] sm:$0x1] %v5758_v1  ;;  %305 = vst [vmem:[#allocation2 + $0xcc] sm:$0xf] %v5758_v1 }
  0x2f   : > { %306 = vst [vmem:[#allocation2 + $0xd0] sm:$0xf] %v5758_v1  ;;  %307 = vst [vmem:[#allocation2 + $0xd4] sm:$0x1] %v5758_v1 }
  0x30 PF: > { %v5525_v2 = vld [vmem:[%s7461_s3 + $0x78] sm:$0xff]   ;;  %v5527_v4 = vld [vmem:[%s7461_s3 + $0x70] sm:$0xff]   ;;  %v5529_v6 = vld [vmem:[%s7461_s3 + $0x68] sm:$0xff]   ;;  %vm1197_vm0 = vsmask.f32 7424  ;;  %vm434_vm1 = vcmask 31744  }
  0x31   : > { %v5526_v3 = vld [vmem:[%s7461_s3 + $0x38] sm:$0xff]   ;;  %4947 = vmatprep.subr.bf16.mxu0 %v5525_v2  ;;  %5499 = vmatprep.subr.bf16.mxu1 %v5525_v2  ;;  %v5528_v5 = vld [vmem:[%s7461_s3 + $0x30] sm:$0xff]   ;;  %v5530_v7 = vld [vmem:[%s7461_s3 + $0x28] sm:$0xff]   ;;  %vm548_vm2 = vsmask.f32 256  ;;  %vm872_vm3 = vcmask 1043456  }
  0x32   : > { %4948 = vmatpush3.bf16.msra.mxu0 %v5526_v3  ;;  %5507 = vmatpush3.bf16.msra.mxu1 %v5526_v3  ;;  %v5531_v8 = vld [vmem:[%s7461_s3 + $0x60] sm:$0xff]   ;;  %v5533_v10 = vld [vmem:[%s7461_s3 + $0x58] sm:$0xff]   ;;  %v5535_v12 = vld [vmem:[%s7461_s3 + $0x50] sm:$0xff]   ;;  %vm549_vm4 = vsmask.f32 4368  ;;  %vm879_vm6 = vcmask 1040384  }
  0x33   : > { %4949 = vmatprep.subr.bf16.mxu0 %v5527_v4  ;;  %5500 = vmatprep.subr.bf16.mxu1 %v5527_v4  ;;  %v5532_v9 = vld [vmem:[%s7461_s3 + $0x20] sm:$0xff]   ;;  %v5534_v11 = vld [vmem:[%s7461_s3 + $0x18] sm:$0xff]   ;;  %v5856_v16 = vld [vmem:[#allocation2 + $0x8] ss:$0 sps:$4 sm:$0x11]   ;;  %vm1454_vm10 = vcmask 1046528  }
  0x34   : > { %v989_v13 = vld [vmem:[#allocation2] sm:$0xf]  ;;  %v5851_v14 = vld [vmem:[#allocation2 + $0x4] sm:$0xf]  ;;  %v330_v17 = vld [vmem:[%s5805_s27 + $0xb0] sm:$0xff]  ;;  %v1206_v24 = vshll.u32 %v5856_v16, 16 }
  0x35   : > { %v5854_v15 = vcombine.low %v989_v13, %v5851_v14  ;;  %v331_v18 = vld [vmem:[%s5805_s27 + $0xb8] sm:$0xff]  ;;  %v5863_v19 = vld [vmem:[%s7459_s1] ss:$0 sm:$0xff]  ;;  %v5536_v21 = vld [vmem:[%s7461_s3 + $0x10] sm:$0xff]   ;;  %vm873_vm5 = vsmask.f32 7938 }
  0x36   : > { %4950 = vmatpush3.bf16.msra.mxu0 %v5528_v5  ;;  %5508 = vmatpush3.bf16.msra.mxu1 %v5528_v5  ;;  %v5868_v20 = vld [vmem:[%s7460_s2] ss:$0 sm:$0xff]  ;;  %v369_v25 = vmul.f32 %v5863_v19, %v330_v17  ;;  %v5537_v26 = vld [vmem:[%s7461_s3 + $0x48] sm:$0xff]   ;;  %v370_v27 = vmul.f32 %v5863_v19, %v331_v18  ;;  %v1208_v29 = vrot.slane %v1206_v24, 1  ;;  %v5903_v47 = vld [vmem:[%s7461_s3 + $0xb8] sm:$0xff]   ;;  %v1456_v3 = vrot.slane %v5856_v16, 1 }
  0x37   : > { %4951 = vmatprep.subr.bf16.mxu0 %v5529_v6  ;;  %5501 = vmatprep.subr.bf16.mxu1 %v5529_v6  ;;  %v1199_v22 = vshrl.u32 %v5854_v15, 16  ;;  %v1201_v23 = vshll.u32 %v5854_v15, 16  ;;  %v5538_v32 = vld [vmem:[%s7461_s3 + $0x8] sm:$0xff]   ;;  %v5539_v34 = vld [vmem:[%s7461_s3 + $0x40] sm:$0xff]   ;;  %v5546_v49 = vld [vmem:[%s7461_s3 + $0x178] sm:$0xff]  }
  0x38   : > { %v408_v30 = vadd.f32 %v5868_v20, %v369_v25  ;;  %v409_v31 = vadd.f32 %v5868_v20, %v370_v27  ;;  %v308_v37 = vld [vmem:[%s5805_s27] sm:$0xff]  ;;  %v309_v38 = vld [vmem:[%s5805_s27 + $0x8] sm:$0xff]  ;;  %vm5914_vm7 = vmor %vm548_vm2, %vm549_vm4 }
  0x39   : > { %v1203_v28 = vrot.slane %v1201_v23, 1  ;;  %v347_v40 = vmul.f32 %v5863_v19, %v308_v37  ;;  %v348_v41 = vmul.f32 %v5863_v19, %v309_v38  ;;  %v332_v42 = vld [vmem:[%s5805_s27 + $0xc0] sm:$0xff]  ;;  %v333_v43 = vld [vmem:[%s5805_s27 + $0xc8] sm:$0xff]  ;;  %v954_v58 = vld [vmem:[#allocation2 + $0x90] sm:$0xf] }
  0x3a   : > { %4952 = vmatpush3.bf16.msra.mxu0 %v5530_v7  ;;  %5509 = vmatpush3.bf16.msra.mxu1 %v5530_v7  ;;  %v429_v35 = vpack.c.bf16 %v409_v31, %v408_v30  ;;  %v5540_v44 = vld [vmem:[%s7461_s3] sm:$0xff]   ;;  %v371_v48 = vmul.f32 %v5863_v19, %v332_v42  ;;  %v372_v52 = vmul.f32 %v5863_v19, %v333_v43  ;;  %vm5922_vm8 = vmand %vm872_vm3, %vm873_vm5  ;;  %v310_v1 = vld [vmem:[%s5805_s27 + $0x10] sm:$0xff] }
  0x3b   : > { %4953 = vmatprep.subr.bf16.mxu0 %v5531_v8  ;;  %5502 = vmatprep.subr.bf16.mxu1 %v5531_v8  ;;  %v1204_v33 = vor.u32 %v1203_v28, %v1199_v22  ;;  %v386_v50 = vadd.f32 %v5868_v20, %v347_v40  ;;  %v387_v51 = vadd.f32 %v5868_v20, %v348_v41  ;;  %v311_v2 = vld [vmem:[%s5805_s27 + $0x18] sm:$0xff]  ;;  %vm5931_vm9 = vmand %vm879_vm6, %vm548_vm2  ;;  %v5554_v8 = vld [vmem:[%s7461_s3 + $0x170] sm:$0xff]  }
  0x3c   : > { %v459_v39 = vsel %vm434_vm1, %v429_v35, 0  ;;  %v410_v60 = vadd.f32 %v5868_v20, %v371_v48  ;;  %v411_v61 = vadd.f32 %v5868_v20, %v372_v52  ;;  %v958_v5 = vld [vmem:[#allocation2 + $0x98] sm:$0x1]  ;;  %v334_v24 = vld [vmem:[%s5805_s27 + $0xd0] sm:$0xff] }
  0x3d   : > { %v1209_v36 = vsel %vm1197_vm0, %v1204_v33, %v1208_v29  ;;  %v4621_v45 = vcombine.low %v459_v39, %v459_v39  ;;  %v4622_v46 = vcombine.high %v459_v39, %v459_v39  ;;  %v418_v59 = vpack.c.bf16 %v387_v51, %v386_v50  ;;  %v335_v25 = vld [vmem:[%s5805_s27 + $0xd8] sm:$0xff]  ;;  %v875_v39 = vld [vmem:[#allocation2 + $0xc] sm:$0xf]  ;;  %v881_v40 = vld [vmem:[#allocation2 + $0x14] sm:$0x1] }
  0x3e   : > { %4954 = vmatpush3.bf16.msra.mxu0 %v5532_v9  ;;  %5510 = vmatpush3.bf16.msra.mxu1 %v5532_v9  ;;  %v430_v7 = vpack.c.bf16 %v411_v61, %v410_v60  ;;  %v349_v9 = vmul.f32 %v5863_v19, %v310_v1  ;;  %v373_v41 = vmul.f32 %v5863_v19, %v334_v24  ;;  %v312_v1 = vld [vmem:[%s5805_s27 + $0x20] sm:$0xff]  ;;  %v313_v24 = vld [vmem:[%s5805_s27 + $0x28] sm:$0xff]  ;;  %v5691_v0 = vld [vmem:[%s7461_s3 + $0x218] sm:$0xff]  }
  0x3f   : > { %4955 = vmatprep.subr.bf16.mxu0 %v5533_v10  ;;  %5503 = vmatprep.subr.bf16.mxu1 %v5533_v10  ;;  %v739_v53 = vshrl.u32 %v4621_v45, 16  ;;  %v742_v54 = vshll.u32 %v4621_v45, 16  ;;  %v747_v55 = vshrl.u32 %v4622_v46, 16  ;;  %v750_v56 = vshll.u32 %v4622_v46, 16  ;;  %v961_v46 = vld [vmem:[#allocation2 + $0x9c] sm:$0xf] }
  0x40   : > { %1743 = vmatprep.mubr.bf16.mxu0 %v1209_v36  ;;  %v437_v6 = vsel %vm434_vm1, %v418_v59, 0  ;;  %v350_v10 = vmul.f32 %v5863_v19, %v311_v2  ;;  %v461_v22 = vsel %vm434_vm1, %v430_v7, 0  ;;  %v388_v23 = vadd.f32 %v5868_v20, %v349_v9  ;;  %v5566_v59 = vld [vmem:[%s7461_s3 + $0x168] sm:$0xff]  }
  0x41   : > { %v741_v62 = vrot.slane %v739_v53, 7  ;;  %v749_v63 = vrot.slane %v747_v55, 7  ;;  %v4599_v18 = vcombine.low %v437_v6, %v437_v6  ;;  %v4623_v29 = vcombine.low %v461_v22, %v461_v22 }
  0x42   : > { %4956 = vmatpush3.bf16.msra.mxu0 %v5534_v11  ;;  %5511 = vmatpush3.bf16.msra.mxu1 %v5534_v11  ;;  %v4624_v33 = vcombine.high %v461_v22, %v461_v22  ;;  %v389_v36 = vadd.f32 %v5868_v20, %v350_v10  ;;  %v374_v42 = vmul.f32 %v5863_v19, %v335_v25  ;;  %v336_v25 = vld [vmem:[%s5805_s27 + $0xe0] sm:$0xff] }
  0x43   : > { %4957 = vmatprep.subr.bf16.mxu0 %v5535_v12  ;;  %5504 = vmatprep.subr.bf16.mxu1 %v5535_v12  ;;  %v744_v11 = vor.u32 %v742_v54, %v741_v62  ;;  %v745_v12 = vrot.slane %v741_v62, 4  ;;  %v752_v13 = vor.u32 %v750_v56, %v749_v63  ;;  %v754_v17 = vrot.slane %v749_v63, 4  ;;  %v965_v56 = vld [vmem:[#allocation2 + $0xa4] sm:$0x1] }
  0x44   : > { %v555_v30 = vshll.u32 %v4599_v18, 16  ;;  %v759_v35 = vshll.u32 %v4623_v29, 16  ;;  %v767_v45 = vshll.u32 %v4624_v33, 16  ;;  %v419_v48 = vpack.c.bf16 %v389_v36, %v388_v23 }
  0x45   : > { %v955_v27 = vsel %vm5922_vm8, %v744_v11, %v954_v58  ;;  %v959_v28 = vsel %vm5931_vm9, %v754_v17, %v958_v5  ;;  %v412_v9 = vadd.f32 %v5868_v20, %v373_v41  ;;  %v413_v23 = vadd.f32 %v5868_v20, %v374_v42 }
  0x46   : > { %4958 = vmatpush3.bf16.msra.mxu0 %v5536_v21  ;;  %5512 = vmatpush3.bf16.msra.mxu1 %v5536_v21  ;;  %v4600_v21 = vcombine.high %v437_v6, %v437_v6  ;;  %956 = vst [vmem:[#allocation2 + $0x90] sm:$0xf] %v955_v27  ;;  %960 = vst [vmem:[#allocation2 + $0x98] sm:$0x1] %v959_v28  ;;  %v439_v58 = vsel %vm434_vm1, %v419_v48, 0 }
  0x47   : > { %4959 = vmatprep.subr.bf16.mxu0 %v5537_v26  ;;  %5505 = vmatprep.subr.bf16.mxu1 %v5537_v26  ;;  %v753_v26 = vsel %vm5914_vm7, %v745_v12, %v752_v13  ;;  %v4601_v63 = vcombine.low %v439_v58, %v439_v58 }
  0x48   : > { %957 = vst [vmem:[#allocation2 + $0x94] sm:$0xf] %v753_v26  ;;  %v560_v31 = vshrl.u32 %v4600_v21, 16 }
  0x49   : > { %v569_v13 = vshrl.u32 %v4601_v63, 16  ;;  %v572_v17 = vshll.u32 %v4601_v63, 16  ;;  %v5574_v63 = vld [vmem:[%s7461_s3 + $0x160] sm:$0xff]  }
  0x4a   : > { %4960 = vmatpush3.bf16.msra.mxu0 %v5538_v32  ;;  %5513 = vmatpush3.bf16.msra.mxu1 %v5538_v32  ;;  %v563_v32 = vshll.u32 %v4600_v21, 16  ;;  %v562_v38 = vrot.slane %v560_v31, 7 }
  0x4b   : > { %4961 = vmatprep.subr.bf16.mxu0 %v5539_v34  ;;  %5506 = vmatprep.subr.bf16.mxu1 %v5539_v34  ;;  %v756_v34 = vshrl.u32 %v4623_v29, 16 }
  0x4c   : > { %v565_v51 = vor.u32 %v563_v32, %v562_v38  ;;  %v567_v52 = vrot.slane %v562_v38, 4  ;;  %v888_v32 = vld [vmem:[#allocation2 + $0x20] sm:$0x1]  ;;  %v352_v38 = vmul.f32 %v5863_v19, %v313_v24 }
  0x4d   : > { %v758_v43 = vrot.slane %v756_v34, 7  ;;  %v1013_v2 = vld [vmem:[#allocation2 + $0x90] sm:$0xf]  ;;  %v5544_v11 = vld [vmem:[#allocation2 + $0x98] ss:$0 sps:$4 sm:$0x11]   ;;  %v351_v34 = vmul.f32 %v5863_v19, %v312_v1 }
  0x4e   : > { %4962 = vmatpush3.bf16.msra.mxu0 %v5540_v44  ;;  %5514 = vmatpush3.bf16.msra.mxu1 %v5540_v44  ;;  %v764_v44 = vshrl.u32 %v4624_v33, 16  ;;  %v882_v62 = vsel %vm5931_vm9, %v567_v52, %v881_v40  ;;  %v1350_v28 = vshll.u32 %v5544_v11, 16  ;;  %v431_v33 = vpack.c.bf16 %v413_v23, %v412_v9 }
  0x4f   : > { %5355 = vmatprep.subr.bf16.mxu1 %v5903_v47  ;;  %5403 = vmatprep.subr.bf16.mxu0 %v5546_v49  ;;  %v761_v53 = vor.u32 %v759_v35, %v758_v43  ;;  %v762_v54 = vrot.slane %v758_v43, 4  ;;  %v1014_v5 = vld [vmem:[#allocation2 + $0x94] sm:$0xf]  ;;  %883 = vst [vmem:[#allocation2 + $0x14] sm:$0x1] %v882_v62  ;;  %v337_v35 = vld [vmem:[%s5805_s27 + $0xe8] sm:$0xff]  ;;  %v390_v48 = vadd.f32 %v5868_v20, %v351_v34 }
  0x50   : > { %v766_v55 = vrot.slane %v764_v44, 7  ;;  %v4643_v10 = vcombine.low %v1013_v2, %v1014_v5 }
  0x51   : > { %1744 = vmatmul.mubr.bf16.vlgmr.msra.gmra.mxu0 %v5854_v15  ;;  %v552_v15 = vshrl.u32 %v4599_v18, 16  ;;  %v962_v7 = vsel %vm5922_vm8, %v761_v53, %v961_v46 }
  0x52   : > { %5404 = vmatpush3.bf16.msra.mxu0 %v5546_v49  ;;  %v769_v6 = vor.u32 %v767_v45, %v766_v55  ;;  %v771_v12 = vrot.slane %v766_v55, 4  ;;  %963 = vst [vmem:[#allocation2 + $0x9c] sm:$0xf] %v962_v7  ;;  %v1343_v26 = vshrl.u32 %v4643_v10, 16  ;;  %v1345_v27 = vshll.u32 %v4643_v10, 16 }
  0x53   : > { %5405 = vmatprep.subr.bf16.mxu0 %v5554_v8  ;;  %v554_v37 = vrot.slane %v552_v15, 7  ;;  %v884_v15 = vld [vmem:[#allocation2 + $0x18] sm:$0xf] }
  0x54   : > { %v770_v18 = vsel %vm5914_vm7, %v762_v54, %v769_v6  ;;  %v966_v29 = vsel %vm5931_vm9, %v771_v12, %v965_v56  ;;  %v1347_v36 = vrot.slane %v1345_v27, 1  ;;  %v314_v27 = vld [vmem:[%s5805_s27 + $0x30] sm:$0xff] }
  0x55   : > { %v557_v49 = vor.u32 %v555_v30, %v554_v37  ;;  %v558_v50 = vrot.slane %v554_v37, 4  ;;  %964 = vst [vmem:[#allocation2 + $0xa0] sm:$0xf] %v770_v18  ;;  %967 = vst [vmem:[#allocation2 + $0xa4] sm:$0x1] %v966_v29  ;;  %v571_v30 = vrot.slane %v569_v13, 7 }
  0x56   : > { %5406 = vmatpush3.bf16.msra.mxu0 %v5554_v8  ;;  %v4602_v8 = vcombine.high %v439_v58, %v439_v58  ;;  %v1352_v37 = vrot.slane %v1350_v28, 1  ;;  %v1348_v44 = vor.u32 %v1347_v36, %v1343_v26  ;;  %v5989_v52 = vld [vmem:[#allocation2 + $0x14] ss:$0 sps:$4 sm:$0x11]  }
  0x57   : > { %v566_v60 = vsel %vm5914_vm7, %v558_v50, %v565_v51  ;;  %v876_v61 = vsel %vm5922_vm8, %v557_v49, %v875_v39  ;;  %5407 = vmatprep.subr.bf16.mxu0 %v5566_v59  ;;  %v375_v39 = vmul.f32 %v5863_v19, %v336_v25  ;;  %v574_v40 = vor.u32 %v572_v17, %v571_v30  ;;  %v5552_v25 = vld [vmem:[%s7461_s3 + $0xa8] sm:$0xff]  }
  0x58   : > { %877 = vst [vmem:[#allocation2 + $0xc] sm:$0xf] %v876_v61  ;;  %878 = vst [vmem:[#allocation2 + $0x10] sm:$0xf] %v566_v60  ;;  %v577_v21 = vshrl.u32 %v4602_v8, 16  ;;  %v580_v22 = vshll.u32 %v4602_v8, 16  ;;  %v391_v49 = vadd.f32 %v5868_v20, %v352_v38  ;;  %v376_v50 = vmul.f32 %v5863_v19, %v337_v35 }
  0x59   : > { %v575_v41 = vrot.slane %v571_v30, 4  ;;  %v1015_v53 = vld [vmem:[#allocation2 + $0x9c] sm:$0xf]  ;;  %v885_v55 = vsel %vm5922_vm8, %v574_v40, %v884_v15  ;;  %v1353_v58 = vsel %vm1197_vm0, %v1348_v44, %v1352_v37  ;;  %v463_v60 = vsel %vm434_vm1, %v431_v33, 0  ;;  %v968_v30 = vld [vmem:[#allocation2 + $0xa8] sm:$0xf] }
  0x5a   : > { %5408 = vmatpush3.bf16.msra.mxu0 %v5566_v59  ;;  %v579_v31 = vrot.slane %v577_v21, 7  ;;  %v5547_v59 = vld [vmem:[%s7461_s3 + $0xb0] sm:$0xff]   ;;  %886 = vst [vmem:[#allocation2 + $0x18] sm:$0xf] %v885_v55  ;;  %v420_v61 = vpack.c.bf16 %v391_v49, %v390_v48  ;;  %v6003_v62 = vadd.f32 %v5868_v20, %v375_v39  ;;  %1839 = vmatprep.mubr.bf16.mxu1 %v1353_v58  ;;  %v1218_v5 = vshll.u32 %v5989_v52, 16  ;;  %v5553_v33 = vld [vmem:[%s7461_s3 + $0xa0] sm:$0xff]  }
  0x5b   : > { %v4625_v7 = vcombine.low %v463_v60, %v463_v60  ;;  %1840 = vmatmul.mubr.bf16.vlgmr.msra.gmra.mxu1 %v4643_v10  ;;  %v4626_v11 = vcombine.high %v463_v60, %v463_v60  ;;  %v6013_v13 = vadd.f32 %v5868_v20, %v376_v50  ;;  %5409 = vmatprep.subr.bf16.mxu0 %v5574_v63  ;;  %v972_v49 = vld [vmem:[#allocation2 + $0xb0] sm:$0x1] }
  0x5c   : > { %v582_v42 = vor.u32 %v580_v22, %v579_v31  ;;  %v584_v43 = vrot.slane %v579_v31, 4  ;;  %v1016_v6 = vld [vmem:[#allocation2 + $0xa0] sm:$0xf]  ;;  %v5551_v9 = vld [vmem:[#allocation2 + $0xa4] ss:$0 sps:$4 sm:$0x11]   ;;  %5356 = vmatpush3.bf16.msra.mxu1 %v5903_v47 }
  0x5d   : > { %v4644_v8 = vcombine.low %v1015_v53, %v1016_v6  ;;  %v441_v12 = vsel %vm434_vm1, %v420_v61, 0  ;;  %v1220_v18 = vrot.slane %v1218_v5, 1  ;;  %v773_v21 = vshrl.u32 %v4625_v7, 16  ;;  %5357 = vmatprep.subr.bf16.mxu1 %v5547_v59  ;;  %v891_v61 = vld [vmem:[#allocation2 + $0x24] sm:$0xf]  ;;  %v315_v5 = vld [vmem:[%s5805_s27 + $0x38] sm:$0xff] }
  0x5e   : > { %v583_v54 = vsel %vm5914_vm7, %v575_v41, %v582_v42  ;;  %v889_v56 = vsel %vm5931_vm9, %v584_v43, %v888_v32  ;;  %v776_v22 = vshll.u32 %v4625_v7, 16  ;;  %5410 = vmatpush3.bf16.msra.mxu0 %v5574_v63  ;;  %v1362_v24 = vshll.u32 %v5551_v9, 16  ;;  %v5559_v63 = vld [vmem:[%s7461_s3 + $0x98] sm:$0xff]  }
  0x5f   : > { %v991_v45 = vld [vmem:[#allocation2 + $0xc] sm:$0xf]  ;;  %v5981_v46 = vld [vmem:[#allocation2 + $0x10] sm:$0xf]  ;;  %887 = vst [vmem:[#allocation2 + $0x1c] sm:$0xf] %v583_v54  ;;  %v4603_v47 = vcombine.low %v441_v12, %v441_v12  ;;  %v4604_v35 = vcombine.high %v441_v12, %v441_v12  ;;  %v432_v40 = vpack.c.bf16 %v6013_v13, %v6003_v62  ;;  %v353_v41 = vmul.f32 %v5863_v19, %v314_v27 }
  0x60   : > { %v5987_v51 = vcombine.low %v991_v45, %v5981_v46  ;;  %890 = vst [vmem:[#allocation2 + $0x20] sm:$0x1] %v889_v56  ;;  %v1355_v23 = vshrl.u32 %v4644_v8, 16  ;;  %v1357_v10 = vshll.u32 %v4644_v8, 16  ;;  %v781_v26 = vshrl.u32 %v4626_v11, 16  ;;  %5358 = vmatpush3.bf16.msra.mxu1 %v5547_v59 }
  0x61   : > { %v775_v29 = vrot.slane %v773_v21, 7  ;;  %v784_v15 = vshll.u32 %v4626_v11, 16  ;;  %v1364_v32 = vrot.slane %v1362_v24, 1  ;;  %v993_v37 = vld [vmem:[#allocation2 + $0x18] sm:$0xf]  ;;  %5359 = vmatprep.subr.bf16.mxu1 %v5552_v25  ;;  %v586_v54 = vshrl.u32 %v4603_v47, 16 }
  0x62   : > { %v1211_v1 = vshrl.u32 %v5987_v51, 16  ;;  %v1213_v2 = vshll.u32 %v5987_v51, 16  ;;  %v1359_v31 = vrot.slane %v1357_v10, 1  ;;  %v783_v34 = vrot.slane %v781_v26, 7  ;;  %v895_v11 = vld [vmem:[#allocation2 + $0x2c] sm:$0x1] }
  0x63   : > { %v778_v39 = vor.u32 %v776_v22, %v775_v29  ;;  %v779_v45 = vrot.slane %v775_v29, 4  ;;  %v589_v55 = vshll.u32 %v4603_v47, 16  ;;  %v597_v9 = vshll.u32 %v4604_v35, 16  ;;  %v1037_v22 = vld [vmem:[#allocation2] sm:$0xe]  ;;  %v5560_v26 = vld [vmem:[%s7461_s3 + $0x90] sm:$0xff]  }
  0x64   : > { %v1215_v17 = vrot.slane %v1213_v2, 1  ;;  %v1360_v42 = vor.u32 %v1359_v31, %v1355_v23  ;;  %v786_v48 = vor.u32 %v784_v15, %v783_v34  ;;  %v788_v50 = vrot.slane %v783_v34, 4  ;;  %5360 = vmatpush3.bf16.msra.mxu1 %v5552_v25  ;;  %v1038_v25 = vld [vmem:[#allocation2 + $0xc] sm:$0xe]  ;;  %v316_v34 = vld [vmem:[%s5805_s27 + $0x40] sm:$0xff] }
  0x65   : > { %v969_v53 = vsel %vm5922_vm8, %v778_v39, %v968_v30  ;;  %v594_v2 = vshrl.u32 %v4604_v35, 16  ;;  %5361 = vmatprep.subr.bf16.mxu1 %v5553_v33  ;;  %v465_v12 = vsel %vm434_vm1, %v432_v40, 0  ;;  %v354_v24 = vmul.f32 %v5863_v19, %v315_v5  ;;  %v5587_v30 = vld [vmem:[%s7461_s3 + $0x158] sm:$0xff]   ;;  %v975_v40 = vld [vmem:[#allocation2 + $0xb4] sm:$0xf] }
  0x66   : > { %v1216_v28 = vor.u32 %v1215_v17, %v1211_v1  ;;  %v6024_v38 = vld [vmem:[#allocation2 + $0x1c] sm:$0xf]  ;;  %v1365_v56 = vsel %vm1197_vm0, %v1360_v42, %v1364_v32  ;;  %970 = vst [vmem:[#allocation2 + $0xa8] sm:$0xf] %v969_v53  ;;  %v973_v62 = vsel %vm5931_vm9, %v788_v50, %v972_v49  ;;  %v588_v1 = vrot.slane %v586_v54, 7  ;;  %5411 = vmatprep.subr.bf16.mxu0 %v5587_v30  ;;  %v317_v53 = vld [vmem:[%s5805_s27 + $0x48] sm:$0xff] }
  0x67   : > { %v6030_v43 = vcombine.low %v993_v37, %v6024_v38  ;;  %v6032_v44 = vld [vmem:[#allocation2 + $0x20] ss:$0 sps:$4 sm:$0x11]   ;;  %1847 = vmatprep.mubr.bf16.mxu1 %v1365_v56  ;;  %974 = vst [vmem:[#allocation2 + $0xb0] sm:$0x1] %v973_v62  ;;  %v4627_v21 = vcombine.low %v465_v12, %v465_v12  ;;  %v4628_v10 = vcombine.high %v465_v12, %v465_v12  ;;  %v1459_v50 = vrot.slane %v5989_v52, 1 }
  0x68   : > { %v1221_v36 = vsel %vm1197_vm0, %v1216_v28, %v1220_v18  ;;  %v1230_v60 = vshll.u32 %v6032_v44, 16  ;;  %1848 = vmatmul.mubr.bf16.gmra.mxu1 %v4644_v8  ;;  %v591_v13 = vor.u32 %v589_v55, %v588_v1  ;;  %v592_v17 = vrot.slane %v588_v1, 4  ;;  %5412 = vmatpush3.bf16.msra.mxu0 %v5587_v30  ;;  %v1039_v52 = vld [vmem:[#allocation2 + $0x18] sm:$0xe] }
  0x69   : > { %1751 = vmatprep.mubr.bf16.mxu0 %v1221_v36  ;;  %v1223_v58 = vshrl.u32 %v6030_v43, 16  ;;  %v1225_v59 = vshll.u32 %v6030_v43, 16  ;;  %v596_v18 = vrot.slane %v594_v2, 7  ;;  %v392_v8 = vadd.f32 %v5868_v20, %v353_v41  ;;  %5362 = vmatpush3.bf16.msra.mxu1 %v5553_v33 }
  0x6a   : > { %1752 = vmatmul.mubr.bf16.gmra.mxu0 %v5987_v51  ;;  %v787_v51 = vsel %vm5914_vm7, %v779_v45, %v786_v48  ;;  %v1232_v7 = vrot.slane %v1230_v60, 1  ;;  %v892_v29 = vsel %vm5922_vm8, %v591_v13, %v891_v61  ;;  %v790_v15 = vshrl.u32 %v4627_v21, 16  ;;  %5363 = vmatprep.subr.bf16.mxu1 %v5559_v63  ;;  %v979_v45 = vld [vmem:[#allocation2 + $0xbc] sm:$0x1] }
  0x6b   : > { %v1227_v6 = vrot.slane %v1225_v59, 1  ;;  %971 = vst [vmem:[#allocation2 + $0xac] sm:$0xf] %v787_v51  ;;  %v599_v27 = vor.u32 %v597_v9, %v596_v18  ;;  %v601_v28 = vrot.slane %v596_v18, 4  ;;  %893 = vst [vmem:[#allocation2 + $0x24] sm:$0xf] %v892_v29  ;;  %v393_v41 = vadd.f32 %v5868_v20, %v354_v24 }
  0x6c   : > { %v793_v31 = vshll.u32 %v4627_v21, 16  ;;  %v798_v32 = vshrl.u32 %v4628_v10, 16  ;;  %v801_v33 = vshll.u32 %v4628_v10, 16  ;;  %v792_v39 = vrot.slane %v790_v15, 7  ;;  %v5567_v10 = vld [vmem:[%s7461_s3 + $0x80] sm:$0xff]  }
  0x6d   : > { %v1228_v23 = vor.u32 %v1227_v6, %v1223_v58  ;;  %v1017_v35 = vld [vmem:[#allocation2 + $0xa8] sm:$0xf]  ;;  %v600_v36 = vsel %vm5914_vm7, %v592_v17, %v599_v27  ;;  %v896_v37 = vsel %vm5931_vm9, %v601_v28, %v895_v11  ;;  %v4663_v48 = vcombine.low %v1037_v22, %v5851_v14  ;;  %5364 = vmatpush3.bf16.msra.mxu1 %v5559_v63  ;;  %v5594_v11 = vld [vmem:[%s7461_s3 + $0x150] sm:$0xff]  }
  0x6e   : > { %894 = vst [vmem:[#allocation2 + $0x28] sm:$0xf] %v600_v36  ;;  %897 = vst [vmem:[#allocation2 + $0x2c] sm:$0x1] %v896_v37  ;;  %v800_v42 = vrot.slane %v798_v32, 7  ;;  %v4664_v49 = vcombine.low %v1038_v25, %v5981_v46  ;;  %v795_v55 = vor.u32 %v793_v31, %v792_v39  ;;  %v796_v56 = vrot.slane %v792_v39, 4  ;;  %5365 = vmatprep.subr.bf16.mxu1 %v5560_v26 }
  0x6f   : > { %v1233_v47 = vsel %vm1197_vm0, %v1228_v23, %v1232_v7  ;;  %v421_v58 = vpack.c.bf16 %v393_v41, %v392_v8  ;;  %v355_v59 = vmul.f32 %v5863_v19, %v316_v34  ;;  %v5558_v60 = vld [vmem:[#allocation2 + $0xb0] ss:$0 sps:$4 sm:$0x11]   ;;  %v5565_v14 = vld [vmem:[%s7461_s3 + $0x88] sm:$0xff]   ;;  %v1455_v46 = vrot.slane %v4663_v48, 1  ;;  %5413 = vmatprep.subr.bf16.mxu0 %v5594_v11 }
  0x70   : > { %1759 = vmatprep.mubr.bf16.mxu0 %v1233_v47  ;;  %v803_v61 = vor.u32 %v801_v33, %v800_v42  ;;  %v805_v51 = vrot.slane %v800_v42, 4  ;;  %v976_v62 = vsel %vm5922_vm8, %v795_v55, %v975_v40  ;;  %v1458_v1 = vrot.slane %v4664_v49, 1  ;;  %5414 = vmatpush3.bf16.msra.mxu0 %v5594_v11  ;;  %v898_v39 = vld [vmem:[#allocation2 + $0x30] sm:$0xf]  ;;  %v5572_v40 = vld [vmem:[%s7461_s3 + $0x138] sm:$0xff]  }
  0x71   : > { %v443_v63 = vsel %vm434_vm1, %v421_v58, 0  ;;  %v356_v2 = vmul.f32 %v5863_v19, %v317_v53  ;;  %v1374_v7 = vshll.u32 %v5558_v60, 16  ;;  %977 = vst [vmem:[#allocation2 + $0xb4] sm:$0xf] %v976_v62  ;;  %5366 = vmatpush3.bf16.msra.mxu1 %v5560_v26  ;;  %v6090_v21 = vsel %vm1454_vm10, %v1455_v46, %v1456_v3 }
  0x72   : > { %1760 = vmatmul.mubr.bf16.gmra.mxu0 %v6030_v43  ;;  %v1018_v54 = vld [vmem:[#allocation2 + $0xac] sm:$0xf]  ;;  %v804_v9 = vsel %vm5914_vm7, %v796_v56, %v803_v61  ;;  %v995_v12 = vld [vmem:[#allocation2 + $0x24] sm:$0xf]  ;;  %v980_v13 = vsel %vm5931_vm9, %v805_v51, %v979_v45  ;;  %v4605_v17 = vcombine.low %v443_v63, %v443_v63  ;;  %v4606_v18 = vcombine.high %v443_v63, %v443_v63 }
  0x73   : > { %v4645_v43 = vcombine.low %v1017_v35, %v1018_v54  ;;  %978 = vst [vmem:[#allocation2 + $0xb8] sm:$0xf] %v804_v9  ;;  %v1376_v23 = vrot.slane %v1374_v7, 1  ;;  %981 = vst [vmem:[#allocation2 + $0xbc] sm:$0x1] %v980_v13  ;;  %5367 = vmatprep.subr.bf16.mxu1 %v5565_v14  ;;  %v6096_v24 = vsel %vm1454_vm10, %v1458_v1, %v1459_v50  ;;  %v1462_v34 = vrot.slane %v6032_v44, 1 }
  0x74   : > { %v394_v8 = vadd.f32 %v5868_v20, %v355_v59  ;;  %v603_v16 = vshrl.u32 %v4605_v17, 16  ;;  %v606_v26 = vshll.u32 %v4605_v17, 16  ;;  %v395_v3 = vadd.f32 %v5868_v20, %v356_v2  ;;  %v902_v54 = vld [vmem:[#allocation2 + $0x38] sm:$0x1]  ;;  %v1040_v62 = vld [vmem:[#allocation2 + $0x24] sm:$0xe] }
  0x75   : > { %v1367_v5 = vshrl.u32 %v4645_v43, 16  ;;  %v1369_v6 = vshll.u32 %v4645_v43, 16  ;;  %v6099_v25 = vld [vmem:[#allocation2 + $0x28] sm:$0xf]  ;;  %v4665_v27 = vcombine.low %v1039_v52, %v6024_v38  ;;  %v611_v30 = vshrl.u32 %v4606_v18, 16  ;;  %5368 = vmatpush3.bf16.msra.mxu1 %v5565_v14  ;;  %v318_v9 = vld [vmem:[%s5805_s27 + $0x50] sm:$0xff] }
  0x76   : > { %v4634_v29 = vcombine.low %v995_v12, %v6099_v25  ;;  %v6104_v15 = vld [vmem:[#allocation2 + $0x2c] ss:$0 sps:$4 sm:$0x11]   ;;  %v614_v47 = vshll.u32 %v4606_v18, 16  ;;  %v605_v31 = vrot.slane %v603_v16, 7  ;;  %v422_v32 = vpack.c.bf16 %v395_v3, %v394_v8  ;;  %5369 = vmatprep.subr.bf16.mxu1 %v5567_v10  ;;  %v319_v8 = vld [vmem:[%s5805_s27 + $0x58] sm:$0xff] }
  0x77   : > { %v1371_v22 = vrot.slane %v1369_v6, 1  ;;  %v1461_v33 = vrot.slane %v4665_v27, 1  ;;  %v1242_v38 = vshll.u32 %v6104_v15, 16  ;;  %v613_v48 = vrot.slane %v611_v30, 7  ;;  %v905_v6 = vld [vmem:[#allocation2 + $0x3c] sm:$0xf] }
  0x78   : > { %v1235_v36 = vshrl.u32 %v4634_v29, 16  ;;  %v1237_v37 = vshll.u32 %v4634_v29, 16  ;;  %v1019_v41 = vld [vmem:[#allocation2 + $0xb4] sm:$0xf]  ;;  %v608_v42 = vor.u32 %v606_v26, %v605_v31  ;;  %v609_v45 = vrot.slane %v605_v31, 4  ;;  %v321_v30 = vld [vmem:[%s5805_s27 + $0x68] sm:$0xff] }
  0x79   : > { %v1372_v28 = vor.u32 %v1371_v22, %v1367_v5  ;;  %v445_v49 = vsel %vm434_vm1, %v422_v32, 0  ;;  %v1244_v50 = vrot.slane %v1242_v38, 1  ;;  %5370 = vmatpush3.bf16.msra.mxu1 %v5567_v10  ;;  %v616_v60 = vor.u32 %v614_v47, %v613_v48  ;;  %v909_v7 = vld [vmem:[#allocation2 + $0x44] sm:$0x1] }
  0x7a   : > { %v1239_v44 = vrot.slane %v1237_v37, 1  ;;  %v6113_v53 = vld [vmem:[#allocation2 + $0xb8] sm:$0xf]  ;;  %v4607_v55 = vcombine.low %v445_v49, %v445_v49  ;;  %v4608_v56 = vcombine.high %v445_v49, %v445_v49  ;;  %v6118_v59 = vld [vmem:[#allocation2 + $0xbc] ss:$0 sps:$4 sm:$0x11]   ;;  %v899_v51 = vsel %vm5922_vm8, %v608_v42, %v898_v39  ;;  %5083 = vmatprep.subr.bf16.mxu1 %v5572_v40 }
  0x7b   : > { %v1377_v35 = vsel %vm1197_vm0, %v1372_v28, %v1376_v23  ;;  %v6116_v58 = vcombine.low %v1019_v41, %v6113_v53  ;;  %v618_v61 = vrot.slane %v613_v48, 4  ;;  %900 = vst [vmem:[#allocation2 + $0x30] sm:$0xf] %v899_v51  ;;  %v1386_v2 = vshll.u32 %v6118_v59, 16  ;;  %v320_v28 = vld [vmem:[%s5805_s27 + $0x60] sm:$0xff]  ;;  %v323_v37 = vld [vmem:[%s5805_s27 + $0x78] sm:$0xff] }
  0x7c   : > { %1855 = vmatprep.mubr.bf16.mxu1 %v1377_v35  ;;  %v620_v14 = vshrl.u32 %v4607_v55, 16  ;;  %v623_v46 = vshll.u32 %v4607_v55, 16  ;;  %v628_v52 = vshrl.u32 %v4608_v56, 16  ;;  %v617_v5 = vsel %vm5914_vm7, %v609_v45, %v616_v60  ;;  %v325_v39 = vld [vmem:[%s5805_s27 + $0x88] sm:$0xff]  ;;  %v6156_v48 = vld [vmem:[%s7459_s1] ss:$0 sm:$0xff] }
  0x7d   : > { %1856 = vmatmul.mubr.bf16.gmra.mxu1 %v4645_v43  ;;  %v1240_v43 = vor.u32 %v1239_v44, %v1235_v36  ;;  %v1379_v63 = vshrl.u32 %v6116_v58, 16  ;;  %v1381_v1 = vshll.u32 %v6116_v58, 16  ;;  %901 = vst [vmem:[#allocation2 + $0x34] sm:$0xf] %v617_v5  ;;  %v903_v12 = vsel %vm5931_vm9, %v618_v61, %v902_v54  ;;  %v322_v36 = vld [vmem:[%s5805_s27 + $0x70] sm:$0xff] }
  0x7e   : > { %v622_v13 = vrot.slane %v620_v14, 7  ;;  %v630_v17 = vrot.slane %v628_v52, 7  ;;  %v1388_v22 = vrot.slane %v1386_v2, 1  ;;  %904 = vst [vmem:[#allocation2 + $0x38] sm:$0x1] %v903_v12  ;;  %v631_v23 = vshll.u32 %v4608_v56, 16 }
  0x7f   : > { %v1245_v11 = vsel %vm1197_vm0, %v1240_v43, %v1244_v50  ;;  %v1383_v18 = vrot.slane %v1381_v1, 1  ;;  %v6132_v10 = vsel %vm1454_vm10, %v1461_v33, %v1462_v34  ;;  %v4666_v27 = vcombine.low %v1040_v62, %v6099_v25  ;;  %v324_v33 = vld [vmem:[%s5805_s27 + $0x80] sm:$0xff]  ;;  %v5611_v43 = vld [vmem:[%s7461_s3 + $0x148] sm:$0xff]  }
  0x80   : > { %1767 = vmatprep.mubr.bf16.mxu0 %v1245_v11  ;;  %v625_v16 = vor.u32 %v623_v46, %v622_v13  ;;  %v626_v26 = vrot.slane %v622_v13, 4  ;;  %v635_v3 = vrot.slane %v630_v17, 4  ;;  %v633_v31 = vor.u32 %v631_v23, %v630_v17  ;;  %v6165_v44 = vld [vmem:[%s7460_s2] ss:$0 sm:$0xff]  ;;  %5415 = vmatprep.subr.bf16.mxu0 %v5611_v43  ;;  %v5573_v11 = vld [vmem:[%s7461_s3 + $0xf8] sm:$0xff]   ;;  %v5579_v13 = vld [vmem:[%s7461_s3 + $0x130] sm:$0xff]  }
  0x81   : > { %1768 = vmatmul.mubr.bf16.gmra.mxu0 %v4634_v29  ;;  %v1384_v47 = vor.u32 %v1383_v18, %v1379_v63  ;;  %v1465_v32 = vrot.slane %v6104_v15, 1  ;;  %v357_v35 = vmul.f32 %v5863_v19, %v318_v9  ;;  %v1464_v38 = vrot.slane %v4666_v27, 1 }
  0x82   : > { %v906_v29 = vsel %vm5922_vm8, %v625_v16, %v905_v6  ;;  %v910_v34 = vsel %vm5931_vm9, %v635_v3, %v909_v7  ;;  %v358_v25 = vmul.f32 %v5863_v19, %v319_v8  ;;  %v997_v41 = vld [vmem:[#allocation2 + $0x30] sm:$0xf]  ;;  %v634_v15 = vsel %vm5914_vm7, %v626_v26, %v633_v31  ;;  %5416 = vmatpush3.bf16.msra.mxu0 %v5611_v43 }
  0x83   : > { %v1389_v40 = vsel %vm1197_vm0, %v1384_v47, %v1388_v22  ;;  %907 = vst [vmem:[#allocation2 + $0x3c] sm:$0xf] %v906_v29  ;;  %911 = vst [vmem:[#allocation2 + $0x44] sm:$0x1] %v910_v34  ;;  %v396_v42 = vadd.f32 %v5868_v20, %v357_v35  ;;  %v1041_v45 = vld [vmem:[#allocation2 + $0x30] sm:$0xe]  ;;  %v359_v49 = vmul.f32 %v6156_v48, %v320_v28 }
  0x84   : > { %1863 = vmatprep.mubr.bf16.mxu1 %v1389_v40  ;;  %908 = vst [vmem:[#allocation2 + $0x40] sm:$0xf] %v634_v15  ;;  %v6160_v19 = vsel %vm1454_vm10, %v1464_v38, %v1465_v32  ;;  %v397_v20 = vadd.f32 %v6165_v44, %v358_v25  ;;  %v360_v50 = vmul.f32 %v6156_v48, %v321_v30  ;;  %v998_v55 = vld [vmem:[#allocation2 + $0x34] sm:$0xf]  ;;  %v912_v34 = vld [vmem:[#allocation2 + $0x48] sm:$0xf] }
  0x85   : > { %v361_v54 = vmul.f32 %v6156_v48, %v322_v36  ;;  %1864 = vmatmul.mubr.bf16.gmra.mxu1 %v6116_v58  ;;  %v6172_v56 = vadd.f32 %v6165_v44, %v359_v49  ;;  %v362_v60 = vmul.f32 %v6156_v48, %v323_v37  ;;  %v363_v61 = vmul.f32 %v6156_v48, %v324_v33  ;;  %v5569_v46 = vld [vmem:[#allocation2 + $0x38] ss:$0 sps:$4 sm:$0x11]   ;;  %v326_v6 = vld [vmem:[%s5805_s27 + $0x90] sm:$0xff]  ;;  %v5616_v25 = vld [vmem:[%s7461_s3 + $0x140] sm:$0xff]  }
  0x86   : > { %v364_v51 = vmul.f32 %v6156_v48, %v325_v39  ;;  %v4635_v14 = vcombine.low %v997_v41, %v998_v55  ;;  %5371 = vmatprep.mubr.bf16.mxu1 %v6090_v21  ;;  %v423_v58 = vpack.c.bf16 %v397_v20, %v396_v42  ;;  %v4667_v52 = vcombine.low %v1041_v45, %v998_v55  ;;  %v5580_v20 = vld [vmem:[%s7461_s3 + $0xf0] sm:$0xff]  }
  0x87   : > { %v6182_v62 = vadd.f32 %v6165_v44, %v360_v50  ;;  %v6185_v63 = vadd.f32 %v6165_v44, %v361_v54  ;;  %v6188_v1 = vadd.f32 %v6165_v44, %v362_v60  ;;  %v6191_v2 = vadd.f32 %v6165_v44, %v363_v61  ;;  %v5585_v61 = vld [vmem:[%s7461_s3 + $0x128] sm:$0xff]   ;;  %5417 = vmatprep.subr.bf16.mxu0 %v5616_v25 }
  0x88   : > { %v6194_v5 = vadd.f32 %v6165_v44, %v364_v51  ;;  %v1247_v21 = vshrl.u32 %v4635_v14, 16  ;;  %v1249_v7 = vshll.u32 %v4635_v14, 16  ;;  %v1254_v9 = vshll.u32 %v5569_v46, 16  ;;  %5418 = vmatpush3.bf16.msra.mxu0 %v5616_v25  ;;  %v930_v25 = vld [vmem:[#allocation2 + $0x68] sm:$0x1] }
  0x89   : > { %v447_v12 = vsel %vm434_vm1, %v423_v58, 0  ;;  %v1467_v22 = vrot.slane %v4667_v52, 1  ;;  %v1468_v23 = vrot.slane %v5569_v46, 1  ;;  %v424_v3 = vpack.c.bf16 %v6182_v62, %v6172_v56  ;;  %v916_v56 = vld [vmem:[#allocation2 + $0x50] sm:$0x1]  ;;  %v5586_v58 = vld [vmem:[%s7461_s3 + $0xe8] sm:$0xff]  }
  0x8a   : > { %v4609_v17 = vcombine.low %v447_v12, %v447_v12  ;;  %v4610_v18 = vcombine.high %v447_v12, %v447_v12  ;;  %v1251_v8 = vrot.slane %v1249_v7, 1  ;;  %v1256_v16 = vrot.slane %v1254_v9, 1  ;;  %v999_v26 = vld [vmem:[#allocation2 + $0x3c] sm:$0xf]  ;;  %v5592_v12 = vld [vmem:[%s7461_s3 + $0x120] sm:$0xff]  }
  0x8b   : > { %v425_v27 = vpack.c.bf16 %v6188_v1, %v6185_v63  ;;  %v1000_v28 = vld [vmem:[#allocation2 + $0x40] sm:$0xf]  ;;  %v5576_v30 = vld [vmem:[#allocation2 + $0x44] ss:$0 sps:$4 sm:$0x11]   ;;  %v6209_v31 = vsel %vm1454_vm10, %v1467_v22, %v1468_v23  ;;  %v426_v32 = vpack.c.bf16 %v6194_v5, %v6191_v2  ;;  %v6214_v35 = vmul.f32 %v6156_v48, %v326_v6  ;;  %v5627_v52 = vld [vmem:[%s7461_s3 + $0x1f8] sm:$0xff]  }
  0x8c   : > { %v637_v47 = vshrl.u32 %v4609_v17, 16  ;;  %v1252_v36 = vor.u32 %v1251_v8, %v1247_v21  ;;  %v6216_v37 = vcombine.low %v999_v26, %v1000_v28  ;;  %v640_v33 = vshll.u32 %v4609_v17, 16  ;;  %v1042_v38 = vld [vmem:[#allocation2 + $0x3c] sm:$0xe]  ;;  %5219 = vmatprep.subr.bf16.mxu0 %v5627_v52 }
  0x8d   : > { %v645_v29 = vshrl.u32 %v4610_v18, 16  ;;  %5372 = vmatmul.mubr.bf16.vlgmr.msra.gmra.mxu1 %v6096_v24  ;;  %v1266_v39 = vshll.u32 %v5576_v30, 16  ;;  %v648_v41 = vshll.u32 %v4610_v18, 16  ;;  %v4668_v15 = vcombine.low %v1042_v38, %v1000_v28  ;;  %v327_v2 = vld [vmem:[%s5805_s27 + $0x98] sm:$0xff]  ;;  %v5593_v28 = vld [vmem:[%s7461_s3 + $0xe0] sm:$0xff]  }
  0x8e   : > { %v639_v40 = vrot.slane %v637_v47, 7  ;;  %v1257_v42 = vsel %vm1197_vm0, %v1252_v36, %v1256_v16  ;;  %5084 = vmatpush3.bf16.msra.mxu1 %v5573_v11  ;;  %v1259_v45 = vshrl.u32 %v6216_v37, 16  ;;  %v1261_v49 = vshll.u32 %v6216_v37, 16  ;;  %5375 = vmatprep.mubr.bf16.mxu1 %v6132_v10  ;;  %v923_v47 = vld [vmem:[#allocation2 + $0x5c] sm:$0x1] }
  0x8f   : > { %v647_v50 = vrot.slane %v645_v29, 7  ;;  %1775 = vmatprep.mubr.bf16.mxu0 %v1257_v42  ;;  %v1268_v24 = vrot.slane %v1266_v39, 1  ;;  %5085 = vmatprep.subr.bf16.mxu1 %v5579_v13  ;;  %v1470_v60 = vrot.slane %v4668_v15, 1  ;;  %v1471_v46 = vrot.slane %v5576_v30, 1  ;;  %v919_v30 = vld [vmem:[#allocation2 + $0x54] sm:$0xf] }
  0x90   : > { %v642_v54 = vor.u32 %v640_v33, %v639_v40  ;;  %v643_v55 = vrot.slane %v639_v40, 4  ;;  %1776 = vmatmul.mubr.bf16.gmra.mxu0 %v4635_v14  ;;  %v1263_v51 = vrot.slane %v1261_v49, 1  ;;  %v449_v63 = vsel %vm434_vm1, %v424_v3, 0  ;;  %v5602_v49 = vld [vmem:[%s7461_s3 + $0xd8] sm:$0xff]  }
  0x91   : > { %v650_v10 = vor.u32 %v648_v41, %v647_v50  ;;  %v652_v43 = vrot.slane %v647_v50, 4  ;;  %v451_v14 = vsel %vm434_vm1, %v425_v27, 0  ;;  %v453_v1 = vsel %vm434_vm1, %v426_v32, 0 }
  0x92   : > { %v913_v62 = vsel %vm5922_vm8, %v642_v54, %v912_v34  ;;  %v1264_v5 = vor.u32 %v1263_v51, %v1259_v45  ;;  %5086 = vmatpush3.bf16.msra.mxu1 %v5580_v20  ;;  %v6249_v7 = vsel %vm1454_vm10, %v1470_v60, %v1471_v46  ;;  %v4611_v9 = vcombine.low %v449_v63, %v449_v63 }
  0x93   : > { %v651_v6 = vsel %vm5914_vm7, %v643_v55, %v650_v10  ;;  %914 = vst [vmem:[#allocation2 + $0x48] sm:$0xf] %v913_v62  ;;  %v917_v21 = vsel %vm5931_vm9, %v652_v43, %v916_v56  ;;  %5087 = vmatprep.subr.bf16.mxu1 %v5585_v61  ;;  %v4612_v11 = vcombine.high %v449_v63, %v449_v63  ;;  %v328_v63 = vld [vmem:[%s5805_s27 + $0xa0] sm:$0xff] }
  0x94   : > { %915 = vst [vmem:[#allocation2 + $0x4c] sm:$0xf] %v651_v6  ;;  %918 = vst [vmem:[#allocation2 + $0x50] sm:$0x1] %v917_v21  ;;  %v4613_v13 = vcombine.low %v451_v14, %v451_v14  ;;  %v4614_v17 = vcombine.high %v451_v14, %v451_v14  ;;  %v1269_v18 = vsel %vm1197_vm0, %v1264_v5, %v1268_v24  ;;  %v654_v16 = vshrl.u32 %v4611_v9, 16  ;;  %v5609_v14 = vld [vmem:[%s7461_s3 + $0x110] sm:$0xff]  }
  0x95   : > { %v6255_v22 = vcombine.low %v453_v1, %v453_v1  ;;  %v6257_v23 = vcombine.high %v453_v1, %v453_v1  ;;  %v6260_v8 = vmul.f32 %v6156_v48, %v327_v2  ;;  %1783 = vmatprep.mubr.bf16.mxu0 %v1269_v18  ;;  %5376 = vmatmul.mubr.bf16.gmra.mxu1 %v6160_v19  ;;  %v657_v26 = vshll.u32 %v4611_v9, 16  ;;  %v926_v19 = vld [vmem:[#allocation2 + $0x60] sm:$0xf]  ;;  %v329_v21 = vld [vmem:[%s5805_s27 + $0xa8] sm:$0xff] }
  0x96   : > { %v662_v3 = vshrl.u32 %v4612_v11, 16  ;;  %v665_v27 = vshll.u32 %v4612_v11, 16  ;;  %5379 = vmatprep.mubr.bf16.mxu1 %v6209_v31  ;;  %5088 = vmatpush3.bf16.msra.mxu1 %v5586_v58  ;;  %v671_v32 = vshrl.u32 %v4613_v13, 16  ;;  %v674_v36 = vshll.u32 %v4613_v13, 16  ;;  %v5601_v31 = vld [vmem:[%s7461_s3 + $0x118] sm:$0xff]  }
  0x97   : > { %v679_v33 = vshrl.u32 %v4614_v17, 16  ;;  %v682_v29 = vshll.u32 %v4614_v17, 16  ;;  %v656_v34 = vrot.slane %v654_v16, 7  ;;  %5089 = vmatprep.subr.bf16.mxu1 %v5592_v12  ;;  %v688_v39 = vshrl.u32 %v6255_v22, 16  ;;  %v5610_v16 = vld [vmem:[%s7461_s3 + $0xd0] sm:$0xff]  }
  0x98   : > { %v664_v38 = vrot.slane %v662_v3, 7  ;;  %v691_v40 = vshll.u32 %v6255_v22, 16  ;;  %1784 = vmatmul.mubr.bf16.gmra.mxu0 %v6216_v37  ;;  %v673_v41 = vrot.slane %v671_v32, 7  ;;  %v696_v42 = vshrl.u32 %v6257_v23, 16 }
  0x99   : > { %v681_v15 = vrot.slane %v679_v33, 7  ;;  %v699_v45 = vshll.u32 %v6257_v23, 16  ;;  %v659_v50 = vor.u32 %v657_v26, %v656_v34  ;;  %v660_v24 = vrot.slane %v656_v34, 4  ;;  %v937_v33 = vld [vmem:[#allocation2 + $0x74] sm:$0x1] }
  0x9a   : > { %v1001_v20 = vld [vmem:[#allocation2 + $0x48] sm:$0xf]  ;;  %v667_v54 = vor.u32 %v665_v27, %v664_v38  ;;  %v669_v55 = vrot.slane %v664_v38, 4  ;;  %5090 = vmatpush3.bf16.msra.mxu1 %v5593_v28  ;;  %v676_v37 = vor.u32 %v674_v36, %v673_v41  ;;  %v677_v61 = vrot.slane %v673_v41, 4  ;;  %v933_v27 = vld [vmem:[#allocation2 + $0x6c] sm:$0xf] }
  0x9b   : > { %v1043_v56 = vld [vmem:[#allocation2 + $0x48] sm:$0xe]  ;;  %v1002_v60 = vld [vmem:[#allocation2 + $0x4c] sm:$0xf]  ;;  %v684_v51 = vor.u32 %v682_v29, %v681_v15  ;;  %v686_v10 = vrot.slane %v681_v15, 4  ;;  %v920_v52 = vsel %vm5922_vm8, %v659_v50, %v919_v30  ;;  %5091 = vmatprep.subr.bf16.mxu1 %v5601_v31  ;;  %v690_v18 = vrot.slane %v688_v39, 7 }
  0x9c   : > { %v6278_v43 = vcombine.low %v1001_v20, %v1002_v60  ;;  %v5582_v46 = vld [vmem:[#allocation2 + $0x50] ss:$0 sps:$4 sm:$0x11]   ;;  %v668_v58 = vsel %vm5914_vm7, %v660_v24, %v667_v54  ;;  %v924_v62 = vsel %vm5931_vm9, %v669_v55, %v923_v47  ;;  %921 = vst [vmem:[#allocation2 + $0x54] sm:$0xf] %v920_v52  ;;  %v4669_v1 = vcombine.low %v1043_v56, %v1002_v60  ;;  %v5614_v30 = vld [vmem:[%s7461_s3 + $0x108] sm:$0xff]  }
  0x9d   : > { %922 = vst [vmem:[#allocation2 + $0x58] sm:$0xf] %v668_v58  ;;  %925 = vst [vmem:[#allocation2 + $0x5c] sm:$0x1] %v924_v62  ;;  %v685_v2 = vsel %vm5914_vm7, %v677_v61, %v684_v51  ;;  %v927_v5 = vsel %vm5922_vm8, %v676_v37, %v926_v19  ;;  %v931_v6 = vsel %vm5931_vm9, %v686_v10, %v930_v25  ;;  %v1278_v12 = vshll.u32 %v5582_v46, 16  ;;  %v5615_v39 = vld [vmem:[%s7461_s3 + $0xc8] sm:$0xff]  }
  0x9e   : > { %v1271_v9 = vshrl.u32 %v6278_v43, 16  ;;  %v1273_v11 = vshll.u32 %v6278_v43, 16  ;;  %5380 = vmatmul.mubr.bf16.gmra.mxu1 %v6249_v7  ;;  %v1474_v13 = vrot.slane %v5582_v46, 1  ;;  %928 = vst [vmem:[#allocation2 + $0x60] sm:$0xf] %v927_v5  ;;  %v1473_v17 = vrot.slane %v4669_v1, 1 }
  0x9f   : > { %929 = vst [vmem:[#allocation2 + $0x64] sm:$0xf] %v685_v2  ;;  %932 = vst [vmem:[#allocation2 + $0x68] sm:$0x1] %v931_v6  ;;  %v698_v22 = vrot.slane %v696_v42, 7  ;;  %5092 = vmatpush3.bf16.msra.mxu1 %v5602_v49  ;;  %v404_v23 = vadd.f32 %v6165_v44, %v6214_v35  ;;  %v1280_v3 = vrot.slane %v1278_v12, 1  ;;  %v405_v7 = vadd.f32 %v6165_v44, %v6260_v8 }
  0xa0   : > { %v1275_v26 = vrot.slane %v1273_v11, 1  ;;  %v367_v28 = vmul.f32 %v6156_v48, %v328_v63  ;;  %5093 = vmatprep.subr.bf16.mxu1 %v5609_v14  ;;  %v1475_v47 = vsel %vm1454_vm10, %v1473_v17, %v1474_v13  ;;  %v693_v35 = vor.u32 %v691_v40, %v690_v18  ;;  %v5619_v40 = vld [vmem:[%s7461_s3 + $0x100] sm:$0xff]   ;;  %v6345_v11 = vld [vmem:[%s7461_s3 + $0x238] sm:$0xff]  }
  0xa1   : > { %v694_v32 = vrot.slane %v690_v18, 4  ;;  %v701_v36 = vor.u32 %v699_v45, %v698_v22  ;;  %5383 = vmatprep.mubr.bf16.mxu1 %v1475_v47  ;;  %v703_v34 = vrot.slane %v698_v22, 4  ;;  %v427_v38 = vpack.c.bf16 %v405_v7, %v404_v23  ;;  %v5620_v2 = vld [vmem:[%s7461_s3 + $0xc0] sm:$0xff]   ;;  %v940_v47 = vld [vmem:[#allocation2 + $0x78] sm:$0xf] }
  0xa2   : > { %v1276_v29 = vor.u32 %v1275_v26, %v1271_v9  ;;  %v368_v19 = vmul.f32 %v6156_v48, %v329_v21  ;;  %v934_v25 = vsel %vm5922_vm8, %v693_v35, %v933_v27  ;;  %v6328_v24 = vadd.f32 %v6165_v44, %v367_v28 }
  0xa3   : > { %v702_v8 = vsel %vm5914_vm7, %v694_v32, %v701_v36  ;;  %5094 = vmatpush3.bf16.msra.mxu1 %v5610_v16  ;;  %v1003_v41 = vld [vmem:[#allocation2 + $0x54] sm:$0xf]  ;;  %935 = vst [vmem:[#allocation2 + $0x6c] sm:$0xf] %v934_v25  ;;  %v938_v42 = vsel %vm5931_vm9, %v703_v34, %v937_v33  ;;  %v455_v50 = vsel %vm434_vm1, %v427_v38, 0 }
  0xa4   : > { %v1281_v31 = vsel %vm1197_vm0, %v1276_v29, %v1280_v3  ;;  %v1004_v15 = vld [vmem:[#allocation2 + $0x58] sm:$0xf]  ;;  %936 = vst [vmem:[#allocation2 + $0x70] sm:$0xf] %v702_v8  ;;  %5095 = vmatprep.subr.bf16.mxu1 %v5614_v30  ;;  %v1044_v20 = vld [vmem:[#allocation2 + $0x54] sm:$0xe]  ;;  %v4617_v60 = vcombine.low %v455_v50, %v455_v50  ;;  %v6331_v37 = vcombine.high %v455_v50, %v455_v50 }
  0xa5   : > { %1791 = vmatprep.mubr.bf16.mxu0 %v1281_v31  ;;  %v4638_v45 = vcombine.low %v1003_v41, %v1004_v15  ;;  %v5589_v49 = vld [vmem:[#allocation2 + $0x5c] ss:$0 sps:$4 sm:$0x11]   ;;  %939 = vst [vmem:[#allocation2 + $0x74] sm:$0x1] %v938_v42  ;;  %v4670_v54 = vcombine.low %v1044_v20, %v1004_v15  ;;  %v6334_v61 = vadd.f32 %v6165_v44, %v368_v19 }
  0xa6   : > { %1792 = vmatmul.mubr.bf16.gmra.mxu0 %v6278_v43  ;;  %v1005_v55 = vld [vmem:[#allocation2 + $0x60] sm:$0xf]  ;;  %v1006_v56 = vld [vmem:[#allocation2 + $0x64] sm:$0xf]  ;;  %v1290_v46 = vshll.u32 %v5589_v49, 16  ;;  %v1477_v58 = vrot.slane %v5589_v49, 1 }
  0xa7   : > { %v1283_v51 = vshrl.u32 %v4638_v45, 16  ;;  %v1285_v10 = vshll.u32 %v4638_v45, 16  ;;  %v1045_v52 = vld [vmem:[#allocation2 + $0x60] sm:$0xe]  ;;  %5096 = vmatpush3.bf16.msra.mxu1 %v5615_v39  ;;  %v1476_v62 = vrot.slane %v4670_v54, 1  ;;  %v6336_v63 = vcombine.low %v1005_v55, %v1006_v56 }
  0xa8   : > { %v5596_v14 = vld [vmem:[#allocation2 + $0x68] ss:$0 sps:$4 sm:$0x11]   ;;  %v4671_v43 = vcombine.low %v1045_v52, %v1006_v56  ;;  %v705_v1 = vshrl.u32 %v4617_v60, 16  ;;  %5097 = vmatprep.subr.bf16.mxu1 %v5619_v40  ;;  %v1292_v6 = vrot.slane %v1290_v46, 1  ;;  %v708_v21 = vshll.u32 %v4617_v60, 16 }
  0xa9   : > { %v1287_v5 = vrot.slane %v1285_v10, 1  ;;  %v713_v9 = vshrl.u32 %v6331_v37, 16  ;;  %v1478_v12 = vsel %vm1454_vm10, %v1476_v62, %v1477_v58  ;;  %v1295_v13 = vshrl.u32 %v6336_v63, 16  ;;  %v944_v39 = vld [vmem:[#allocation2 + $0x80] sm:$0x1] }
  0xaa   : > { %v1297_v17 = vshll.u32 %v6336_v63, 16  ;;  %v1302_v18 = vshll.u32 %v5596_v14, 16  ;;  %5384 = vmatmul.mubr.bf16.gmra.mxu1 %v1478_v12  ;;  %v1479_v23 = vrot.slane %v4671_v43, 1  ;;  %v1480_v16 = vrot.slane %v5596_v14, 1  ;;  %v1007_v26 = vld [vmem:[#allocation2 + $0x6c] sm:$0xf] }
  0xab   : > { %v1288_v22 = vor.u32 %v1287_v5, %v1283_v51  ;;  %v1008_v3 = vld [vmem:[#allocation2 + $0x70] sm:$0xf]  ;;  %v1046_v28 = vld [vmem:[#allocation2 + $0x6c] sm:$0xe]  ;;  %v428_v35 = vpack.c.bf16 %v6334_v61, %v6328_v24  ;;  %5098 = vmatpush3.bf16.msra.mxu1 %v5620_v2  ;;  %v707_v34 = vrot.slane %v705_v1, 7  ;;  %v715_v25 = vrot.slane %v713_v9, 7 }
  0xac   : > { %v1299_v27 = vrot.slane %v1297_v17, 1  ;;  %v1304_v7 = vrot.slane %v1302_v18, 1  ;;  %v6350_v30 = vcombine.low %v1007_v26, %v1008_v3  ;;  %v1481_v36 = vsel %vm1454_vm10, %v1479_v23, %v1480_v16  ;;  %v5599_v33 = vld [vmem:[#allocation2 + $0x74] ss:$0 sps:$4 sm:$0x11]   ;;  %5451 = vmatprep.subr.bf16.mxu1 %v6345_v11 }
  0xad   : > { %v1293_v32 = vsel %vm1197_vm0, %v1288_v22, %v1292_v6  ;;  %v4672_v29 = vcombine.low %v1046_v28, %v1008_v3  ;;  %5387 = vmatprep.mubr.bf16.mxu1 %v1481_v36  ;;  %v1052_v40 = vld [vmem:[#allocation2 + $0xb4] sm:$0xe]  ;;  %v1483_v41 = vrot.slane %v5599_v33, 1  ;;  %v1314_v15 = vshll.u32 %v5599_v33, 16  ;;  %v951_v12 = vld [vmem:[#allocation2 + $0x8c] sm:$0x1] }
  0xae   : > { %1799 = vmatprep.mubr.bf16.mxu0 %v1293_v32  ;;  %v1300_v38 = vor.u32 %v1299_v27, %v1295_v13  ;;  %v1307_v19 = vshrl.u32 %v6350_v30, 16  ;;  %v1309_v8 = vshll.u32 %v6350_v30, 16  ;;  %v710_v42 = vor.u32 %v708_v21, %v707_v34  ;;  %v1049_v23 = vld [vmem:[#allocation2 + $0x90] sm:$0xe]  ;;  %v5743_v33 = vld [vmem:[#allocation2 + $0x94] sm:$0xf] }
  0xaf   : > { %1800 = vmatmul.mubr.bf16.gmra.mxu0 %v4638_v45  ;;  %v1482_v31 = vrot.slane %v4672_v29, 1  ;;  %v711_v50 = vrot.slane %v707_v34, 4  ;;  %v716_v24 = vshll.u32 %v6331_v37, 16  ;;  %v1316_v55 = vrot.slane %v1314_v15, 1  ;;  %v2098_v15 = vld [vmem:[#allocation2 + $0x10] sm:$0xf] }
  0xb0   : > { %v1305_v49 = vsel %vm1197_vm0, %v1300_v38, %v1304_v7  ;;  %v1311_v20 = vrot.slane %v1309_v8, 1  ;;  %v720_v56 = vrot.slane %v715_v25, 4  ;;  %v941_v60 = vsel %vm5922_vm8, %v710_v42, %v940_v47  ;;  %v2145_v42 = vld [vmem:[#allocation2 + $0xc] sm:$0xe] }
  0xb1   : > { %1807 = vmatprep.mubr.bf16.mxu0 %v1305_v49  ;;  %v1484_v54 = vsel %vm1454_vm10, %v1482_v31, %v1483_v41  ;;  %v718_v45 = vor.u32 %v716_v24, %v715_v25  ;;  %942 = vst [vmem:[#allocation2 + $0x78] sm:$0xf] %v941_v60  ;;  %v457_v51 = vsel %vm434_vm1, %v428_v35, 0  ;;  %v4678_v37 = vcombine.low %v1052_v40, %v6113_v53  ;;  %v947_v53 = vld [vmem:[#allocation2 + $0x84] sm:$0xf] }
  0xb2   : > { %v1312_v61 = vor.u32 %v1311_v20, %v1307_v19  ;;  %5388 = vmatmul.mubr.bf16.gmra.mxu1 %v1484_v54  ;;  %v945_v10 = vsel %vm5931_vm9, %v720_v56, %v944_v39  ;;  %v4619_v46 = vcombine.low %v457_v51, %v457_v51  ;;  %v4620_v58 = vcombine.high %v457_v51, %v457_v51  ;;  %v1050_v31 = vld [vmem:[#allocation2 + $0x9c] sm:$0xe]  ;;  %v2097_v41 = vld [vmem:[#allocation2 + $0xc] sm:$0xf]  ;;  %v1051_v24 = vld [vmem:[#allocation2 + $0xa8] sm:$0xe] }
  0xb3   : > { %v719_v62 = vsel %vm5914_vm7, %v711_v50, %v718_v45  ;;  %946 = vst [vmem:[#allocation2 + $0x80] sm:$0x1] %v945_v10  ;;  %v1500_v21 = vrot.slane %v4678_v37, 1  ;;  %v1501_v9 = vrot.slane %v6118_v59, 1  ;;  %v4675_v29 = vcombine.low %v1049_v23, %v5743_v33  ;;  %v2102_v23 = vld [vmem:[#allocation2 + $0x28] sm:$0xf] }
  0xb4   : > { %v1317_v52 = vsel %vm1197_vm0, %v1312_v61, %v1316_v55  ;;  %943 = vst [vmem:[#allocation2 + $0x7c] sm:$0xf] %v719_v62  ;;  %v722_v14 = vshrl.u32 %v4619_v46, 16  ;;  %v725_v43 = vshll.u32 %v4619_v46, 16  ;;  %v730_v1 = vshrl.u32 %v4620_v58, 16 }
  0xb5   : > { %v733_v2 = vshll.u32 %v4620_v58, 16  ;;  %v6374_v3 = vsel %vm1454_vm10, %v1500_v21, %v1501_v9  ;;  %v1491_v40 = vrot.slane %v4675_v29, 1  ;;  %v5622_v51 = vld [vmem:[#allocation2 + $0x14] ss:$0 sps:$4 sm:$0x11]   ;;  %v4735_v10 = vcombine.low %v2145_v42, %v2098_v15 }
  0xb6   : > { %v724_v5 = vrot.slane %v722_v14, 7  ;;  %v732_v6 = vrot.slane %v730_v1, 7  ;;  %v5745_v14 = vld [vmem:[#allocation2 + $0xa0] sm:$0xf]  ;;  %v6385_v1 = vcombine.low %v2097_v41, %v2098_v15  ;;  %v5746_v21 = vld [vmem:[#allocation2 + $0xac] sm:$0xf] }
  0xb7   : > { %1808 = vmatmul.mubr.bf16.gmra.mxu0 %v6336_v63  ;;  %v4677_v9 = vcombine.low %v1051_v24, %v5746_v21  ;;  %v2099_v29 = vld [vmem:[#allocation2 + $0x18] sm:$0xf] }
  0xb8   : > { %1815 = vmatprep.mubr.bf16.mxu0 %v1317_v52  ;;  %v727_v13 = vor.u32 %v725_v43, %v724_v5  ;;  %v728_v17 = vrot.slane %v724_v5, 4  ;;  %v735_v18 = vor.u32 %v733_v2, %v732_v6  ;;  %v737_v22 = vrot.slane %v732_v6, 4  ;;  %v1009_v16 = vld [vmem:[#allocation2 + $0x78] sm:$0xf] }
  0xb9   : > { %v1047_v26 = vld [vmem:[#allocation2 + $0x78] sm:$0xe]  ;;  %v4676_v43 = vcombine.low %v1050_v31, %v5745_v14  ;;  %v2148_v31 = vld [vmem:[#allocation2 + $0x30] sm:$0xe] }
  0xba   : > { %v5604_v27 = vld [vmem:[#allocation2 + $0x80] ss:$0 sps:$4 sm:$0x11]   ;;  %v736_v63 = vsel %vm5914_vm7, %v728_v17, %v735_v18  ;;  %v948_v59 = vsel %vm5922_vm8, %v727_v13, %v947_v53  ;;  %v952_v7 = vsel %vm5931_vm9, %v737_v22, %v951_v12  ;;  %v2561_v12 = vrot.slane %v4735_v10, 1  ;;  %v2100_v17 = vld [vmem:[#allocation2 + $0x1c] sm:$0xf] }
  0xbb   : > { %v1010_v28 = vld [vmem:[#allocation2 + $0x7c] sm:$0xf]  ;;  %949 = vst [vmem:[#allocation2 + $0x84] sm:$0xf] %v948_v59  ;;  %950 = vst [vmem:[#allocation2 + $0x88] sm:$0xf] %v736_v63 }
  0xbc   : > { %953 = vst [vmem:[#allocation2 + $0x8c] sm:$0x1] %v952_v7  ;;  %v4641_v47 = vcombine.low %v1009_v16, %v1010_v28  ;;  %v4673_v35 = vcombine.low %v1047_v26, %v1010_v28  ;;  %v1486_v32 = vrot.slane %v5604_v27, 1  ;;  %v1326_v36 = vshll.u32 %v5604_v27, 16  ;;  %v2146_v18 = vld [vmem:[#allocation2 + $0x18] sm:$0xe] }
  0xbd   : > { %v2562_v13 = vrot.slane %v5622_v51, 1  ;;  %v2147_v16 = vld [vmem:[#allocation2 + $0x24] sm:$0xe]  ;;  %v1494_v26 = vrot.slane %v4676_v43, 1  ;;  %v2308_v59 = vshll.u32 %v6385_v1, 16  ;;  %v1497_v28 = vrot.slane %v4677_v9, 1 }
  0xbe   : > { %v1485_v34 = vrot.slane %v4673_v35, 1  ;;  %v1319_v38 = vshrl.u32 %v4641_v47, 16  ;;  %v1321_v19 = vshll.u32 %v4641_v47, 16  ;;  %v1328_v39 = vrot.slane %v1326_v36, 1 }
  0xbf   : > { %1816 = vmatmul.mubr.bf16.gmra.mxu0 %v6350_v30  ;;  %v5744_v30 = vld [vmem:[#allocation2 + $0x98] ss:$0 sps:$4 sm:$0x11]   ;;  %v5747_v27 = vld [vmem:[#allocation2 + $0xa4] ss:$0 sps:$4 sm:$0x11]   ;;  %v4736_v36 = vcombine.low %v2146_v18, %v2100_v17  ;;  %v2563_v33 = vsel %vm1454_vm10, %v2561_v12, %v2562_v13 }
  0xc0   : > { %v1487_v8 = vsel %vm1454_vm10, %v1485_v34, %v1486_v32  ;;  %v1323_v25 = vrot.slane %v1321_v19, 1  ;;  %v1492_v60 = vrot.slane %v5744_v30, 1  ;;  %v1495_v63 = vrot.slane %v5747_v27, 1  ;;  %v6391_v32 = vld [vmem:[#allocation2 + $0x20] ss:$0 sps:$4 sm:$0x11]  }
  0xc1   : > { %5391 = vmatprep.mubr.bf16.mxu1 %v1487_v8  ;;  %v6394_v34 = vld [vmem:[#allocation2 + $0x2c] ss:$0 sps:$4 sm:$0x11]   ;;  %v2306_v8 = vshrl.u32 %v6385_v1, 16  ;;  %v2564_v15 = vrot.slane %v4736_v36, 1  ;;  %v2565_v42 = vrot.slane %v6391_v32, 1 }
  0xc2   : > { %v1011_v49 = vld [vmem:[#allocation2 + $0x84] sm:$0xf]  ;;  %v1012_v20 = vld [vmem:[#allocation2 + $0x88] sm:$0xf]  ;;  %v1324_v50 = vor.u32 %v1323_v25, %v1319_v38  ;;  %v1493_v2 = vsel %vm1454_vm10, %v1491_v40, %v1492_v60  ;;  %v4737_v38 = vcombine.low %v2147_v16, %v2102_v23  ;;  %v1496_v19 = vsel %vm1454_vm10, %v1494_v26, %v1495_v63  ;;  %v6398_v40 = vld [vmem:[#allocation2 + $0x34] sm:$0xf] }
  0xc3   : > { %v1048_v54 = vld [vmem:[#allocation2 + $0x84] sm:$0xe]  ;;  %v4642_v55 = vcombine.low %v1011_v49, %v1012_v20  ;;  %v5607_v56 = vld [vmem:[#allocation2 + $0x8c] ss:$0 sps:$4 sm:$0x11]   ;;  %v2310_v25 = vrot.slane %v2308_v59, 1  ;;  %v6402_v49 = vcombine.low %v2099_v29, %v2100_v17 }
  0xc4   : > { %v4674_v61 = vcombine.low %v1048_v54, %v1012_v20  ;;  %v1329_v45 = vsel %vm1197_vm0, %v1324_v50, %v1328_v39  ;;  %v1489_v46 = vrot.slane %v5607_v56, 1  ;;  %v1338_v52 = vshll.u32 %v5607_v56, 16  ;;  %v6404_v20 = vld [vmem:[#allocation2 + $0x40] sm:$0xf]  ;;  %v2149_v50 = vld [vmem:[#allocation2 + $0x3c] sm:$0xe] }
  0xc5   : > { %1823 = vmatprep.mubr.bf16.mxu0 %v1329_v45  ;;  %v1331_v58 = vshrl.u32 %v4642_v55, 16  ;;  %v1333_v37 = vshll.u32 %v4642_v55, 16  ;;  %v2313_v39 = vshll.u32 %v5622_v51, 16  ;;  %v2567_v24 = vrot.slane %v4737_v38, 1  ;;  %v2101_v60 = vld [vmem:[#allocation2 + $0x24] sm:$0xf] }
  0xc6   : > { %v1488_v62 = vrot.slane %v4674_v61, 1  ;;  %v1340_v6 = vrot.slane %v1338_v52, 1  ;;  %v2568_v54 = vrot.slane %v6394_v34, 1  ;;  %v2311_v56 = vor.u32 %v2310_v25, %v2306_v8  ;;  %v5628_v45 = vld [vmem:[%s7461_s3 + $0x1b8] sm:$0xff]   ;;  %v5636_v52 = vld [vmem:[%s7461_s3 + $0x1f0] sm:$0xff]   ;;  %v5645_v12 = vld [vmem:[%s7461_s3 + $0x1e8] sm:$0xff]  }
  0xc7   : > { %1824 = vmatmul.mubr.bf16.gmra.mxu0 %v4641_v47  ;;  %v1335_v5 = vrot.slane %v1333_v37, 1  ;;  %v5748_v47 = vld [vmem:[#allocation2 + $0xb0] ss:$0 sps:$4 sm:$0x11]   ;;  %v2315_v30 = vrot.slane %v2313_v39, 1  ;;  %v2566_v61 = vsel %vm1454_vm10, %v2564_v15, %v2565_v42  ;;  %v2320_v51 = vshll.u32 %v6402_v49, 16 }
  0xc8   : > { %v1490_v53 = vsel %vm1454_vm10, %v1488_v62, %v1489_v46  ;;  %v1498_v35 = vrot.slane %v5748_v47, 1  ;;  %v6413_v10 = vld [vmem:[#allocation2 + $0x38] ss:$0 sps:$4 sm:$0x11]   ;;  %v4738_v46 = vcombine.low %v2148_v31, %v6398_v40  ;;  %v2569_v37 = vsel %vm1454_vm10, %v2567_v24, %v2568_v54  ;;  %v2151_v63 = vld [vmem:[#allocation2 + $0x54] sm:$0xe] }
  0xc9   : > { %5392 = vmatmul.mubr.bf16.gmra.mxu1 %v1490_v53  ;;  %v1336_v22 = vor.u32 %v1335_v5, %v1331_v58  ;;  %v339_v58 = vld [vmem:[%s5805_s27 + $0xf8] sm:$0xff]  ;;  %v6421_v62 = vld [vmem:[#allocation2 + $0x44] ss:$0 sps:$4 sm:$0x11]   ;;  %v4739_v14 = vcombine.low %v2149_v50, %v6404_v20  ;;  %v6428_v5 = vld [vmem:[#allocation2 + $0x4c] sm:$0xf]  ;;  %v2316_v21 = vsel %vm1197_vm0, %v2311_v56, %v2315_v30  ;;  %v6432_v53 = vcombine.low %v2101_v60, %v2102_v23 }
  0xca   : > { %5395 = vmatprep.mubr.bf16.mxu1 %v1493_v2  ;;  %v1499_v41 = vsel %vm1454_vm10, %v1497_v28, %v1498_v35  ;;  %v5637_v2 = vld [vmem:[%s7461_s3 + $0x1b0] sm:$0xff]   ;;  %v2318_v9 = vshrl.u32 %v6402_v49, 16  ;;  %v6437_v13 = vld [vmem:[#allocation2 + $0x58] sm:$0xf]  ;;  %v378_v17 = vmul.f32 %v6156_v48, %v339_v58  ;;  %v2322_v18 = vrot.slane %v2320_v51, 1  ;;  %v5646_v36 = vld [vmem:[%s7461_s3 + $0x1a8] sm:$0xff]  }
  0xcb   : > { %v1341_v7 = vsel %vm1197_vm0, %v1336_v22, %v1340_v6  ;;  %v2150_v6 = vld [vmem:[#allocation2 + $0x48] sm:$0xe]  ;;  %v2325_v22 = vshll.u32 %v6391_v32, 16  ;;  %v2570_v16 = vrot.slane %v4738_v46, 1  ;;  %v2571_v26 = vrot.slane %v6413_v10, 1  ;;  %v5653_v8 = vld [vmem:[%s7461_s3 + $0x1e0] sm:$0xff]  }
  0xcc   : > { %1831 = vmatprep.mubr.bf16.mxu0 %v1341_v7  ;;  %v2573_v27 = vrot.slane %v4739_v14, 1  ;;  %v2574_v23 = vrot.slane %v6421_v62, 1  ;;  %v417_v7 = vadd.f32 %v6165_v44, %v378_v17  ;;  %v2332_v28 = vshll.u32 %v6432_v53, 16  ;;  %v6448_v35 = vld [vmem:[#allocation2 + $0x50] ss:$0 sps:$4 sm:$0x11]  }
  0xcd   : > { %v2337_v47 = vshll.u32 %v6394_v34, 16  ;;  %v4740_v32 = vcombine.low %v2150_v6, %v6428_v5  ;;  %v2327_v29 = vrot.slane %v2325_v22, 1  ;;  %v4741_v38 = vcombine.low %v2151_v63, %v6437_v13  ;;  %v5644_v31 = vld [vmem:[%s7461_s3 + $0x230] sm:$0xff]   ;;  %v6473_v24 = vld [vmem:[#allocation2 + $0x64] sm:$0xf] }
  0xce   : > { %v2575_v34 = vsel %vm1454_vm10, %v2573_v27, %v2574_v23  ;;  %v2330_v39 = vshrl.u32 %v6432_v53, 16  ;;  %v2577_v50 = vrot.slane %v6448_v35, 1  ;;  %v2152_v54 = vld [vmem:[#allocation2 + $0x60] sm:$0xe]  ;;  %v2105_v46 = vld [vmem:[#allocation2 + $0x3c] sm:$0xf] }
  0xcf   : > { %1832 = vmatmul.mubr.bf16.gmra.mxu0 %v4642_v55  ;;  %v338_v55 = vld [vmem:[%s5805_s27 + $0xf0] sm:$0xff]  ;;  %v2339_v15 = vrot.slane %v2337_v47, 1  ;;  %v2576_v42 = vrot.slane %v4740_v32, 1  ;;  %v2579_v30 = vrot.slane %v4741_v38, 1  ;;  %v2153_v58 = vld [vmem:[#allocation2 + $0x6c] sm:$0xe] }
  0xd0   : > { %5419 = vmatprep.mubr.bf16.mxu0 %v2563_v33  ;;  %v377_v43 = vmul.f32 %v6156_v48, %v338_v55  ;;  %v2103_v48 = vld [vmem:[#allocation2 + $0x30] sm:$0xf]  ;;  %v2323_v33 = vor.u32 %v2322_v18, %v2318_v9  ;;  %v5662_v55 = vld [vmem:[%s7461_s3 + $0x1d8] sm:$0xff]   ;;  %v6502_v22 = vld [vmem:[#allocation2 + $0x74] ss:$0 sps:$4 sm:$0x11]  }
  0xd1   : > { %5396 = vmatmul.mubr.bf16.gmra.mxu1 %v1496_v19  ;;  %v6459_v19 = vcombine.low %v2103_v48, %v6398_v40  ;;  %v2334_v40 = vrot.slane %v2332_v28, 1  ;;  %v2578_v14 = vsel %vm1454_vm10, %v2576_v42, %v2577_v50  ;;  %v5670_v17 = vld [vmem:[%s7461_s3 + $0x1d0] sm:$0xff]   ;;  %v5678_v63 = vld [vmem:[%s7461_s3 + $0x220] sm:$0xff]   ;;  %v6509_v48 = vcombine.low %v2105_v46, %v6404_v20  ;;  %v6512_v47 = vld [vmem:[#allocation2 + $0x7c] sm:$0xf] }
  0xd2   : > { %5399 = vmatprep.mubr.bf16.mxu1 %v1499_v41  ;;  %v416_v59 = vadd.f32 %v6165_v44, %v377_v43  ;;  %v2572_v44 = vsel %vm1454_vm10, %v2570_v16, %v2571_v26  ;;  %v5654_v41 = vld [vmem:[%s7461_s3 + $0x1a0] sm:$0xff]   ;;  %v2328_v56 = vsel %vm1197_vm0, %v2323_v33, %v2327_v29  ;;  %v2154_v32 = vld [vmem:[#allocation2 + $0x78] sm:$0xe]  ;;  %v5679_v20 = vld [vmem:[%s7461_s3 + $0x1c8] sm:$0xff]  }
  0xd3   : > { %v2342_v43 = vshrl.u32 %v6459_v19, 16  ;;  %v2155_v50 = vld [vmem:[#allocation2 + $0x84] sm:$0xe]  ;;  %v6540_v46 = vld [vmem:[#allocation2 + $0x8c] ss:$0 sps:$4 sm:$0x11]  }
  0xd4   : > { %v433_v25 = vpack.c.bf16 %v417_v7, %v416_v59  ;;  %v982_v7 = vld [vmem:[#allocation2 + $0xc0] sm:$0xf] }
  0xd6   : > { %v467_v51 = vsel %vm434_vm1, %v433_v25, 0  ;;  %v2107_v25 = vld [vmem:[#allocation2 + $0x48] sm:$0xf] }
  0xd7   : > { %5420 = vmatmul.mubr.bf16.vlgmr.msra.gmra.mxu0 %v2566_v61  ;;  %v6480_v61 = vld [vmem:[#allocation2 + $0x70] sm:$0xf]  ;;  %v4630_v6 = vcombine.high %v467_v51, %v467_v51 }
  0xd8   : > { %5220 = vmatpush3.bf16.msra.mxu0 %v5628_v45  ;;  %5423 = vmatprep.mubr.bf16.mxu0 %v2569_v37  ;;  %v2344_v45 = vshll.u32 %v6459_v19, 16  ;;  %v4629_v37 = vcombine.low %v467_v51, %v467_v51  ;;  %v4744_v51 = vcombine.low %v2154_v32, %v6512_v47 }
  0xd9   : > { %5221 = vmatprep.subr.bf16.mxu0 %v5636_v52  ;;  %5400 = vmatmul.mubr.bf16.gmra.mxu1 %v6374_v3  ;;  %v6455_v3 = vld [vmem:[#allocation2 + $0x5c] ss:$0 sps:$4 sm:$0x11]   ;;  %v2335_v52 = vor.u32 %v2334_v40, %v2330_v39  ;;  %v815_v26 = vshrl.u32 %v4630_v6, 16  ;;  %v818_v27 = vshll.u32 %v4630_v6, 16 }
  0xda   : > { %2850 = vmatprep.mubr.bf16.mxu1 %v2316_v21  ;;  %v2580_v60 = vrot.slane %v6455_v3, 1  ;;  %v2349_v21 = vshll.u32 %v6413_v10, 16  ;;  %v807_v18 = vshrl.u32 %v4629_v37, 16  ;;  %v4743_v10 = vcombine.low %v2153_v58, %v6480_v61  ;;  %v5680_v58 = vld [vmem:[%s7461_s3 + $0x188] sm:$0xff]  }
  0xdb   : > { %v810_v16 = vshll.u32 %v4629_v37, 16  ;;  %v2346_v23 = vrot.slane %v2344_v45, 1  ;;  %v817_v33 = vrot.slane %v815_v26, 7  ;;  %v2340_v29 = vsel %vm1197_vm0, %v2335_v52, %v2339_v15  ;;  %v6525_v15 = vld [vmem:[#allocation2 + $0x88] sm:$0xf]  ;;  %v5687_v52 = vld [vmem:[%s7461_s3 + $0x1c0] sm:$0xff]  }
  0xdc   : > { %5222 = vmatpush3.bf16.msra.mxu0 %v5637_v2  ;;  %v6488_v2 = vld [vmem:[#allocation2 + $0x68] ss:$0 sps:$4 sm:$0x11]   ;;  %v2581_v9 = vsel %vm1454_vm10, %v2579_v30, %v2580_v60  ;;  %v809_v59 = vrot.slane %v807_v18, 7  ;;  %v2585_v39 = vrot.slane %v4743_v10, 1  ;;  %v4745_v4 = vcombine.low %v2155_v50, %v6525_v15 }
  0xdd   : > { %5223 = vmatprep.subr.bf16.mxu0 %v5645_v12  ;;  %v5663_v12 = vld [vmem:[%s7461_s3 + $0x198] sm:$0xff]   ;;  %v2583_v28 = vrot.slane %v6488_v2, 1  ;;  %v820_v40 = vor.u32 %v818_v27, %v817_v33  ;;  %v822_v42 = vrot.slane %v817_v33, 4  ;;  %v2347_v60 = vor.u32 %v2346_v23, %v2342_v43 }
  0xde   : > { %v812_v38 = vor.u32 %v810_v16, %v809_v59  ;;  %v6547_v37 = vcombine.low %v2107_v25, %v6428_v5  ;;  %v2354_v43 = vshrl.u32 %v6509_v48, 16  ;;  %v2588_v5 = vrot.slane %v4744_v51, 1  ;;  %v6566_v16 = vld [vmem:[#allocation2 + $0xa0] sm:$0xf]  ;;  %v2157_v26 = vld [vmem:[#allocation2 + $0x9c] sm:$0xe] }
  0xdf   : > { %5424 = vmatmul.mubr.bf16.gmra.mxu0 %v2572_v44  ;;  %v2591_v18 = vrot.slane %v4745_v4, 1  ;;  %v2592_v10 = vrot.slane %v6540_v46, 1  ;;  %v4747_v33 = vcombine.low %v2157_v26, %v6566_v16  ;;  %v6606_v4 = vld [vmem:[#allocation2 + $0xbc] ss:$0 sps:$4 sm:$0x11]  }
  0xe0   : > { %5427 = vmatprep.mubr.bf16.mxu0 %v2575_v34  ;;  %5224 = vmatpush3.bf16.msra.mxu0 %v5646_v36  ;;  %v5671_v36 = vld [vmem:[%s7461_s3 + $0x190] sm:$0xff]   ;;  %v813_v34 = vrot.slane %v809_v59, 4  ;;  %v2368_v23 = vshll.u32 %v6547_v37, 16 }
  0xe1   : > { %5225 = vmatprep.subr.bf16.mxu0 %v5653_v8  ;;  %2851 = vmatmul.mubr.bf16.vlgmr.msra.gmra.mxu1 %v6385_v1  ;;  %v4742_v1 = vcombine.low %v2152_v54, %v6473_v24  ;;  %v986_v8 = vld [vmem:[#allocation2 + $0xc8] sm:$0x1]  ;;  %v983_v54 = vsel %vm5922_vm8, %v812_v38, %v982_v7  ;;  %v2373_v38 = vshll.u32 %v6448_v35, 16  ;;  %v2158_v35 = vld [vmem:[#allocation2 + $0xa8] sm:$0xe] }
  0xe2   : > { %5452 = vmatpush3.bf16.msra.mxu1 %v6345_v11  ;;  %2858 = vmatprep.mubr.bf16.mxu1 %v2328_v56  ;;  %v5661_v11 = vld [vmem:[%s7461_s3 + $0x228] sm:$0xff]   ;;  %v821_v56 = vsel %vm5914_vm7, %v813_v34, %v820_v40  ;;  %984 = vst [vmem:[#allocation2 + $0xc0] sm:$0xf] %v983_v54  ;;  %v987_v30 = vsel %vm5931_vm9, %v822_v42, %v986_v8  ;;  %v5706_v40 = vld [vmem:[%s7461_s3 + $0x200] sm:$0xff]   ;;  %v2597_v42 = vrot.slane %v4747_v33, 1 }
  0xe3   : > { %5453 = vmatprep.subr.bf16.mxu1 %v5644_v31  ;;  %v2582_v44 = vrot.slane %v4742_v1, 1  ;;  %985 = vst [vmem:[#allocation2 + $0xc4] sm:$0xf] %v821_v56  ;;  %988 = vst [vmem:[#allocation2 + $0xc8] sm:$0x1] %v987_v30  ;;  %v2375_v51 = vrot.slane %v2373_v38, 1 }
  0xe4   : > { %5226 = vmatpush3.bf16.msra.mxu0 %v5654_v41  ;;  %v6522_v41 = vld [vmem:[#allocation2 + $0x80] ss:$0 sps:$4 sm:$0x11]   ;;  %v6594_v54 = vld [vmem:[#allocation2 + $0xb8] sm:$0xf] }
  0xe5   : > { %5227 = vmatprep.subr.bf16.mxu0 %v5662_v55  ;;  %v2356_v55 = vshll.u32 %v6509_v48, 16  ;;  %v2584_v45 = vsel %vm1454_vm10, %v2582_v44, %v2583_v28  ;;  %v2111_v44 = vld [vmem:[#allocation2 + $0x60] sm:$0xf]  ;;  %v3237_v56 = vld [vmem:[#allocation2 + $0x18] sm:$0xf] }
  0xe6   : > { %5454 = vmatpush3.bf16.msra.mxu1 %v5644_v31  ;;  %v2586_v31 = vrot.slane %v6502_v22, 1  ;;  %v6597_v30 = vld [vmem:[#allocation2 + $0x1c] sm:$0xf] }
  0xe7   : > { %5428 = vmatmul.mubr.bf16.gmra.mxu0 %v2578_v14  ;;  %5455 = vmatprep.subr.bf16.mxu1 %v5661_v11  ;;  %v2109_v14 = vld [vmem:[#allocation2 + $0x54] sm:$0xf]  ;;  %v2358_v6 = vrot.slane %v2356_v55, 1 }
  0xe8   : > { %5431 = vmatprep.mubr.bf16.mxu0 %v2581_v9  ;;  %5228 = vmatpush3.bf16.msra.mxu0 %v5663_v12  ;;  %v2587_v57 = vsel %vm1454_vm10, %v2585_v39, %v2586_v31  ;;  %v2589_v9 = vrot.slane %v6522_v41, 1  ;;  %v2156_v12 = vld [vmem:[#allocation2 + $0x90] sm:$0xe]  ;;  %v6569_v27 = vcombine.low %v2109_v14, %v6437_v13  ;;  %v2593_v13 = vsel %vm1454_vm10, %v2591_v18, %v2592_v10  ;;  %v6588_v31 = vld [vmem:[#allocation2 + $0xac] sm:$0xf] }
  0xe9   : > { %2859 = vmatmul.mubr.bf16.gmra.mxu1 %v6402_v49  ;;  %5229 = vmatprep.subr.bf16.mxu0 %v5670_v17  ;;  %v2351_v49 = vrot.slane %v2349_v21, 1  ;;  %v2361_v21 = vshll.u32 %v6421_v62, 16  ;;  %v5696_v17 = vld [vmem:[%s7461_s3 + $0x210] sm:$0xff]   ;;  %v5688_v62 = vld [vmem:[%s7461_s3 + $0x180] sm:$0xff]   ;;  %v2359_v7 = vor.u32 %v2358_v6, %v2354_v43  ;;  %v2385_v6 = vshll.u32 %v6455_v3, 16 }
  0xea   : > { %2866 = vmatprep.mubr.bf16.mxu1 %v2340_v29  ;;  %5456 = vmatpush3.bf16.msra.mxu1 %v5661_v11  ;;  %v6556_v11 = vld [vmem:[#allocation2 + $0x94] sm:$0xf]  ;;  %v2590_v32 = vsel %vm1454_vm10, %v2588_v5, %v2589_v9  ;;  %v2366_v29 = vshrl.u32 %v6547_v37, 16  ;;  %v2380_v8 = vshll.u32 %v6569_v27, 16  ;;  %v2378_v14 = vshrl.u32 %v6569_v27, 16 }
  0xeb   : > { %5457 = vmatprep.subr.bf16.mxu1 %v5678_v63  ;;  %v2352_v1 = vsel %vm1197_vm0, %v2347_v60, %v2351_v49  ;;  %v4746_v59 = vcombine.low %v2156_v12, %v6556_v11  ;;  %v2363_v28 = vrot.slane %v2361_v21, 1  ;;  %v2159_v55 = vld [vmem:[#allocation2 + $0xb4] sm:$0xe]  ;;  %v6600_v60 = vcombine.low %v2111_v44, %v6473_v24  ;;  %v6602_v49 = vld [vmem:[#allocation2 + $0xb0] ss:$0 sps:$4 sm:$0x11]  }
  0xec   : > { %5230 = vmatpush3.bf16.msra.mxu0 %v5671_v36  ;;  %v5701_v36 = vld [vmem:[%s7461_s3 + $0x208] sm:$0xff]   ;;  %v6611_v24 = vcombine.low %v3237_v56, %v6597_v30  ;;  %v2382_v43 = vrot.slane %v2380_v8, 1  ;;  %v6615_v21 = vld [vmem:[#allocation2 + $0x20] ss:$0 sps:$4 sm:$0x11]   ;;  %v2601_v9 = vrot.slane %v6602_v49, 1 }
  0xed   : > { %5231 = vmatprep.subr.bf16.mxu0 %v5679_v20  ;;  %v2370_v20 = vrot.slane %v2368_v23, 1  ;;  %v2594_v34 = vrot.slane %v4746_v59, 1  ;;  %v2364_v25 = vsel %vm1197_vm0, %v2359_v7, %v2363_v28  ;;  %v2127_v5 = vld [vmem:[#allocation2 + $0xc0] sm:$0xf]  ;;  %v2604_v18 = vrot.slane %v6606_v4, 1 }
  0xee   : > { %5458 = vmatpush3.bf16.msra.mxu1 %v5678_v63  ;;  %v6572_v63 = vld [vmem:[#allocation2 + $0x98] ss:$0 sps:$4 sm:$0x11]   ;;  %v3239_v10 = vld [vmem:[#allocation2 + $0x24] sm:$0xf]  ;;  %v3448_v59 = vshll.u32 %v6611_v24, 16 }
  0xef   : > { %5432 = vmatmul.mubr.bf16.gmra.mxu0 %v2584_v45  ;;  %5459 = vmatprep.subr.bf16.mxu1 %v5691_v0  ;;  %v2595_v39 = vrot.slane %v6572_v63, 1  ;;  %v2371_v45 = vor.u32 %v2370_v20, %v2366_v29  ;;  %v2128_v3 = vld [vmem:[#allocation2 + $0xc4] sm:$0xf]  ;;  %v2160_v23 = vld [vmem:[#allocation2 + $0xc0] sm:$0xe]  ;;  %v3453_v28 = vshll.u32 %v6615_v21, 16 }
  0xf0   : > { %5435 = vmatprep.mubr.bf16.mxu0 %v2587_v57  ;;  %5232 = vmatpush3.bf16.msra.mxu0 %v5680_v58  ;;  %v4748_v57 = vcombine.low %v2158_v35, %v6588_v31  ;;  %v4749_v58 = vcombine.low %v2159_v55, %v6594_v54  ;;  %v6625_v7 = vcombine.low %v2127_v5, %v2128_v3  ;;  %v5685_v33 = vld [vmem:[#allocation2 + $0xc8] ss:$0 sps:$4 sm:$0x11]   ;;  %v2390_v20 = vshrl.u32 %v6600_v60, 16  ;;  %v3285_v5 = vld [vmem:[#allocation2 + $0x18] sm:$0xe] }
  0xf1   : > { %2867 = vmatmul.mubr.bf16.gmra.mxu1 %v6432_v53  ;;  %5233 = vmatprep.subr.bf16.mxu0 %v5687_v52  ;;  %v6576_v53 = vld [vmem:[#allocation2 + $0xa4] ss:$0 sps:$4 sm:$0x11]   ;;  %v2113_v52 = vld [vmem:[#allocation2 + $0x6c] sm:$0xf]  ;;  %v2376_v12 = vsel %vm1197_vm0, %v2371_v45, %v2375_v51  ;;  %v4750_v38 = vcombine.low %v2160_v23, %v2128_v3  ;;  %v2493_v35 = vshll.u32 %v5685_v33, 16 }
  0xf2   : > { %2874 = vmatprep.mubr.bf16.mxu1 %v2352_v1  ;;  %5460 = vmatpush3.bf16.msra.mxu1 %v5691_v0  ;;  %v2598_v50 = vrot.slane %v6576_v53, 1  ;;  %v2596_v0 = vsel %vm1454_vm10, %v2594_v34, %v2595_v39  ;;  %v2392_v1 = vshll.u32 %v6600_v60, 16  ;;  %v2603_v26 = vrot.slane %v4749_v58, 1  ;;  %v2115_v39 = vld [vmem:[#allocation2 + $0x78] sm:$0xf] }
  0xf3   : > { %5461 = vmatprep.subr.bf16.mxu1 %v5696_v17  ;;  %v5693_v56 = vld [vmem:[#allocation2 + $0x2c] ss:$0 sps:$4 sm:$0x11]   ;;  %v2606_v45 = vrot.slane %v4750_v38, 1  ;;  %v2607_v51 = vrot.slane %v5685_v33, 1 }
  0xf4   : > { %5234 = vmatpush3.bf16.msra.mxu0 %v5688_v62  ;;  %v6621_v62 = vld [vmem:[#allocation2 + $0x28] sm:$0xf]  ;;  %v2394_v34 = vrot.slane %v2392_v1, 1  ;;  %v2605_v8 = vsel %vm1454_vm10, %v2603_v26, %v2604_v18  ;;  %v3286_v26 = vld [vmem:[#allocation2 + $0x24] sm:$0xe] }
  0xf5   : > { %v6632_v29 = vcombine.low %v3239_v10, %v6621_v62  ;;  %v4855_v10 = vcombine.low %v3285_v5, %v6597_v30  ;;  %v2608_v3 = vsel %vm1454_vm10, %v2606_v45, %v2607_v51  ;;  %v3287_v30 = vld [vmem:[#allocation2 + $0x30] sm:$0xe] }
  0xf6   : > { %5462 = vmatpush3.bf16.msra.mxu1 %v5696_v17  ;;  %v2600_v17 = vrot.slane %v4748_v57, 1  ;;  %v2495_v57 = vrot.slane %v2493_v35, 1 }
  0xf7   : > { %5436 = vmatmul.mubr.bf16.gmra.mxu0 %v2590_v32  ;;  %5463 = vmatprep.subr.bf16.mxu1 %v5701_v36  ;;  %v6629_v32 = vcombine.low %v2113_v52, %v6480_v61  ;;  %v3446_v61 = vshrl.u32 %v6611_v24, 16  ;;  %v3241_v52 = vld [vmem:[#allocation2 + $0x30] sm:$0xf] }
  0xf8   : > { %5439 = vmatprep.mubr.bf16.mxu0 %v2593_v13  ;;  %v2387_v13 = vrot.slane %v2385_v6, 1  ;;  %v2602_v44 = vsel %vm1454_vm10, %v2600_v17, %v2601_v9  ;;  %v3465_v17 = vshll.u32 %v5693_v56, 16 }
  0xf9   : > { %2875 = vmatmul.mubr.bf16.gmra.mxu1 %v6459_v19  ;;  %v2599_v19 = vsel %vm1454_vm10, %v2597_v42, %v2598_v50  ;;  %v2486_v42 = vshrl.u32 %v6625_v7, 16  ;;  %v2488_v50 = vshll.u32 %v6625_v7, 16  ;;  %v2404_v9 = vshll.u32 %v6629_v32, 16 }
  0xfa   : > { %2882 = vmatprep.mubr.bf16.mxu1 %v2364_v25  ;;  %5464 = vmatpush3.bf16.msra.mxu1 %v5701_v36  ;;  %v2383_v36 = vor.u32 %v2382_v43, %v2378_v14  ;;  %v3450_v25 = vrot.slane %v3448_v59, 1  ;;  %v3242_v14 = vld [vmem:[#allocation2 + $0x34] sm:$0xf]  ;;  %v2395_v43 = vor.u32 %v2394_v34, %v2390_v20  ;;  %v5695_v59 = vld [vmem:[#allocation2 + $0x38] ss:$0 sps:$4 sm:$0x11]   ;;  %v4856_v20 = vcombine.low %v3286_v26, %v6621_v62 }
  0xfb   : > { %5465 = vmatprep.subr.bf16.mxu1 %v5706_v40  ;;  %v4857_v34 = vcombine.low %v3287_v30, %v3242_v14  ;;  %v3467_v35 = vrot.slane %v3465_v17, 1 }
  0xfc   : > { %v2388_v55 = vsel %vm1197_vm0, %v2383_v36, %v2387_v13  ;;  %v3451_v58 = vor.u32 %v3450_v25, %v3446_v61  ;;  %v3705_v13 = vrot.slane %v5693_v56, 1  ;;  %v2406_v61 = vrot.slane %v2404_v9, 1  ;;  %v5698_v25 = vld [vmem:[#allocation2 + $0x44] ss:$0 sps:$4 sm:$0x11]  }
  0xfd   : > { %v3711_v51 = vrot.slane %v5698_v25, 1 }
  0xfe   : > { %5466 = vmatpush3.bf16.msra.mxu1 %v5706_v40  ;;  %v3455_v40 = vrot.slane %v3453_v28, 1 }
  0xff   : > { %5440 = vmatmul.mubr.bf16.gmra.mxu0 %v2596_v0  ;;  %v2490_v0 = vrot.slane %v2488_v50, 1 }
 0x100   : > { %5443 = vmatprep.mubr.bf16.mxu0 %v2599_v19  ;;  %v6644_v19 = vcombine.low %v2115_v39, %v6512_v47  ;;  %v3702_v47 = vrot.slane %v6615_v21, 1  ;;  %v3456_v36 = vsel %vm1197_vm0, %v3451_v58, %v3455_v40  ;;  %v2402_v21 = vshrl.u32 %v6629_v32, 16 }
 0x101   : > { %2883 = vmatmul.mubr.bf16.gmra.mxu1 %v6509_v48  ;;  %v2397_v48 = vshll.u32 %v6488_v2, 16  ;;  %v3460_v2 = vshll.u32 %v6632_v29, 16  ;;  %v2491_v1 = vor.u32 %v2490_v0, %v2486_v42  ;;  %v3704_v40 = vrot.slane %v4856_v20, 1  ;;  %v3243_v0 = vld [vmem:[#allocation2 + $0x3c] sm:$0xf] }
 0x102   : > { %2890 = vmatprep.mubr.bf16.mxu1 %v2376_v12  ;;  %v3458_v12 = vshrl.u32 %v6632_v29, 16  ;;  %v3708_v42 = vrot.slane %v5695_v59, 1 }
 0x103   : > { %v2399_v6 = vrot.slane %v2397_v48, 1  ;;  %v3462_v23 = vrot.slane %v3460_v2, 1  ;;  %v6655_v28 = vsel %vm1197_vm0, %v2491_v1, %v2495_v57  ;;  %v2409_v48 = vshll.u32 %v6502_v22, 16  ;;  %v3244_v22 = vld [vmem:[#allocation2 + $0x40] sm:$0xf] }
 0x104   : > { %v6669_v56 = vsel %vm1454_vm10, %v3704_v40, %v3705_v13  ;;  %v3707_v2 = vrot.slane %v4857_v34, 1  ;;  %v6678_v17 = vcombine.low %v3243_v0, %v3244_v22  ;;  %v3245_v13 = vld [vmem:[#allocation2 + $0x48] sm:$0xf] }
 0x105   : > { %v2400_v50 = vsel %vm1197_vm0, %v2395_v43, %v2399_v6  ;;  %v3463_v62 = vor.u32 %v3462_v23, %v3458_v12  ;;  %v2411_v57 = vrot.slane %v2409_v48, 1  ;;  %v2407_v43 = vor.u32 %v2406_v61, %v2402_v21 }
 0x106   : > { %v6673_v58 = vsel %vm1454_vm10, %v3707_v2, %v3708_v42  ;;  %v2416_v6 = vshll.u32 %v6644_v19, 16  ;;  %v3477_v12 = vshll.u32 %v5695_v59, 16  ;;  %v3482_v30 = vshrl.u32 %v6678_v17, 16 }
 0x107   : > { %5444 = vmatmul.mubr.bf16.gmra.mxu0 %v2602_v44  ;;  %v3701_v44 = vrot.slane %v4855_v10, 1  ;;  %v3468_v9 = vsel %vm1197_vm0, %v3463_v62, %v3467_v35  ;;  %v2412_v10 = vsel %vm1197_vm0, %v2407_v43, %v2411_v57  ;;  %v3489_v48 = vshll.u32 %v5698_v25, 16 }
 0x108   : > { %5447 = vmatprep.mubr.bf16.mxu0 %v2605_v8  ;;  %v3288_v8 = vld [vmem:[#allocation2 + $0x3c] sm:$0xe]  ;;  %v2418_v26 = vrot.slane %v2416_v6, 1  ;;  %v3479_v59 = vrot.slane %v3477_v12, 1  ;;  %v2433_v62 = vshll.u32 %v6540_v46, 16 }
 0x109   : > { %2891 = vmatmul.mubr.bf16.gmra.mxu1 %v6547_v37  ;;  %v6652_v37 = vcombine.low %v3241_v52, %v3242_v14  ;;  %v6664_v39 = vsel %vm1454_vm10, %v3701_v44, %v3702_v47  ;;  %v4858_v45 = vcombine.low %v3288_v8, %v3244_v22  ;;  %v2117_v14 = vld [vmem:[#allocation2 + $0x84] sm:$0xf]  ;;  %v2414_v47 = vshrl.u32 %v6644_v19, 16  ;;  %v2121_v46 = vld [vmem:[#allocation2 + $0x9c] sm:$0xf] }
 0x10a   : > { %2898 = vmatprep.mubr.bf16.mxu1 %v2388_v55  ;;  %v3491_v35 = vrot.slane %v3489_v48, 1 }
 0x10b   : > { %v3472_v55 = vshll.u32 %v6652_v37, 16  ;;  %v3710_v52 = vrot.slane %v4858_v45, 1  ;;  %v3470_v1 = vshrl.u32 %v6652_v37, 16  ;;  %v3247_v45 = vld [vmem:[#allocation2 + $0x54] sm:$0xf] }
 0x10d   : > { %v3474_v5 = vrot.slane %v3472_v55, 1  ;;  %v6709_v55 = vld [vmem:[#allocation2 + $0x50] ss:$0 sps:$4 sm:$0x11]  }
 0x10f   : > { %5448 = vmatmul.mubr.bf16.gmra.mxu0 %v2608_v3  ;;  %v2421_v3 = vshll.u32 %v6522_v41, 16  ;;  %v3475_v23 = vor.u32 %v3474_v5, %v3470_v1 }
 0x110   : > { %3990 = vmatprep.mubr.bf16.mxu0 %v3456_v36  ;;  %v3484_v36 = vshll.u32 %v6678_v17, 16 }
 0x111   : > { %v4963_v18 = vpop.f32.mrf.mxu0  ;;  %2899 = vmatmul.mubr.bf16.gmra.mxu1 %v6569_v27  ;;  %v6681_v27 = vsel %vm1454_vm10, %v3710_v52, %v3711_v51  ;;  %v2423_v44 = vrot.slane %v2421_v3, 1  ;;  %v3480_v41 = vsel %vm1197_vm0, %v3475_v23, %v3479_v59  ;;  %v6717_v51 = vld [vmem:[#allocation2 + $0x58] sm:$0xf]  ;;  %v2435_v52 = vrot.slane %v2433_v62, 1 }
 0x112   : > { %2906 = vmatprep.mubr.bf16.mxu1 %v2400_v50  ;;  %v3486_v21 = vrot.slane %v3484_v36, 1  ;;  %v6724_v5 = vcombine.low %v3247_v45, %v6717_v51  ;;  %v6735_v36 = vld [vmem:[#allocation2 + $0x5c] ss:$0 sps:$4 sm:$0x11]  }
 0x113   : > { %v4964_v33 = vpop.f32.mrf.mxu0 }
 0x114   : > { %v6661_v38 = vadd.f32 %v4964_v33, %v4963_v18  ;;  %v6684_v18 = vcombine.low %v2117_v14, %v6525_v15  ;;  %v6692_v33 = vld [vmem:[#allocation2 + $0x4c] sm:$0xf]  ;;  %v2119_v15 = vld [vmem:[#allocation2 + $0x90] sm:$0xf]  ;;  %v3487_v25 = vor.u32 %v3486_v21, %v3482_v30  ;;  %v6741_v30 = vld [vmem:[#allocation2 + $0x64] sm:$0xf] }
 0x115   : > { %v6698_v34 = vcombine.low %v3245_v13, %v6692_v33  ;;  %v6700_v8 = vpop.f32.mrf.mxu0 }
 0x116   : > { %v2428_v20 = vshll.u32 %v6684_v18, 16  ;;  %v2426_v42 = vshrl.u32 %v6684_v18, 16  ;;  %v3492_v6 = vsel %vm1197_vm0, %v3487_v25, %v3491_v35 }
 0x117   : > { %3991 = vmatmul.mubr.bf16.vlgmr.msra.gmra.mxu0 %v6611_v24  ;;  %v2419_v24 = vor.u32 %v2418_v26, %v2414_v47  ;;  %v3496_v22 = vshll.u32 %v6698_v34, 16  ;;  %v3494_v43 = vshrl.u32 %v6698_v34, 16  ;;  %v6729_v47 = vcombine.low %v2121_v46, %v6566_v16 }
 0x118   : > { %3998 = vmatprep.mubr.bf16.mxu0 %v3468_v9  ;;  %v2430_v50 = vrot.slane %v2428_v20, 1  ;;  %v2445_v26 = vshll.u32 %v6572_v63, 16  ;;  %v3249_v63 = vld [vmem:[#allocation2 + $0x60] sm:$0xf] }
 0x119   : > { %2907 = vmatmul.mubr.bf16.gmra.mxu1 %v6600_v60  ;;  %v6703_v60 = vcombine.low %v2119_v15, %v6556_v11  ;;  %v2424_v40 = vsel %vm1197_vm0, %v2419_v24, %v2423_v44  ;;  %v3498_v9 = vrot.slane %v3496_v22, 1  ;;  %v3508_v44 = vshll.u32 %v6724_v5, 16 }
 0x11a   : > { %2914 = vmatprep.mubr.bf16.mxu1 %v2412_v10  ;;  %v2431_v57 = vor.u32 %v2430_v50, %v2426_v42  ;;  %v2452_v21 = vshll.u32 %v6729_v47, 16  ;;  %v3506_v42 = vshrl.u32 %v6724_v5, 16  ;;  %v3513_v50 = vshll.u32 %v6735_v36, 16 }
 0x11b   : > { %v5035_v61 = vpop.f32.mrf.mxu1  ;;  %v2440_v14 = vshll.u32 %v6703_v60, 16  ;;  %v2438_v23 = vshrl.u32 %v6703_v60, 16  ;;  %v3499_v15 = vor.u32 %v3498_v9, %v3494_v43  ;;  %v3510_v35 = vrot.slane %v3508_v44, 1 }
 0x11c   : > { %v2436_v3 = vsel %vm1197_vm0, %v2431_v57, %v2435_v52  ;;  %v6752_v45 = vcombine.low %v3249_v63, %v6741_v30  ;;  %v2450_v46 = vshrl.u32 %v6729_v47, 16  ;;  %v2454_v43 = vrot.slane %v2452_v21, 1 }
 0x11d   : > { %v5036_v2 = vpop.f32.mrf.mxu1  ;;  %v2442_v59 = vrot.slane %v2440_v14, 1 }
 0x11e   : > { %v6713_v11 = vadd.f32 %v5036_v2, %v5035_v61  ;;  %v2123_v61 = vld [vmem:[#allocation2 + $0xa8] sm:$0xf]  ;;  %v3518_v44 = vshrl.u32 %v6752_v45, 16 }
 0x11f   : > { %3999 = vmatmul.mubr.bf16.gmra.mxu0 %v6632_v29  ;;  %v6715_v29 = vpop.f32.mrf.mxu0  ;;  %v5038_v0 = vpop.f32.mrf.mxu1 }
 0x120   : > { %4006 = vmatprep.mubr.bf16.mxu0 %v3480_v41  ;;  %v2447_v41 = vrot.slane %v2445_v26, 1 }
 0x121   : > { %2915 = vmatmul.mubr.bf16.gmra.mxu1 %v6629_v32  ;;  %v3501_v32 = vshll.u32 %v6709_v55, 16  ;;  %v5039_v1 = vpop.f32.mrf.mxu1 }
 0x122   : > { %2922 = vmatprep.mubr.bf16.mxu1 %v2424_v40  ;;  %v6726_v12 = vadd.f32 %v5039_v1, %v5038_v0  ;;  %v2443_v40 = vor.u32 %v2442_v59, %v2438_v23  ;;  %v6755_v0 = vcombine.low %v2123_v61, %v6588_v31  ;;  %v3515_v1 = vrot.slane %v3513_v50, 1  ;;  %v6769_v23 = vld [vmem:[#allocation2 + $0x70] sm:$0xf] }
 0x123   : > { %v3503_v24 = vrot.slane %v3501_v32, 1  ;;  %v3511_v32 = vor.u32 %v3510_v35, %v3506_v42  ;;  %v3520_v31 = vshll.u32 %v6752_v45, 16  ;;  %v2469_v50 = vshll.u32 %v6602_v49, 16  ;;  %v6787_v35 = vld [vmem:[#allocation2 + $0x74] ss:$0 sps:$4 sm:$0x11]  }
 0x124   : > { %v2448_v14 = vsel %vm1197_vm0, %v2443_v40, %v2447_v41  ;;  %v2462_v40 = vshrl.u32 %v6755_v0, 16 }
 0x127   : > { %4007 = vmatmul.mubr.bf16.gmra.mxu0 %v6652_v37 }
 0x128   : > { %4014 = vmatprep.mubr.bf16.mxu0 %v3492_v6  ;;  %v5041_v20 = vpop.f32.mrf.mxu1  ;;  %v2457_v6 = vshll.u32 %v6576_v53, 16  ;;  %v2125_v53 = vld [vmem:[#allocation2 + $0xb4] sm:$0xf] }
 0x129   : > { %2923 = vmatmul.mubr.bf16.gmra.mxu1 %v6644_v19  ;;  %v3504_v19 = vsel %vm1197_vm0, %v3499_v15, %v3503_v24  ;;  %v2464_v24 = vshll.u32 %v6755_v0, 16 }
 0x12a   : > { %v4969_v10 = vpop.f32.mrf.mxu0  ;;  %2930 = vmatprep.mubr.bf16.mxu1 %v2436_v3  ;;  %v5042_v48 = vpop.f32.mrf.mxu1  ;;  %v3251_v3 = vld [vmem:[#allocation2 + $0x6c] sm:$0xf]  ;;  %v2459_v15 = vrot.slane %v2457_v6, 1 }
 0x12b   : > { %v6746_v62 = vadd.f32 %v5042_v48, %v5041_v20  ;;  %v3516_v20 = vsel %vm1197_vm0, %v3511_v32, %v3515_v1  ;;  %v6776_v41 = vcombine.low %v3251_v3, %v6769_v23  ;;  %v6781_v48 = vcombine.low %v2125_v53, %v6594_v54  ;;  %v3253_v54 = vld [vmem:[#allocation2 + $0x78] sm:$0xf] }
 0x12c   : > { %v4970_v13 = vpop.f32.mrf.mxu0  ;;  %v5044_v22 = vpop.f32.mrf.mxu1  ;;  %v2466_v42 = vrot.slane %v2464_v24, 1  ;;  %v3537_v1 = vshll.u32 %v6787_v35, 16 }
 0x12d   : > { %v6738_v16 = vadd.f32 %v4970_v13, %v4969_v10  ;;  %v6763_v10 = vld [vmem:[#allocation2 + $0x68] ss:$0 sps:$4 sm:$0x11]   ;;  %v2455_v13 = vor.u32 %v2454_v43, %v2450_v46  ;;  %v6791_v46 = vld [vmem:[#allocation2 + $0x7c] sm:$0xf]  ;;  %v3530_v49 = vshrl.u32 %v6776_v41, 16 }
 0x12e   : > { %v4972_v37 = vpop.f32.mrf.mxu0  ;;  %v5045_v57 = vpop.f32.mrf.mxu1  ;;  %v3525_v63 = vshll.u32 %v6763_v10, 16 }
 0x12f   : > { %4015 = vmatmul.mubr.bf16.gmra.mxu0 %v6678_v17  ;;  %v6761_v9 = vadd.f32 %v5045_v57, %v5044_v22  ;;  %v2460_v61 = vsel %vm1197_vm0, %v2455_v13, %v2459_v15  ;;  %v3532_v22 = vshll.u32 %v6776_v41, 16  ;;  %v2467_v57 = vor.u32 %v2466_v42, %v2462_v40 }
 0x130   : > { %v4973_v25 = vpop.f32.mrf.mxu0  ;;  %4022 = vmatprep.mubr.bf16.mxu0 %v3504_v19  ;;  %v3527_v19 = vrot.slane %v3525_v63, 1  ;;  %v2481_v13 = vshll.u32 %v6606_v4, 16 }
 0x131   : > { %v6749_v2 = vadd.f32 %v4973_v25, %v4972_v37  ;;  %2931 = vmatmul.mubr.bf16.gmra.mxu1 %v6684_v18  ;;  %v3522_v37 = vrot.slane %v3520_v31, 1  ;;  %v3534_v32 = vrot.slane %v3532_v22, 1  ;;  %v6798_v31 = vcombine.low %v3253_v54, %v6791_v46 }
 0x132   : > { %v4975_v52 = vpop.f32.mrf.mxu0  ;;  %2938 = vmatprep.mubr.bf16.mxu1 %v2448_v14  ;;  %v2476_v14 = vshll.u32 %v6781_v48, 16  ;;  %v2483_v4 = vrot.slane %v2481_v13, 1 }
 0x133   : > { %v3523_v25 = vor.u32 %v3522_v37, %v3518_v44  ;;  %v3535_v24 = vor.u32 %v3534_v32, %v3530_v49  ;;  %v3539_v44 = vrot.slane %v3537_v1, 1  ;;  %v6806_v37 = vld [vmem:[#allocation2 + $0x80] ss:$0 sps:$4 sm:$0x11]   ;;  %v3544_v63 = vshll.u32 %v6798_v31, 16 }
 0x134   : > { %v4976_v26 = vpop.f32.mrf.mxu0  ;;  %v2478_v53 = vrot.slane %v2476_v14, 1 }
 0x135   : > { %v6767_v17 = vadd.f32 %v4976_v26, %v4975_v52  ;;  %v2471_v52 = vrot.slane %v2469_v50, 1  ;;  %v3528_v43 = vsel %vm1197_vm0, %v3523_v25, %v3527_v19  ;;  %v3542_v25 = vshrl.u32 %v6798_v31, 16 }
 0x136   : > { %v4978_v59 = vpop.f32.mrf.mxu0  ;;  %v3540_v19 = vsel %vm1197_vm0, %v3535_v24, %v3539_v44  ;;  %v3546_v54 = vrot.slane %v3544_v63, 1 }
 0x137   : > { %4023 = vmatmul.mubr.bf16.gmra.mxu0 %v6698_v34  ;;  %v2472_v3 = vsel %vm1197_vm0, %v2467_v57, %v2471_v52 }
 0x138   : > { %v4979_v18 = vpop.f32.mrf.mxu0  ;;  %4030 = vmatprep.mubr.bf16.mxu0 %v3516_v20  ;;  %v3547_v1 = vor.u32 %v3546_v54, %v3542_v25 }
 0x139   : > { %v6778_v21 = vadd.f32 %v4979_v18, %v4978_v59  ;;  %2939 = vmatmul.mubr.bf16.gmra.mxu1 %v6703_v60  ;;  %v2474_v59 = vshrl.u32 %v6781_v48, 16  ;;  %v3255_v18 = vld [vmem:[#allocation2 + $0x84] sm:$0xf] }
 0x13a   : > { %2946 = vmatprep.mubr.bf16.mxu1 %v2460_v61  ;;  %v6812_v61 = vld [vmem:[#allocation2 + $0x88] sm:$0xf] }
 0x13b   : > { %v2479_v42 = vor.u32 %v2478_v53, %v2474_v59  ;;  %v3257_v53 = vld [vmem:[#allocation2 + $0x90] sm:$0xf] }
 0x13d   : > { %v5047_v34 = vpop.f32.mrf.mxu1  ;;  %v2484_v14 = vsel %vm1197_vm0, %v2479_v42, %v2483_v4  ;;  %v6844_v4 = vld [vmem:[#allocation2 + $0x98] ss:$0 sps:$4 sm:$0x11]  }
 0x13f   : > { %v5048_v6 = vpop.f32.mrf.mxu1  ;;  %4031 = vmatmul.mubr.bf16.gmra.mxu0 %v6724_v5 }
 0x140   : > { %v6800_v60 = vadd.f32 %v5048_v6, %v5047_v34  ;;  %4038 = vmatprep.mubr.bf16.mxu0 %v3528_v43  ;;  %v3549_v34 = vshll.u32 %v6806_v37, 16  ;;  %v6824_v6 = vld [vmem:[#allocation2 + $0x8c] ss:$0 sps:$4 sm:$0x11]  }
 0x141   : > { %v5050_v26 = vpop.f32.mrf.mxu1  ;;  %v4981_v20 = vpop.f32.mrf.mxu0  ;;  %2947 = vmatmul.mubr.bf16.gmra.mxu1 %v6729_v47  ;;  %v6818_v47 = vcombine.low %v3255_v18, %v6812_v61  ;;  %v3561_v24 = vshll.u32 %v6824_v6, 16 }
 0x142   : > { %2954 = vmatprep.mubr.bf16.mxu1 %v2472_v3 }
 0x143   : > { %v5051_v15 = vpop.f32.mrf.mxu1  ;;  %v4982_v40 = vpop.f32.mrf.mxu0  ;;  %v3556_v3 = vshll.u32 %v6818_v47, 16  ;;  %v3563_v54 = vrot.slane %v3561_v24, 1 }
 0x144   : > { %v6810_v5 = vadd.f32 %v5051_v15, %v5050_v26  ;;  %v4983_v50 = vadd.f32 %v4982_v40, %v4981_v20  ;;  %v3551_v26 = vrot.slane %v3549_v34, 1  ;;  %v3554_v15 = vshrl.u32 %v6818_v47, 16 }
 0x145   : > { %v4984_v22 = vpop.f32.mrf.mxu0  ;;  %v5053_v57 = vpop.f32.mrf.mxu1  ;;  %v3558_v63 = vrot.slane %v3556_v3, 1  ;;  %v3573_v3 = vshll.u32 %v6844_v4, 16 }
 0x146   : > { %v3552_v20 = vsel %vm1197_vm0, %v3547_v1, %v3551_v26 }
 0x147   : > { %4039 = vmatmul.mubr.bf16.gmra.mxu0 %v6752_v45  ;;  %v4985_v52 = vpop.f32.mrf.mxu0  ;;  %v5054_v49 = vpop.f32.mrf.mxu1  ;;  %v6830_v45 = vld [vmem:[#allocation2 + $0x94] sm:$0xf] }
 0x148   : > { %4046 = vmatprep.mubr.bf16.mxu0 %v3540_v19  ;;  %v6822_v43 = vadd.f32 %v4985_v52, %v4984_v22  ;;  %v6826_v32 = vadd.f32 %v5054_v49, %v5053_v57  ;;  %v6838_v18 = vcombine.low %v3257_v53, %v6830_v45  ;;  %v3559_v22 = vor.u32 %v3558_v63, %v3554_v15  ;;  %v3259_v52 = vld [vmem:[#allocation2 + $0x9c] sm:$0xf] }
 0x149   : > { %2955 = vmatmul.mubr.bf16.gmra.mxu1 %v6755_v0  ;;  %v5056_v59 = vpop.f32.mrf.mxu1 }
 0x14a   : > { %2962 = vmatprep.mubr.bf16.mxu1 %v2484_v14  ;;  %v3568_v34 = vshll.u32 %v6838_v18, 16  ;;  %v3566_v26 = vshrl.u32 %v6838_v18, 16  ;;  %v3564_v53 = vsel %vm1197_vm0, %v3559_v22, %v3563_v54 }
 0x14b   : > { %v5057_v13 = vpop.f32.mrf.mxu1 }
 0x14c   : > { %v6834_v44 = vadd.f32 %v5057_v13, %v5056_v59  ;;  %v3570_v13 = vrot.slane %v3568_v34, 1  ;;  %v6877_v34 = vld [vmem:[#allocation2 + $0xac] sm:$0xf] }
 0x14d   : > { %v5373_v40 = vpop.f32.mrf.mxu1 }
 0x14e   : > { %v6842_v0 = vadd.f32 %v5373_v40, %v6738_v16  ;;  %v4968_v16 = vadd.f32 %v6715_v29, %v6700_v8 }
 0x14f   : > { %4047 = vmatmul.mubr.bf16.gmra.mxu0 %v6776_v41  ;;  %v1906_v42 = vpop.f32.mrf.mxu1  ;;  %v6851_v41 = vld [vmem:[#allocation2 + $0xa0] sm:$0xf] }
 0x150   : > { %4054 = vmatprep.mubr.bf16.mxu0 %v3552_v20  ;;  %v4987_v25 = vpop.f32.mrf.mxu0  ;;  %v6847_v19 = vadd.f32 %v6661_v38, %v1906_v42  ;;  %v6865_v8 = vcombine.low %v3259_v52, %v6851_v41  ;;  %v6870_v20 = vld [vmem:[#allocation2 + $0xa4] ss:$0 sps:$4 sm:$0x11]   ;;  %v3571_v42 = vor.u32 %v3570_v13, %v3566_v26 }
 0x151   : > { %2963 = vmatmul.mubr.bf16.gmra.mxu1 %v6781_v48  ;;  %v5374_v57 = vpop.f32.mrf.mxu1 }
 0x152   : > { %2970 = vmatprep.mubr.bf16.mxu1 %v6655_v28  ;;  %v4988_v14 = vpop.f32.mrf.mxu0  ;;  %v6857_v49 = vadd.f32 %v5374_v57, %v6749_v2  ;;  %v3580_v22 = vshll.u32 %v6865_v8, 16 }
 0x153   : > { %v4989_v38 = vadd.f32 %v4988_v14, %v4987_v25  ;;  %v1909_v1 = vpop.f32.mrf.mxu1  ;;  %v3575_v25 = vrot.slane %v3573_v3, 1  ;;  %v3585_v14 = vshll.u32 %v6870_v20, 16  ;;  %v3289_v3 = vld [vmem:[#allocation2 + $0x48] sm:$0xe] }
 0x154   : > { %v4990_v48 = vpop.f32.mrf.mxu0  ;;  %v6861_v59 = vadd.f32 %v4968_v16, %v1909_v1 }
 0x155   : > { %v5377_v28 = vpop.f32.mrf.mxu1 }
 0x156   : > { %v4991_v29 = vpop.f32.mrf.mxu0  ;;  %v6868_v2 = vadd.f32 %v5377_v28, %v4983_v50 }
 0x157   : > { %4055 = vmatmul.mubr.bf16.gmra.mxu0 %v6798_v31  ;;  %v4992_v15 = vadd.f32 %v4991_v29, %v4990_v48  ;;  %v1922_v24 = vpop.f32.mrf.mxu1  ;;  %v3261_v31 = vld [vmem:[#allocation2 + $0xa8] sm:$0xf]  ;;  %v3582_v48 = vrot.slane %v3580_v22, 1  ;;  %v4859_v29 = vcombine.low %v3289_v3, %v6692_v33 }
 0x158   : > { %4062 = vmatprep.mubr.bf16.mxu0 %v3564_v53  ;;  %v4993_v63 = vpop.f32.mrf.mxu0  ;;  %v6873_v40 = vadd.f32 %v6767_v17, %v1922_v24  ;;  %v3578_v17 = vshrl.u32 %v6865_v8, 16 }
 0x159   : > { %2971 = vmatmul.mubr.bf16.gmra.mxu1 %v6625_v7  ;;  %v5378_v54 = vpop.f32.mrf.mxu1  ;;  %v3576_v7 = vsel %vm1197_vm0, %v3571_v42, %v3575_v25  ;;  %v3587_v25 = vrot.slane %v3585_v14, 1  ;;  %v3713_v33 = vrot.slane %v4859_v29, 1 }
 0x15a   : > { %5467 = vmatprep.mubr.bf16.mxu1 %v6664_v39  ;;  %v4994_v50 = vpop.f32.mrf.mxu0  ;;  %v6881_v57 = vadd.f32 %v5378_v54, %v6822_v43  ;;  %v6890_v39 = vcombine.low %v3261_v31, %v6877_v34  ;;  %v3583_v42 = vor.u32 %v3582_v48, %v3578_v17  ;;  %v6902_v31 = vld [vmem:[#allocation2 + $0xb8] sm:$0xf] }
 0x15b   : > { %v4995_v52 = vadd.f32 %v4994_v50, %v4993_v63  ;;  %v1925_v16 = vpop.f32.mrf.mxu1 }
 0x15c   : > { %v4996_v1 = vpop.f32.mrf.mxu0  ;;  %v6886_v26 = vadd.f32 %v6778_v21, %v1925_v16  ;;  %v6896_v21 = vld [vmem:[#allocation2 + $0xb0] ss:$0 sps:$4 sm:$0x11]   ;;  %v3592_v22 = vshll.u32 %v6890_v39, 16  ;;  %v3290_v16 = vld [vmem:[#allocation2 + $0x54] sm:$0xe] }
 0x15d   : > { %v3590_v17 = vshrl.u32 %v6890_v39, 16  ;;  %v3597_v14 = vshll.u32 %v6896_v21, 16 }
 0x15e   : > { %v5381_v53 = vpop.f32.mrf.mxu1  ;;  %v4997_v43 = vpop.f32.mrf.mxu0  ;;  %v3594_v3 = vrot.slane %v3592_v22, 1 }
 0x15f   : > { %4063 = vmatmul.mubr.bf16.gmra.mxu0 %v6818_v47  ;;  %v6893_v13 = vadd.f32 %v5381_v53, %v4995_v52  ;;  %v4998_v28 = vadd.f32 %v4997_v43, %v4996_v1  ;;  %v3263_v47 = vld [vmem:[#allocation2 + $0xb4] sm:$0xf]  ;;  %v3714_v52 = vrot.slane %v6709_v55, 1  ;;  %v4860_v55 = vcombine.low %v3290_v16, %v6717_v51 }
 0x160   : > { %4070 = vmatprep.mubr.bf16.mxu0 %v3576_v7  ;;  %v1938_v24 = vpop.f32.mrf.mxu1  ;;  %v3291_v7 = vld [vmem:[#allocation2 + $0x60] sm:$0xe]  ;;  %v6914_v48 = vcombine.low %v3263_v47, %v6902_v31  ;;  %v3717_v47 = vrot.slane %v6735_v36, 1  ;;  %v3720_v16 = vrot.slane %v6763_v10, 1 }
 0x161   : > { %v6898_v63 = vadd.f32 %v4989_v38, %v1938_v24  ;;  %5468 = vmatmul.mubr.bf16.vlgmr.msra.gmra.mxu1 %v6669_v56  ;;  %v3588_v56 = vsel %vm1197_vm0, %v3583_v42, %v3587_v25  ;;  %v3715_v53 = vsel %vm1454_vm10, %v3713_v33, %v3714_v52  ;;  %v3595_v24 = vor.u32 %v3594_v3, %v3590_v17  ;;  %v3293_v3 = vld [vmem:[#allocation2 + $0x78] sm:$0xe] }
 0x162   : > { %v5382_v54 = vpop.f32.mrf.mxu1  ;;  %5471 = vmatprep.mubr.bf16.mxu1 %v6673_v58  ;;  %v3599_v42 = vrot.slane %v3597_v14, 1  ;;  %v3604_v25 = vshll.u32 %v6914_v48, 16  ;;  %v3716_v51 = vrot.slane %v4860_v55, 1  ;;  %v3602_v17 = vshrl.u32 %v6914_v48, 16 }
 0x163   : > { %v6905_v50 = vadd.f32 %v5382_v54, %v4998_v28  ;;  %v4861_v28 = vcombine.low %v3291_v7, %v6741_v30  ;;  %v3265_v54 = vld [vmem:[#allocation2 + $0xc0] sm:$0xf] }
 0x164   : > { %v1941_v38 = vpop.f32.mrf.mxu1  ;;  %v3600_v7 = vsel %vm1197_vm0, %v3595_v24, %v3599_v42  ;;  %v4863_v24 = vcombine.low %v3293_v3, %v6791_v46  ;;  %v6941_v42 = vld [vmem:[#allocation2 + $0xc8] ss:$0 sps:$4 sm:$0x11]   ;;  %v3294_v3 = vld [vmem:[#allocation2 + $0x84] sm:$0xe] }
 0x165   : > { %v6910_v1 = vadd.f32 %v4992_v15, %v1941_v38  ;;  %v6920_v15 = vld [vmem:[#allocation2 + $0xbc] ss:$0 sps:$4 sm:$0x11]   ;;  %v3719_v30 = vrot.slane %v4861_v28, 1  ;;  %v3292_v38 = vld [vmem:[#allocation2 + $0x6c] sm:$0xe] }
 0x166   : > { %v4999_v58 = vpop.f32.mrf.mxu0  ;;  %v3609_v14 = vshll.u32 %v6920_v15, 16  ;;  %v4862_v10 = vcombine.low %v3292_v38, %v6769_v23  ;;  %v6946_v23 = vld [vmem:[#allocation2 + $0xd0] sm:$0xf] }
 0x167   : > { %4071 = vmatmul.mubr.bf16.gmra.mxu0 %v6838_v18  ;;  %v6924_v18 = vld [vmem:[#allocation2 + $0xc4] sm:$0xf] }
 0x168   : > { %v5000_v43 = vpop.f32.mrf.mxu0  ;;  %4078 = vmatprep.mubr.bf16.mxu0 %v3588_v56  ;;  %v6932_v55 = vcombine.low %v3265_v54, %v6924_v18 }
 0x169   : > { %v5001_v29 = vadd.f32 %v5000_v43, %v4999_v58  ;;  %5472 = vmatmul.mubr.bf16.gmra.mxu1 %v6681_v27  ;;  %v3606_v58 = vrot.slane %v3604_v25, 1 }
 0x16a   : > { %v5002_v22 = vpop.f32.mrf.mxu0  ;;  %5475 = vmatprep.mubr.bf16.mxu1 %v3715_v53  ;;  %v5385_v33 = vpop.f32.mrf.mxu1  ;;  %v3718_v53 = vsel %vm1454_vm10, %v3716_v51, %v3717_v47 }
 0x16c   : > { %v5003_v52 = vpop.f32.mrf.mxu0  ;;  %v1954_v27 = vpop.f32.mrf.mxu1 }
 0x16d   : > { %v5004_v56 = vadd.f32 %v5003_v52, %v5002_v22  ;;  %v6934_v36 = vadd.f32 %v5001_v29, %v1954_v27  ;;  %v3721_v22 = vsel %vm1454_vm10, %v3719_v30, %v3720_v16  ;;  %v3607_v52 = vor.u32 %v3606_v58, %v3602_v17 }
 0x16e   : > { %v5386_v28 = vpop.f32.mrf.mxu1  ;;  %v3611_v29 = vrot.slane %v3609_v14, 1  ;;  %v3616_v27 = vshll.u32 %v6932_v55, 16  ;;  %v3722_v30 = vrot.slane %v4862_v10, 1  ;;  %v3723_v16 = vrot.slane %v6787_v35, 1 }
 0x16f   : > { %7471 = vst [vmem:[#allocation4_spill] sm:$0xff] %v6934_v36  ;;  %v5005_v43 = vpop.f32.mrf.mxu0  ;;  %4079 = vmatmul.mubr.bf16.gmra.mxu0 %v6865_v8  ;;  %v3267_v8 = vld [vmem:[#allocation2 + $0xcc] sm:$0xf]  ;;  %v3725_v17 = vrot.slane %v4863_v24, 1  ;;  %v3726_v14 = vrot.slane %v6806_v37, 1  ;;  %v3621_v58 = vshll.u32 %v6941_v42, 16  ;;  %v4864_v37 = vcombine.low %v3294_v3, %v6812_v61 }
 0x170   : > { %4086 = vmatprep.mubr.bf16.mxu0 %v3600_v7  ;;  %v1957_v54 = vpop.f32.mrf.mxu1  ;;  %v3614_v10 = vshrl.u32 %v6932_v55, 16  ;;  %v6958_v35 = vcombine.low %v3267_v8, %v6946_v23  ;;  %v6967_v36 = vld [vmem:[#allocation2 + $0xd4] ss:$0 sps:$4 sm:$0x11]   ;;  %v3729_v61 = vrot.slane %v6824_v6, 1 }
 0x171   : > { %v5006_v25 = vpop.f32.mrf.mxu0  ;;  %5476 = vmatmul.mubr.bf16.gmra.mxu1 %v3718_v53  ;;  %v6944_v47 = vadd.f32 %v5004_v56, %v1957_v54  ;;  %v3623_v8 = vrot.slane %v3621_v58, 1 }
 0x172   : > { %v5007_v51 = vadd.f32 %v5006_v25, %v5005_v43  ;;  %5479 = vmatprep.mubr.bf16.mxu1 %v3721_v22  ;;  %v6949_v38 = vpop.f32.mrf.mxu1  ;;  %v3612_v43 = vsel %vm1197_vm0, %v3607_v52, %v3611_v29  ;;  %v3295_v25 = vld [vmem:[#allocation2 + $0x90] sm:$0xe]  ;;  %v3618_v22 = vrot.slane %v3616_v27, 1 }
 0x173   : > { %7472 = vst [vmem:[#allocation5_spill] sm:$0xff] %v6944_v47  ;;  %v5008_v46 = vpop.f32.mrf.mxu0  ;;  %v4865_v52 = vcombine.low %v3295_v25, %v6830_v45  ;;  %v3732_v45 = vrot.slane %v6844_v4, 1  ;;  %v3626_v25 = vshrl.u32 %v6958_v35, 16 }
 0x174   : > { %v6951_v7 = vadd.f32 %v5385_v33, %v5007_v51  ;;  %v1970_v53 = vpop.f32.mrf.mxu1  ;;  %v3724_v33 = vsel %vm1454_vm10, %v3722_v30, %v3723_v16  ;;  %v3619_v47 = vor.u32 %v3618_v22, %v3614_v10  ;;  %v3628_v30 = vshll.u32 %v6958_v35, 16 }
 0x175   : > { %v5009_v56 = vpop.f32.mrf.mxu0 }
 0x176   : > { %7473 = vst [vmem:[#allocation6_spill] sm:$0xff] %v6951_v7  ;;  %v5010_v54 = vadd.f32 %v5009_v56, %v5008_v46  ;;  %v3727_v7 = vsel %vm1454_vm10, %v3725_v17, %v3726_v14  ;;  %v5390_v27 = vpop.f32.mrf.mxu1  ;;  %v3731_v17 = vrot.slane %v4865_v52, 1  ;;  %v3296_v14 = vld [vmem:[#allocation2 + $0x9c] sm:$0xe]  ;;  %v3624_v58 = vsel %vm1197_vm0, %v3619_v47, %v3623_v8 }
 0x177   : > { %v5011_v24 = vpop.f32.mrf.mxu0  ;;  %4087 = vmatmul.mubr.bf16.gmra.mxu0 %v6890_v39  ;;  %v3728_v39 = vrot.slane %v4864_v37, 1  ;;  %v3630_v10 = vrot.slane %v3628_v30, 1  ;;  %v3735_v30 = vrot.slane %v6870_v20, 1 }
 0x178   : > { %v6963_v51 = vadd.f32 %v5386_v28, %v5010_v54  ;;  %4094 = vmatprep.mubr.bf16.mxu0 %v3612_v43  ;;  %v1973_v56 = vpop.f32.mrf.mxu1  ;;  %v3297_v43 = vld [vmem:[#allocation2 + $0xa8] sm:$0xe] }
 0x179   : > { %v5012_v29 = vpop.f32.mrf.mxu0  ;;  %5480 = vmatmul.mubr.bf16.gmra.mxu1 %v3724_v33  ;;  %v3730_v6 = vsel %vm1454_vm10, %v3728_v39, %v3729_v61  ;;  %v3733_v33 = vsel %vm1454_vm10, %v3731_v17, %v3732_v45  ;;  %v4867_v47 = vcombine.low %v3297_v43, %v6877_v34  ;;  %v3631_v37 = vor.u32 %v3630_v10, %v3626_v25  ;;  %v3298_v61 = vld [vmem:[#allocation2 + $0xb4] sm:$0xe]  ;;  %v3299_v17 = vld [vmem:[#allocation2 + $0xc0] sm:$0xe] }
 0x17a   : > { %v5013_v16 = vadd.f32 %v5012_v29, %v5011_v24  ;;  %5483 = vmatprep.mubr.bf16.mxu1 %v3727_v7  ;;  %v3633_v7 = vshll.u32 %v6967_v36, 16  ;;  %v3738_v39 = vrot.slane %v6896_v21, 1  ;;  %v4868_v20 = vcombine.low %v3298_v61, %v6902_v31 }
 0x17b   : > { %v5014_v28 = vpop.f32.mrf.mxu0  ;;  %v4869_v21 = vcombine.low %v3299_v17, %v6924_v18  ;;  %v3744_v31 = vrot.slane %v6941_v42, 1 }
 0x17c   : > { %v6971_v46 = vadd.f32 %v5013_v16, %v1970_v53  ;;  %v4866_v53 = vcombine.low %v3296_v14, %v6851_v41  ;;  %v3635_v52 = vrot.slane %v3633_v7, 1  ;;  %v3737_v41 = vrot.slane %v4867_v47, 1 }
 0x17d   : > { %v5015_v3 = vpop.f32.mrf.mxu0  ;;  %v3740_v10 = vrot.slane %v4868_v20, 1  ;;  %v3741_v7 = vrot.slane %v6920_v15, 1 }
 0x17e   : > { %v5016_v22 = vadd.f32 %v5015_v3, %v5014_v28  ;;  %v3734_v8 = vrot.slane %v4866_v53, 1  ;;  %v3636_v34 = vsel %vm1197_vm0, %v3631_v37, %v3635_v52 }
 0x17f   : > { %v5017_v54 = vpop.f32.mrf.mxu0  ;;  %4095 = vmatmul.mubr.bf16.gmra.mxu0 %v6914_v48  ;;  %v3742_v18 = vsel %vm1454_vm10, %v3740_v10, %v3741_v7 }
 0x180   : > { %v6980_v4 = vadd.f32 %v5016_v22, %v1973_v56  ;;  %4102 = vmatprep.mubr.bf16.mxu0 %v3624_v58  ;;  %v3736_v14 = vsel %vm1454_vm10, %v3734_v8, %v3735_v30 }
 0x181   : > { %v5018_v24 = vpop.f32.mrf.mxu0  ;;  %5484 = vmatmul.mubr.bf16.gmra.mxu1 %v3730_v6 }
 0x182   : > { %v5019_v29 = vadd.f32 %v5018_v24, %v5017_v54  ;;  %5487 = vmatprep.mubr.bf16.mxu1 %v3733_v33 }
 0x183   : > { %v5020_v16 = vpop.f32.mrf.mxu0 }
 0x184   : > { %v6986_v48 = vadd.f32 %v6949_v38, %v5019_v29  ;;  %v3739_v38 = vsel %vm1454_vm10, %v3737_v41, %v3738_v39  ;;  %v3747_v39 = vrot.slane %v6967_v36, 1 }
 0x185   : > { %v5021_v28 = vpop.f32.mrf.mxu0 }
 0x186   : > { %v5022_v45 = vadd.f32 %v5021_v28, %v5020_v16 }
 0x187   : > { %v5023_v3 = vpop.f32.mrf.mxu0  ;;  %4103 = vmatmul.mubr.bf16.gmra.mxu0 %v6932_v55  ;;  %v3743_v55 = vrot.slane %v4869_v21, 1 }
 0x188   : > { %v6993_v56 = vadd.f32 %v5390_v27, %v5022_v45  ;;  %4110 = vmatprep.mubr.bf16.mxu0 %v3636_v34  ;;  %v3300_v27 = vld [vmem:[#allocation2 + $0xcc] sm:$0xe] }
 0x189   : > { %v5024_v58 = vpop.f32.mrf.mxu0  ;;  %v5393_v43 = vpop.f32.mrf.mxu1  ;;  %5488 = vmatmul.mubr.bf16.gmra.mxu1 %v3736_v14  ;;  %v4870_v37 = vcombine.low %v3300_v27, %v6946_v23  ;;  %v3745_v15 = vsel %vm1454_vm10, %v3743_v55, %v3744_v31 }
 0x18a   : > { %v5025_v25 = vadd.f32 %v5024_v58, %v5023_v3  ;;  %5491 = vmatprep.mubr.bf16.mxu1 %v3739_v38 }
 0x18b   : > { %v5026_v22 = vpop.f32.mrf.mxu0  ;;  %v1986_v6 = vpop.f32.mrf.mxu1  ;;  %v3746_v41 = vrot.slane %v4870_v37, 1 }
 0x18c   : > { %v6999_v54 = vadd.f32 %v5025_v25, %v1986_v6 }
 0x18d   : > { %v5027_v53 = vpop.f32.mrf.mxu0  ;;  %v5394_v33 = vpop.f32.mrf.mxu1 }
 0x18e   : > { %v5028_v47 = vadd.f32 %v5027_v53, %v5026_v22 }
 0x18f   : > { %v5029_v24 = vpop.f32.mrf.mxu0  ;;  %4111 = vmatmul.mubr.bf16.gmra.mxu0 %v6958_v35  ;;  %v1989_v52 = vpop.f32.mrf.mxu1 }
 0x190   : > { %v7005_v29 = vadd.f32 %v5028_v47, %v1989_v52 }
 0x191   : > { %v5030_v8 = vpop.f32.mrf.mxu0  ;;  %v5397_v42 = vpop.f32.mrf.mxu1  ;;  %5492 = vmatmul.mubr.bf16.gmra.mxu1 %v3742_v18 }
 0x192   : > { %v5031_v30 = vadd.f32 %v5030_v8, %v5029_v24  ;;  %v7008_v16 = vadd.f32 %v5397_v42, %v6746_v62  ;;  %5495 = vmatprep.mubr.bf16.mxu1 %v3745_v15  ;;  %v3748_v62 = vsel %vm1454_vm10, %v3746_v41, %v3747_v39 }
 0x193   : > { %v5032_v61 = vpop.f32.mrf.mxu0  ;;  %v2002_v35 = vpop.f32.mrf.mxu1 }
 0x194   : > { %v7011_v28 = vadd.f32 %v5393_v43, %v5031_v30  ;;  %v7014_v23 = vadd.f32 %v6713_v11, %v2002_v35 }
 0x195   : > { %v5033_v34 = vpop.f32.mrf.mxu0  ;;  %v5398_v17 = vpop.f32.mrf.mxu1 }
 0x196   : > { %v5034_v45 = vadd.f32 %v5033_v34, %v5032_v61  ;;  %v7017_v14 = vadd.f32 %v5398_v17, %v6761_v9 }
 0x197   : > { %v5421_v3 = vpop.f32.mrf.mxu0  ;;  %v2005_v20 = vpop.f32.mrf.mxu1 }
 0x198   : > { %v7020_v38 = vadd.f32 %v5394_v33, %v5034_v45  ;;  %v7023_v36 = vadd.f32 %v6726_v12, %v2005_v20 }
 0x199   : > { %v3013_v21 = vpop.f32.mrf.mxu0  ;;  %v5401_v58 = vpop.f32.mrf.mxu1  ;;  %5496 = vmatmul.mubr.bf16.gmra.mxu1 %v3748_v62 }
 0x19a   : > { %v7026_v11 = vadd.f32 %v5401_v58, %v6826_v32 }
 0x19b   : > { %v5422_v43 = vpop.f32.mrf.mxu0  ;;  %v2018_v25 = vpop.f32.mrf.mxu1 }
 0x19c   : > { %7474 = vst [vmem:[#allocation7_spill] sm:$0xff] %v7026_v11  ;;  %v7029_v9 = vadd.f32 %v6800_v60, %v2018_v25 }
 0x19d   : > { %v3016_v10 = vpop.f32.mrf.mxu0  ;;  %v5402_v7 = vpop.f32.mrf.mxu1 }
 0x19e   : > { %v7032_v22 = vadd.f32 %v5402_v7, %v6834_v44 }
 0x19f   : > { %v5425_v6 = vpop.f32.mrf.mxu0  ;;  %v2021_v55 = vpop.f32.mrf.mxu1 }
 0x1a0   : > { %7475 = vst [vmem:[#allocation8_spill] sm:$0xff] %v7032_v22  ;;  %v7035_v12 = vadd.f32 %v6810_v5, %v2021_v55 }
 0x1a1   : > { %v3029_v31 = vpop.f32.mrf.mxu0  ;;  %v5099_v27 = vpop.f32.mrf.mxu1 }
 0x1a3   : > { %v5426_v53 = vpop.f32.mrf.mxu0  ;;  %v5100_v32 = vpop.f32.mrf.mxu1 }
 0x1a4   : > { %v5101_v33 = vadd.f32 %v5100_v32, %v5099_v27 }
 0x1a5   : > { %v3032_v47 = vpop.f32.mrf.mxu0  ;;  %v5102_v18 = vpop.f32.mrf.mxu1 }
 0x1a6   : > { %v3014_v24 = vadd.f32 %v5101_v33, %v3013_v21 }
 0x1a7   : > { %v7037_v60 = vpop.f32.mrf.mxu0  ;;  %v5103_v37 = vpop.f32.mrf.mxu1 }
 0x1a8   : > { %v7040_v52 = vadd.f32 %v3014_v24, %v6847_v19  ;;  %v5104_v44 = vadd.f32 %v5103_v37, %v5102_v18 }
 0x1a9   : > { %v3045_v15 = vpop.f32.mrf.mxu0  ;;  %v5105_v8 = vpop.f32.mrf.mxu1 }
 0x1aa   : > { %v3017_v42 = vadd.f32 %v5104_v44, %v3016_v10 }
 0x1ab   : > { %v7042_v5 = vpop.f32.mrf.mxu0  ;;  %v5106_v30 = vpop.f32.mrf.mxu1 }
 0x1ac   : > { %v7045_v41 = vadd.f32 %v3017_v42, %v6861_v59  ;;  %v5107_v39 = vadd.f32 %v5106_v30, %v5105_v8 }
 0x1ad   : > { %v3048_v61 = vpop.f32.mrf.mxu0  ;;  %v5108_v35 = vpop.f32.mrf.mxu1 }
 0x1ae   : > { %v3022_v34 = vadd.f32 %v5421_v3, %v5107_v39 }
 0x1af   : > { %v7047_v17 = vpop.f32.mrf.mxu0  ;;  %v5109_v45 = vpop.f32.mrf.mxu1 }
 0x1b0   : > { %v5110_v62 = vadd.f32 %v5109_v45, %v5108_v35  ;;  %v7052_v20 = vadd.f32 %v3022_v34, %v6842_v0 }
 0x1b1   : > { %v7049_v19 = vpop.f32.mrf.mxu0  ;;  %v5111_v21 = vpop.f32.mrf.mxu1 }
 0x1b2   : > { %v3025_v58 = vadd.f32 %v5422_v43, %v5110_v62 }
 0x1b3   : > { %v7054_v25 = vpop.f32.mrf.mxu0  ;;  %v5112_v10 = vpop.f32.mrf.mxu1 }
 0x1b4   : > { %v5113_v59 = vadd.f32 %v5112_v10, %v5111_v21  ;;  %v7059_v55 = vadd.f32 %v3025_v58, %v6857_v49 }
 0x1b5   : > { %v7056_v7 = vpop.f32.mrf.mxu0  ;;  %v5114_v3 = vpop.f32.mrf.mxu1 }
 0x1b6   : > { %v3030_v27 = vadd.f32 %v5113_v59, %v3029_v31 }
 0x1b7   : > { %v7061_v32 = vpop.f32.mrf.mxu0  ;;  %v5115_v33 = vpop.f32.mrf.mxu1 }
 0x1b8   : > { %v5116_v18 = vadd.f32 %v5115_v33, %v5114_v3  ;;  %v7066_v0 = vadd.f32 %v3030_v27, %v6873_v40 }
 0x1b9   : > { %v7063_v24 = vpop.f32.mrf.mxu0  ;;  %v5117_v43 = vpop.f32.mrf.mxu1 }
 0x1ba   : > { %v3033_v37 = vadd.f32 %v5116_v18, %v3032_v47 }
 0x1bb   : > { %v7068_v44 = vpop.f32.mrf.mxu0  ;;  %v5118_v8 = vpop.f32.mrf.mxu1 }
 0x1bc   : > { %v5119_v42 = vadd.f32 %v5118_v8, %v5117_v43  ;;  %v7073_v49 = vadd.f32 %v3033_v37, %v6886_v26 }
 0x1bd   : > { %v7070_v30 = vpop.f32.mrf.mxu0  ;;  %v5120_v31 = vpop.f32.mrf.mxu1 }
 0x1be   : > { %v3038_v39 = vadd.f32 %v5425_v6, %v5119_v42 }
 0x1bf   : > { %v7075_v35 = vpop.f32.mrf.mxu0  ;;  %v5121_v34 = vpop.f32.mrf.mxu1 }
 0x1c0   : > { %v5122_v45 = vadd.f32 %v5121_v34, %v5120_v31  ;;  %v7080_v40 = vadd.f32 %v3038_v39, %v6868_v2 }
 0x1c1   : > { %v7077_v62 = vpop.f32.mrf.mxu0  ;;  %v5123_v47 = vpop.f32.mrf.mxu1 }
 0x1c2   : > { %v3041_v21 = vadd.f32 %v5426_v53, %v5122_v45 }
 0x1c3   : > { %v7082_v58 = vpop.f32.mrf.mxu0  ;;  %v5124_v10 = vpop.f32.mrf.mxu1 }
 0x1c4   : > { %v5125_v59 = vadd.f32 %v5124_v10, %v5123_v47  ;;  %v7087_v26 = vadd.f32 %v3041_v21, %v6881_v57 }
 0x1c5   : > { %v7084_v3 = vpop.f32.mrf.mxu0  ;;  %v5126_v6 = vpop.f32.mrf.mxu1 }
 0x1c6   : > { %v3046_v27 = vadd.f32 %v5125_v59, %v3045_v15 }
 0x1c7   : > { %v7089_v33 = vpop.f32.mrf.mxu0  ;;  %v5127_v18 = vpop.f32.mrf.mxu1 }
 0x1c8   : > { %v5128_v43 = vadd.f32 %v5127_v18, %v5126_v6  ;;  %v7094_v2 = vadd.f32 %v3046_v27, %v6898_v63 }
 0x1c9   : > { %v7091_v37 = vpop.f32.mrf.mxu0  ;;  %v5129_v53 = vpop.f32.mrf.mxu1 }
 0x1ca   : > { %v3049_v8 = vadd.f32 %v5128_v43, %v3048_v61 }
 0x1cb   : > { %v7096_v42 = vpop.f32.mrf.mxu0  ;;  %v5130_v31 = vpop.f32.mrf.mxu1 }
 0x1cc   : > { %v5131_v39 = vadd.f32 %v5130_v31, %v5129_v53  ;;  %v7101_v57 = vadd.f32 %v3049_v8, %v6910_v1 }
 0x1cd   : > { %v7098_v34 = vpop.f32.mrf.mxu0  ;;  %v5132_v15 = vpop.f32.mrf.mxu1 }
 0x1ce   : > { %v3054_v45 = vadd.f32 %v7037_v60, %v5131_v39 }
 0x1cf   : > { %v7104_v47 = vpop.f32.mrf.mxu0  ;;  %v5133_v21 = vpop.f32.mrf.mxu1 }
 0x1d0   : > { %7476 = vst [vmem:[#allocation9_spill] sm:$0xff] %v7104_v47  ;;  %v5134_v10 = vadd.f32 %v5133_v21, %v5132_v15  ;;  %v7109_v61 = vadd.f32 %v3054_v45, %v6893_v13  ;;  %v7478_v45 = vld [vmem:[#allocation4_spill] sm:$0xff] }
 0x1d1   : > { %v7106_v63 = vpop.f32.mrf.mxu0  ;;  %v5135_v59 = vpop.f32.mrf.mxu1 }
 0x1d2   : > { %v3057_v6 = vadd.f32 %v7042_v5, %v5134_v10 }
 0x1d3   : > { %v7112_v27 = vpop.f32.mrf.mxu0  ;;  %v5136_v18 = vpop.f32.mrf.mxu1 }
 0x1d4   : > { %7477 = vst [vmem:[#allocation10_spill] sm:$0xff] %v7112_v27  ;;  %v5137_v1 = vadd.f32 %v5136_v18, %v5135_v59  ;;  %v7117_v60 = vadd.f32 %v3057_v6, %v6905_v50  ;;  %v7479_v6 = vld [vmem:[#allocation5_spill] sm:$0xff] }
 0x1d5   : > { %v7114_v43 = vpop.f32.mrf.mxu0  ;;  %v5138_v53 = vpop.f32.mrf.mxu1 }
 0x1d6   : > { %v3062_v8 = vadd.f32 %v5137_v1, %v7049_v19 }
 0x1d7   : > { %v5235_v31 = vpop.f32.mrf.mxu0  ;;  %v5139_v39 = vpop.f32.mrf.mxu1 }
 0x1d8   : > { %v5140_v15 = vadd.f32 %v5139_v39, %v5138_v53  ;;  %v7121_v21 = vadd.f32 %v3062_v8, %v7478_v45 }
 0x1d9   : > { %v5236_v13 = vpop.f32.mrf.mxu0  ;;  %v5141_v5 = vpop.f32.mrf.mxu1 }
 0x1da   : > { %v7123_v10 = vadd.f32 %v5236_v13, %v5235_v31  ;;  %v3065_v59 = vadd.f32 %v5140_v15, %v7056_v7  ;;  %v7481_v13 = vld [vmem:[#allocation6_spill] sm:$0xff] }
 0x1db   : > { %v5238_v18 = vpop.f32.mrf.mxu0  ;;  %v5142_v22 = vpop.f32.mrf.mxu1 }
 0x1dc   : > { %v5143_v27 = vadd.f32 %v5142_v22, %v5141_v5  ;;  %v7127_v11 = vadd.f32 %v3065_v59, %v7479_v6 }
 0x1dd   : > { %v5239_v50 = vpop.f32.mrf.mxu0  ;;  %v5144_v19 = vpop.f32.mrf.mxu1 }
 0x1de   : > { %7480 = vst [vmem:[#allocation4_spill] sm:$0xff] %v7127_v11  ;;  %v7129_v1 = vadd.f32 %v5239_v50, %v5238_v18  ;;  %v3070_v53 = vadd.f32 %v7047_v17, %v5143_v27 }
 0x1df   : > { %v7132_v39 = vpop.f32.mrf.mxu0  ;;  %v5145_v8 = vpop.f32.mrf.mxu1 }
 0x1e0   : > { %v5146_v45 = vadd.f32 %v5145_v8, %v5144_v19  ;;  %v7137_v7 = vadd.f32 %v3070_v53, %v7481_v13 }
 0x1e1   : > { %v7134_v31 = vpop.f32.mrf.mxu0  ;;  %v5147_v15 = vpop.f32.mrf.mxu1 }
 0x1e2   : > { %v3073_v22 = vadd.f32 %v7054_v25, %v5146_v45 }
 0x1e3   : > { %v7140_v5 = vpop.f32.mrf.mxu0  ;;  %v5148_v59 = vpop.f32.mrf.mxu1 }
 0x1e4   : > { %v5149_v6 = vadd.f32 %v5148_v59, %v5147_v15  ;;  %v7145_v17 = vadd.f32 %v3073_v22, %v6963_v51 }
 0x1e5   : > { %v7142_v18 = vpop.f32.mrf.mxu0  ;;  %v5150_v27 = vpop.f32.mrf.mxu1 }
 0x1e6   : > { %v3078_v50 = vadd.f32 %v5149_v6, %v7063_v24 }
 0x1e7   : > { %v7148_v19 = vpop.f32.mrf.mxu0  ;;  %v5151_v8 = vpop.f32.mrf.mxu1 }
 0x1e8   : > { %v5152_v53 = vadd.f32 %v5151_v8, %v5150_v27  ;;  %v7153_v25 = vadd.f32 %v3078_v50, %v6971_v46 }
 0x1e9   : > { %v7150_v13 = vpop.f32.mrf.mxu0  ;;  %v5153_v45 = vpop.f32.mrf.mxu1 }
 0x1ea   : > { %7482 = vst [vmem:[#allocation5_spill] sm:$0xff] %v7153_v25  ;;  %v3081_v15 = vadd.f32 %v5152_v53, %v7070_v30 }
 0x1eb   : > { %v7156_v59 = vpop.f32.mrf.mxu0  ;;  %v5154_v47 = vpop.f32.mrf.mxu1 }
 0x1ec   : > { %v5155_v51 = vadd.f32 %v5154_v47, %v5153_v45  ;;  %v7161_v24 = vadd.f32 %v3081_v15, %v6980_v4 }
 0x1ed   : > { %v7158_v22 = vpop.f32.mrf.mxu0  ;;  %v5156_v6 = vpop.f32.mrf.mxu1 }
 0x1ee   : > { %7483 = vst [vmem:[#allocation6_spill] sm:$0xff] %v7161_v24  ;;  %v3086_v27 = vadd.f32 %v7061_v32, %v5155_v51 }
 0x1ef   : > { %v7164_v8 = vpop.f32.mrf.mxu0  ;;  %v5157_v11 = vpop.f32.mrf.mxu1 }
 0x1f0   : > { %v5158_v46 = vadd.f32 %v5157_v11, %v5156_v6  ;;  %v7169_v30 = vadd.f32 %v3086_v27, %v6986_v48 }
 0x1f1   : > { %v7166_v50 = vpop.f32.mrf.mxu0  ;;  %v5159_v53 = vpop.f32.mrf.mxu1 }
 0x1f2   : > { %7484 = vst [vmem:[#allocation11_spill] sm:$0xff] %v7169_v30  ;;  %v3089_v47 = vadd.f32 %v7068_v44, %v5158_v46 }
 0x1f3   : > { %v7172_v45 = vpop.f32.mrf.mxu0  ;;  %v5160_v25 = vpop.f32.mrf.mxu1 }
 0x1f4   : > { %v5161_v4 = vadd.f32 %v5160_v25, %v5159_v53  ;;  %v7177_v32 = vadd.f32 %v3089_v47, %v6993_v56 }
 0x1f5   : > { %v7174_v15 = vpop.f32.mrf.mxu0  ;;  %v5162_v51 = vpop.f32.mrf.mxu1 }
 0x1f6   : > { %7485 = vst [vmem:[#allocation12_spill] sm:$0xff] %v7177_v32  ;;  %v3094_v11 = vadd.f32 %v5161_v4, %v7077_v62 }
 0x1f7   : > { %v7180_v6 = vpop.f32.mrf.mxu0  ;;  %v5163_v24 = vpop.f32.mrf.mxu1 }
 0x1f8   : > { %v5164_v48 = vadd.f32 %v5163_v24, %v5162_v51  ;;  %v7185_v44 = vadd.f32 %v3094_v11, %v6999_v54 }
 0x1f9   : > { %v7182_v27 = vpop.f32.mrf.mxu0  ;;  %v5165_v46 = vpop.f32.mrf.mxu1 }
 0x1fa   : > { %7486 = vst [vmem:[#allocation13_spill] sm:$0xff] %v7185_v44  ;;  %v3097_v25 = vadd.f32 %v5164_v48, %v7084_v3 }
 0x1fb   : > { %v7188_v53 = vpop.f32.mrf.mxu0  ;;  %v5166_v30 = vpop.f32.mrf.mxu1 }
 0x1fc   : > { %v5167_v56 = vadd.f32 %v5166_v30, %v5165_v46  ;;  %v7193_v62 = vadd.f32 %v3097_v25, %v7005_v29 }
 0x1fd   : > { %v7190_v47 = vpop.f32.mrf.mxu0  ;;  %v5168_v4 = vpop.f32.mrf.mxu1 }
 0x1fe   : > { %7487 = vst [vmem:[#allocation14_spill] sm:$0xff] %v7193_v62  ;;  %v3102_v24 = vadd.f32 %v7075_v35, %v5167_v56 }
 0x1ff   : > { %v7196_v51 = vpop.f32.mrf.mxu0  ;;  %v5169_v32 = vpop.f32.mrf.mxu1 }
 0x200   : > { %v5170_v54 = vadd.f32 %v5169_v32, %v5168_v4  ;;  %v7201_v3 = vadd.f32 %v3102_v24, %v7011_v28 }
 0x201   : > { %v7198_v11 = vpop.f32.mrf.mxu0  ;;  %v5171_v48 = vpop.f32.mrf.mxu1 }
 0x202   : > { %7488 = vst [vmem:[#allocation15_spill] sm:$0xff] %v7201_v3  ;;  %v3105_v30 = vadd.f32 %v7082_v58, %v5170_v54 }
 0x203   : > { %v7204_v46 = vpop.f32.mrf.mxu0  ;;  %v5172_v44 = vpop.f32.mrf.mxu1 }
 0x204   : > { %v5173_v29 = vadd.f32 %v5172_v44, %v5171_v48  ;;  %v7209_v35 = vadd.f32 %v3105_v30, %v7020_v38 }
 0x205   : > { %v7206_v25 = vpop.f32.mrf.mxu0  ;;  %v5174_v56 = vpop.f32.mrf.mxu1 }
 0x206   : > { %7489 = vst [vmem:[#allocation16_spill] sm:$0xff] %v7209_v35  ;;  %v3110_v32 = vadd.f32 %v5173_v29, %v7091_v37 }
 0x207   : > { %v7212_v4 = vpop.f32.mrf.mxu0  ;;  %v5175_v62 = vpop.f32.mrf.mxu1 }
 0x208   : > { %v5176_v28 = vadd.f32 %v5175_v62, %v5174_v56  ;;  %v7217_v58 = vadd.f32 %v3110_v32, %v7014_v23 }
 0x209   : > { %v7214_v24 = vpop.f32.mrf.mxu0  ;;  %v5177_v54 = vpop.f32.mrf.mxu1 }
 0x20a   : > { %7490 = vst [vmem:[#allocation17_spill] sm:$0xff] %v7217_v58  ;;  %v3113_v44 = vadd.f32 %v5176_v28, %v7098_v34 }
 0x20b   : > { %v7220_v48 = vpop.f32.mrf.mxu0  ;;  %v5178_v3 = vpop.f32.mrf.mxu1 }
 0x20c   : > { %v5179_v38 = vadd.f32 %v5178_v3, %v5177_v54  ;;  %v7225_v37 = vadd.f32 %v3113_v44, %v7023_v36 }
 0x20d   : > { %v7222_v30 = vpop.f32.mrf.mxu0  ;;  %v5180_v29 = vpop.f32.mrf.mxu1 }
 0x20e   : > { %7491 = vst [vmem:[#allocation18_spill] sm:$0xff] %v7225_v37  ;;  %v3118_v62 = vadd.f32 %v7089_v33, %v5179_v38 }
 0x20f   : > { %v7228_v56 = vpop.f32.mrf.mxu0  ;;  %v5181_v35 = vpop.f32.mrf.mxu1 }
 0x210   : > { %v5182_v23 = vadd.f32 %v5181_v35, %v5180_v29  ;;  %v7233_v34 = vadd.f32 %v3118_v62, %v7008_v16 }
 0x211   : > { %v7230_v32 = vpop.f32.mrf.mxu0  ;;  %v5183_v28 = vpop.f32.mrf.mxu1 }
 0x212   : > { %7492 = vst [vmem:[#allocation19_spill] sm:$0xff] %v7233_v34  ;;  %v3121_v3 = vadd.f32 %v7096_v42, %v5182_v23  ;;  %v5255_v34 = vadd.f32 %v7166_v50, %v7164_v8 }
 0x213   : > { %v7236_v54 = vpop.f32.mrf.mxu0  ;;  %v5184_v58 = vpop.f32.mrf.mxu1 }
 0x214   : > { %v5185_v36 = vadd.f32 %v5184_v58, %v5183_v28  ;;  %v7241_v33 = vadd.f32 %v3121_v3, %v7017_v14 }
 0x215   : > { %v7238_v44 = vpop.f32.mrf.mxu0  ;;  %v5186_v38 = vpop.f32.mrf.mxu1 }
 0x216   : > { %7493 = vst [vmem:[#allocation20_spill] sm:$0xff] %v7241_v33  ;;  %v3126_v35 = vadd.f32 %v5185_v36, %v7106_v63 }
 0x217   : > { %v7244_v29 = vpop.f32.mrf.mxu0  ;;  %v5187_v37 = vpop.f32.mrf.mxu1 }
 0x218   : > { %v5188_v16 = vadd.f32 %v5187_v37, %v5186_v38  ;;  %v7249_v42 = vadd.f32 %v3126_v35, %v7029_v9  ;;  %v5243_v38 = vadd.f32 %v7134_v31, %v7132_v39 }
 0x219   : > { %v7246_v62 = vpop.f32.mrf.mxu0  ;;  %v7251_v23 = vpop.f32.mrf.mxu1 }
 0x21a   : > { %7494 = vst [vmem:[#allocation21_spill] sm:$0xff] %v7249_v42  ;;  %v3129_v58 = vadd.f32 %v5188_v16, %v7114_v43 }
 0x21b   : > { %v7254_v28 = vpop.f32.mrf.mxu0  ;;  %v7256_v14 = vpop.f32.mrf.mxu1 }
 0x21c   : > { %v7261_v63 = vadd.f32 %v3129_v58, %v7035_v12  ;;  %v5246_v12 = vadd.f32 %v7142_v18, %v7140_v5 }
 0x21d   : > { %v7258_v3 = vpop.f32.mrf.mxu0  ;;  %v7263_v37 = vpop.f32.mrf.mxu1 }
 0x21e   : > { %7495 = vst [vmem:[#allocation22_spill] sm:$0xff] %v7261_v63  ;;  %7496 = vst [vmem:[#allocation23_spill] sm:$0xff] %v7263_v37 }
 0x21f   : > { %v7265_v36 = vpop.f32.mrf.mxu0  ;;  %v7267_v9 = vpop.f32.mrf.mxu1 }
 0x220   : > { %7497 = vst [vmem:[#allocation24_spill] sm:$0xff] %v7267_v9 }
 0x221   : > { %v7271_v43 = vpop.f32.mrf.mxu0  ;;  %v5469_v35 = vpop.f32.mrf.mxu1 }
 0x222   : > { %v4162_v16 = vadd.f32 %v5469_v35, %v5243_v38 }
 0x223   : > { %v7273_v42 = vpop.f32.mrf.mxu0  ;;  %v4153_v33 = vpop.f32.mrf.mxu1 }
 0x224   : > { %v4282_v58 = vadd.f32 %v4162_v16, %v7052_v20  ;;  %v4154_v63 = vadd.f32 %v7123_v10, %v4153_v33  ;;  %v5249_v33 = vadd.f32 %v7150_v13, %v7148_v19  ;;  %v5252_v19 = vadd.f32 %v7158_v22, %v7156_v59 }
 0x225   : > { %v7279_v9 = vpop.f32.mrf.mxu0  ;;  %v5470_v37 = vpop.f32.mrf.mxu1 }
 0x226   : > { %4378 = vst [vmem:[%s5810_s30 + $0x10] sm:$0xff] %v4282_v58  ;;  %v4280_v39 = vadd.f32 %v4154_v63, %v7040_v52  ;;  %v4165_v31 = vadd.f32 %v5470_v37, %v5246_v12 }
 0x227   : > { %v7283_v38 = vpop.f32.mrf.mxu0  ;;  %v4156_v35 = vpop.f32.mrf.mxu1 }
 0x228   : > { %4376 = vst [vmem:[%s5810_s30] sm:$0xff] %v4280_v39  ;;  %v4283_v20 = vadd.f32 %v4165_v31, %v7059_v55  ;;  %v4157_v5 = vadd.f32 %v7129_v1, %v4156_v35  ;;  %v4449_v16 = vmul.f32 %v4280_v39, %v4280_v39 }
 0x229   : > { %v7290_v10 = vpop.f32.mrf.mxu0  ;;  %v5473_v18 = vpop.f32.mrf.mxu1 }
 0x22a   : > { %4379 = vst [vmem:[%s5810_s30 + $0x18] sm:$0xff] %v4283_v20  ;;  %v4281_v52 = vadd.f32 %v4157_v5, %v7045_v41  ;;  %v4178_v63 = vadd.f32 %v5473_v18, %v5255_v34  ;;  %v5258_v41 = vadd.f32 %v7174_v15, %v7172_v45  ;;  %v4451_v34 = vmul.f32 %v4282_v58, %v4282_v58 }
 0x22b   : > { %v7296_v37 = vpop.f32.mrf.mxu0  ;;  %v4169_v8 = vpop.f32.mrf.mxu1 }
 0x22c   : > { %4377 = vst [vmem:[%s5810_s30 + $0x8] sm:$0xff] %v4281_v52  ;;  %v4409_v50 = vadd.f32 %v4281_v52, %v4280_v39  ;;  %v4450_v55 = vmul.f32 %v4281_v52, %v4281_v52  ;;  %v4286_v1 = vadd.f32 %v4178_v63, %v7080_v40  ;;  %v4170_v12 = vadd.f32 %v5249_v33, %v4169_v8 }
 0x22d   : > { %v7300_v31 = vpop.f32.mrf.mxu0  ;;  %v5474_v13 = vpop.f32.mrf.mxu1  ;;  %v5267_v40 = vadd.f32 %v7198_v11, %v7196_v51  ;;  %v4452_v63 = vmul.f32 %v4283_v20, %v4283_v20 }
 0x22e   : > { %v4410_v35 = vadd.f32 %v4409_v50, %v4282_v58  ;;  %v4481_v5 = vadd.f32 %v4450_v55, %v4449_v16  ;;  %4382 = vst [vmem:[%s5810_s30 + $0x30] sm:$0xff] %v4286_v1  ;;  %v4284_v39 = vadd.f32 %v4170_v12, %v7066_v0  ;;  %v4181_v33 = vadd.f32 %v5474_v13, %v5258_v41 }
 0x22f   : > { %v7308_v18 = vpop.f32.mrf.mxu0  ;;  %v4172_v52 = vpop.f32.mrf.mxu1  ;;  %v5261_v12 = vadd.f32 %v7182_v27, %v7180_v6  ;;  %v4455_v6 = vmul.f32 %v4286_v1, %v4286_v1 }
 0x230   : > { %v4482_v59 = vadd.f32 %v4481_v5, %v4451_v34  ;;  %4380 = vst [vmem:[%s5810_s30 + $0x20] sm:$0xff] %v4284_v39  ;;  %v4411_v22 = vadd.f32 %v4410_v35, %v4283_v20  ;;  %v4173_v45 = vadd.f32 %v5252_v19, %v4172_v52  ;;  %v4453_v58 = vmul.f32 %v4284_v39, %v4284_v39 }
 0x231   : > { %v7313_v15 = vpop.f32.mrf.mxu0  ;;  %v4287_v16 = vadd.f32 %v4181_v33, %v7087_v26  ;;  %v5477_v0 = vpop.f32.mrf.mxu1  ;;  %v5270_v20 = vadd.f32 %v7206_v25, %v7204_v46 }
 0x232   : > { %v4412_v8 = vadd.f32 %v4411_v22, %v4284_v39  ;;  %v4483_v50 = vadd.f32 %v4482_v59, %v4452_v63  ;;  %v4285_v55 = vadd.f32 %v4173_v45, %v7073_v49  ;;  %v4194_v51 = vadd.f32 %v5477_v0, %v5267_v40 }
 0x233   : > { %v7317_v11 = vpop.f32.mrf.mxu0  ;;  %4383 = vst [vmem:[%s5810_s30 + $0x38] sm:$0xff] %v4287_v16  ;;  %v4185_v19 = vpop.f32.mrf.mxu1  ;;  %v5264_v49 = vadd.f32 %v7190_v47, %v7188_v53  ;;  %v4456_v33 = vmul.f32 %v4287_v16, %v4287_v16  ;;  %v5279_v45 = vadd.f32 %v7230_v32, %v7228_v56 }
 0x234   : > { %v4484_v41 = vadd.f32 %v4483_v50, %v4453_v58  ;;  %4381 = vst [vmem:[%s5810_s30 + $0x28] sm:$0xff] %v4285_v55  ;;  %v4413_v26 = vadd.f32 %v4412_v8, %v4285_v55  ;;  %v4454_v13 = vmul.f32 %v4285_v55, %v4285_v55  ;;  %v4290_v34 = vadd.f32 %v4194_v51, %v7109_v61 }
 0x235   : > { %v7326_v35 = vpop.f32.mrf.mxu0  ;;  %v4186_v5 = vadd.f32 %v5261_v12, %v4185_v19  ;;  %v5478_v39 = vpop.f32.mrf.mxu1 }
 0x236   : > { %v4414_v27 = vadd.f32 %v4413_v26, %v4286_v1  ;;  %v4485_v40 = vadd.f32 %v4484_v41, %v4454_v13  ;;  %4386 = vst [vmem:[%s5810_s30 + $0x50] sm:$0xff] %v4290_v34  ;;  %v4197_v46 = vadd.f32 %v5478_v39, %v5270_v20  ;;  %v5273_v1 = vadd.f32 %v7214_v24, %v7212_v4 }
 0x237   : > { %v7331_v25 = vpop.f32.mrf.mxu0  ;;  %v4288_v52 = vadd.f32 %v4186_v5, %v7094_v2  ;;  %v4188_v61 = vpop.f32.mrf.mxu1  ;;  %v4459_v20 = vmul.f32 %v4290_v34, %v4290_v34  ;;  %v5291_v5 = vadd.f32 %v7271_v43, %v7265_v36 }
 0x238   : > { %v4486_v63 = vadd.f32 %v4485_v40, %v4455_v6  ;;  %v4415_v59 = vadd.f32 %v4414_v27, %v4287_v16  ;;  %v4291_v22 = vadd.f32 %v4197_v46, %v7117_v60  ;;  %v4189_v53 = vadd.f32 %v5264_v49, %v4188_v61  ;;  %v7498_v61 = vld [vmem:[#allocation4_spill] sm:$0xff] }
 0x239   : > { %v7335_v47 = vpop.f32.mrf.mxu0  ;;  %4384 = vst [vmem:[%s5810_s30 + $0x40] sm:$0xff] %v4288_v52  ;;  %v5481_v58 = vpop.f32.mrf.mxu1  ;;  %v4457_v8 = vmul.f32 %v4288_v52, %v4288_v52  ;;  %v5282_v60 = vadd.f32 %v7238_v44, %v7236_v54  ;;  %v5276_v49 = vadd.f32 %v7222_v30, %v7220_v48 }
 0x23a   : > { %v4416_v0 = vadd.f32 %v4415_v59, %v4288_v52  ;;  %v4487_v2 = vadd.f32 %v4486_v63, %v4456_v33  ;;  %4387 = vst [vmem:[%s5810_s30 + $0x58] sm:$0xff] %v4291_v22  ;;  %v4289_v16 = vadd.f32 %v4189_v53, %v7101_v57  ;;  %v4210_v55 = vadd.f32 %v5481_v58, %v5279_v45  ;;  %v7499_v53 = vld [vmem:[#allocation11_spill] sm:$0xff] }
 0x23b   : > { %v7344_v50 = vpop.f32.mrf.mxu0  ;;  %v4201_v51 = vpop.f32.mrf.mxu1  ;;  %v4460_v6 = vmul.f32 %v4291_v22, %v4291_v22 }
 0x23c   : > { %v4488_v12 = vadd.f32 %v4487_v2, %v4457_v8  ;;  %4385 = vst [vmem:[%s5810_s30 + $0x48] sm:$0xff] %v4289_v16  ;;  %v4417_v4 = vadd.f32 %v4416_v0, %v4289_v16  ;;  %v4458_v24 = vmul.f32 %v4289_v16, %v4289_v16  ;;  %v4202_v56 = vadd.f32 %v5273_v1, %v4201_v51  ;;  %v7500_v2 = vld [vmem:[#allocation5_spill] sm:$0xff] }
 0x23d   : > { %v7349_v32 = vpop.f32.mrf.mxu0  ;;  %v4294_v19 = vadd.f32 %v4210_v55, %v7137_v7  ;;  %v5482_v57 = vpop.f32.mrf.mxu1  ;;  %v5288_v8 = vadd.f32 %v7258_v3, %v7254_v28 }
 0x23e   : > { %v4418_v41 = vadd.f32 %v4417_v4, %v4290_v34  ;;  %v4489_v26 = vadd.f32 %v4488_v12, %v4458_v24  ;;  %v4292_v13 = vadd.f32 %v4202_v56, %v7121_v21  ;;  %v4213_v54 = vadd.f32 %v5482_v57, %v5282_v60  ;;  %v7501_v24 = vld [vmem:[#allocation12_spill] sm:$0xff] }
 0x23f   : > { %v7353_v44 = vpop.f32.mrf.mxu0  ;;  %4390 = vst [vmem:[%s5810_s30 + $0x70] sm:$0xff] %v4294_v19  ;;  %v4204_v39 = vpop.f32.mrf.mxu1  ;;  %v5285_v21 = vadd.f32 %v7246_v62, %v7244_v29  ;;  %v5303_v4 = vadd.f32 %v7313_v15, %v7308_v18 }
 0x240   : > { %v4490_v27 = vadd.f32 %v4489_v26, %v4459_v20  ;;  %4388 = vst [vmem:[%s5810_s30 + $0x60] sm:$0xff] %v4292_v13  ;;  %v4419_v7 = vadd.f32 %v4418_v41, %v4291_v22  ;;  %v4295_v34 = vadd.f32 %v4213_v54, %v7145_v17  ;;  %v4205_v46 = vadd.f32 %v5276_v49, %v4204_v39 }
 0x241   : > { %v7362_v40 = vpop.f32.mrf.mxu0  ;;  %v5485_v48 = vpop.f32.mrf.mxu1  ;;  %v4461_v33 = vmul.f32 %v4292_v13, %v4292_v13  ;;  %v5294_v17 = vadd.f32 %v7279_v9, %v7273_v42  ;;  %v4463_v9 = vmul.f32 %v4294_v19, %v4294_v19 }
 0x242   : > { %v4420_v30 = vadd.f32 %v4419_v7, %v4292_v13  ;;  %v4491_v52 = vadd.f32 %v4490_v27, %v4460_v6  ;;  %4391 = vst [vmem:[%s5810_s30 + $0x78] sm:$0xff] %v4295_v34  ;;  %v4226_v36 = vadd.f32 %v5485_v48, %v5291_v5  ;;  %v4293_v63 = vadd.f32 %v4205_v46, %v7498_v61 }
 0x243   : > { %v7367_v43 = vpop.f32.mrf.mxu0  ;;  %v4217_v59 = vpop.f32.mrf.mxu1  ;;  %v4464_v3 = vmul.f32 %v4295_v34, %v4295_v34  ;;  %v5297_v13 = vadd.f32 %v7290_v10, %v7283_v38  ;;  %v5306_v27 = vadd.f32 %v7326_v35, %v7317_v11  ;;  %v5191_v11 = vadd.f32 %v7256_v14, %v7251_v23  ;;  %v7506_v14 = vld [vmem:[#allocation14_spill] sm:$0xff] }
 0x244   : > { %v4492_v22 = vadd.f32 %v4491_v52, %v4461_v33  ;;  %v4298_v29 = vadd.f32 %v4226_v36, %v7499_v53  ;;  %v4218_v62 = vadd.f32 %v5285_v21, %v4217_v59  ;;  %4389 = vst [vmem:[%s5810_s30 + $0x68] sm:$0xff] %v4293_v63  ;;  %v4421_v45 = vadd.f32 %v4420_v30, %v4293_v63  ;;  %v7504_v52 = vld [vmem:[#allocation13_spill] sm:$0xff] }
 0x245   : > { %v7373_v1 = vpop.f32.mrf.mxu0  ;;  %v4462_v58 = vmul.f32 %v4293_v63, %v4293_v63  ;;  %v5486_v0 = vpop.f32.mrf.mxu1  ;;  %v5300_v33 = vadd.f32 %v7300_v31, %v7296_v37  ;;  %v5315_v53 = vadd.f32 %v7362_v40, %v7353_v44  ;;  %v5309_v23 = vadd.f32 %v7335_v47, %v7331_v25  ;;  %v7509_v47 = vld [vmem:[#allocation23_spill] sm:$0xff] }
 0x246   : > { %4394 = vst [vmem:[%s5810_s30 + $0x90] sm:$0xff] %v4298_v29  ;;  %v4296_v16 = vadd.f32 %v4218_v62, %v7500_v2  ;;  %v4229_v60 = vadd.f32 %v5486_v0, %v5294_v17  ;;  %v4422_v55 = vadd.f32 %v4421_v45, %v4294_v19  ;;  %v7502_v19 = vld [vmem:[#allocation6_spill] sm:$0xff]  ;;  %v4467_v35 = vmul.f32 %v4298_v29, %v4298_v29  ;;  %v7505_v62 = vld [vmem:[#allocation16_spill] sm:$0xff] }
 0x247   : > { %v7380_v42 = vpop.f32.mrf.mxu0  ;;  %v4493_v51 = vadd.f32 %v4492_v22, %v4462_v58  ;;  %v4220_v12 = vpop.f32.mrf.mxu1 }
 0x248   : > { %4392 = vst [vmem:[%s5810_s30 + $0x80] sm:$0xff] %v4296_v16  ;;  %v4299_v56 = vadd.f32 %v4229_v60, %v7501_v24  ;;  %v4221_v20 = vadd.f32 %v5288_v8, %v4220_v12  ;;  %v4423_v41 = vadd.f32 %v4422_v55, %v4295_v34  ;;  %v4465_v5 = vmul.f32 %v4296_v16, %v4296_v16  ;;  %v7503_v34 = vld [vmem:[#allocation15_spill] sm:$0xff]  ;;  %v7507_v60 = vld [vmem:[#allocation9_spill] sm:$0xff] }
 0x249   : > { %v7386_v28 = vpop.f32.mrf.mxu0  ;;  %v4494_v57 = vadd.f32 %v4493_v51, %v4463_v9  ;;  %v5489_v26 = vpop.f32.mrf.mxu1  ;;  %v3134_v9 = vadd.f32 %v7507_v60, %v5191_v11 }
 0x24a   : > { %4395 = vst [vmem:[%s5810_s30 + $0x98] sm:$0xff] %v4299_v56  ;;  %v4297_v54 = vadd.f32 %v4221_v20, %v7502_v19  ;;  %v4242_v49 = vadd.f32 %v5489_v26, %v5303_v4  ;;  %v4424_v15 = vadd.f32 %v4423_v41, %v4296_v16  ;;  %v4468_v58 = vmul.f32 %v4299_v56, %v4299_v56 }
 0x24b   : > { %v7392_v18 = vpop.f32.mrf.mxu0  ;;  %v4495_v39 = vadd.f32 %v4494_v57, %v4464_v3  ;;  %v4233_v6 = vpop.f32.mrf.mxu1  ;;  %v5318_v4 = vadd.f32 %v7373_v1, %v7367_v43  ;;  %v7510_v3 = vld [vmem:[#allocation24_spill] sm:$0xff]  ;;  %v5312_v19 = vadd.f32 %v7349_v32, %v7344_v50 }
 0x24c   : > { %4393 = vst [vmem:[%s5810_s30 + $0x88] sm:$0xff] %v4297_v54  ;;  %v4466_v7 = vmul.f32 %v4297_v54, %v4297_v54  ;;  %v4302_v21 = vadd.f32 %v4242_v49, %v7503_v34  ;;  %v4234_v46 = vadd.f32 %v5297_v13, %v4233_v6  ;;  %v4425_v48 = vadd.f32 %v4424_v15, %v4297_v54  ;;  %v7511_v54 = vld [vmem:[#allocation17_spill] sm:$0xff] }
 0x24d   : > { %v7398_v38 = vpop.f32.mrf.mxu0  ;;  %v4496_v10 = vadd.f32 %v4495_v39, %v4465_v5  ;;  %v5490_v30 = vpop.f32.mrf.mxu1  ;;  %v5194_v57 = vadd.f32 %v7510_v3, %v7509_v47 }
 0x24e   : > { %4398 = vst [vmem:[%s5810_s30 + $0xb0] sm:$0xff] %v4302_v21  ;;  %v4300_v36 = vadd.f32 %v4234_v46, %v7504_v52  ;;  %v4245_v61 = vadd.f32 %v5490_v30, %v5306_v27  ;;  %v4426_v59 = vadd.f32 %v4425_v48, %v4298_v29  ;;  %v4471_v1 = vmul.f32 %v4302_v21, %v4302_v21  ;;  %v7513_v46 = vld [vmem:[#allocation20_spill] sm:$0xff]  ;;  %v7514_v30 = vld [vmem:[#allocation10_spill] sm:$0xff] }
 0x24f   : > { %v5325_v63 = vpop.f32.mrf.mxu0  ;;  %v4497_v17 = vadd.f32 %v4496_v10, %v4466_v7  ;;  %v4236_v22 = vpop.f32.mrf.mxu1  ;;  %v7512_v7 = vld [vmem:[#allocation7_spill] sm:$0xff]  ;;  %v3137_v50 = vadd.f32 %v7514_v30, %v5194_v57 }
 0x250   : > { %4396 = vst [vmem:[%s5810_s30 + $0xa0] sm:$0xff] %v4300_v36  ;;  %v4303_v45 = vadd.f32 %v4245_v61, %v7505_v62  ;;  %v4237_v37 = vadd.f32 %v5300_v33, %v4236_v22  ;;  %v4427_v8 = vadd.f32 %v4426_v59, %v4299_v56  ;;  %v4469_v40 = vmul.f32 %v4300_v36, %v4300_v36  ;;  %v7508_v56 = vld [vmem:[#allocation19_spill] sm:$0xff] }
 0x251   : > { %v5326_v31 = vpop.f32.mrf.mxu0  ;;  %v4498_v0 = vadd.f32 %v4497_v17, %v4467_v35  ;;  %v5493_v2 = vpop.f32.mrf.mxu1  ;;  %v3170_v34 = vadd.f32 %v3134_v9, %v7512_v7  ;;  %v5321_v61 = vadd.f32 %v7386_v28, %v7380_v42  ;;  %v5324_v28 = vadd.f32 %v7398_v38, %v7392_v18 }
 0x252   : > { %4399 = vst [vmem:[%s5810_s30 + $0xb8] sm:$0xff] %v4303_v45  ;;  %v4301_v29 = vadd.f32 %v4237_v37, %v7506_v14  ;;  %v4258_v16 = vadd.f32 %v5493_v2, %v5315_v53  ;;  %v4428_v44 = vadd.f32 %v4427_v8, %v4300_v36  ;;  %v5327_v43 = vadd.f32 %v5326_v31, %v5325_v63  ;;  %v7516_v8 = vld [vmem:[#allocation8_spill] sm:$0xff]  ;;  %v7517_v2 = vld [vmem:[#allocation21_spill] sm:$0xff] }
 0x253   : > { %v4499_v55 = vadd.f32 %v4498_v0, %v4468_v58  ;;  %v4249_v51 = vpop.f32.mrf.mxu1  ;;  %v5328_v12 = vpop.f32.mrf.mxu0  ;;  %v4472_v32 = vmul.f32 %v4303_v45, %v4303_v45  ;;  %v3171_v42 = vadd.f32 %v3137_v50, %v7516_v8 }
 0x254   : > { %4397 = vst [vmem:[%s5810_s30 + $0xa8] sm:$0xff] %v4301_v29  ;;  %v4470_v24 = vmul.f32 %v4301_v29, %v4301_v29  ;;  %v4306_v20 = vadd.f32 %v4258_v16, %v7508_v56  ;;  %v4250_v25 = vadd.f32 %v5309_v23, %v4249_v51  ;;  %v4429_v26 = vadd.f32 %v4428_v44, %v4301_v29 }
 0x255   : > { %v4500_v41 = vadd.f32 %v4499_v55, %v4469_v40  ;;  %v5494_v13 = vpop.f32.mrf.mxu1  ;;  %v5329_v27 = vpop.f32.mrf.mxu0 }
 0x256   : > { %4402 = vst [vmem:[%s5810_s30 + $0xd0] sm:$0xff] %v4306_v20  ;;  %v4304_v49 = vadd.f32 %v4250_v25, %v7511_v54  ;;  %v4261_v15 = vadd.f32 %v5494_v13, %v5318_v4  ;;  %v4430_v5 = vadd.f32 %v4429_v26, %v4302_v21  ;;  %v7515_v21 = vld [vmem:[#allocation18_spill] sm:$0xff]  ;;  %v5330_v35 = vadd.f32 %v5329_v27, %v5328_v12 }
 0x257   : > { %v4501_v39 = vadd.f32 %v4500_v41, %v4470_v24  ;;  %v4252_v6 = vpop.f32.mrf.mxu1  ;;  %v4475_v29 = vmul.f32 %v4306_v20, %v4306_v20  ;;  %v7518_v4 = vld [vmem:[#allocation22_spill] sm:$0xff] }
 0x258   : > { %4400 = vst [vmem:[%s5810_s30 + $0xc0] sm:$0xff] %v4304_v49  ;;  %v4307_v10 = vadd.f32 %v4261_v15, %v7513_v46  ;;  %v4253_v48 = vadd.f32 %v5312_v19, %v4252_v6  ;;  %v4431_v52 = vadd.f32 %v4430_v5, %v4303_v45  ;;  %v4473_v17 = vmul.f32 %v4304_v49, %v4304_v49 }
 0x259   : > { %v4502_v33 = vadd.f32 %v4501_v39, %v4471_v1  ;;  %v5497_v36 = vpop.f32.mrf.mxu1 }
 0x25a   : > { %4403 = vst [vmem:[%s5810_s30 + $0xd8] sm:$0xff] %v4307_v10  ;;  %v4305_v63 = vadd.f32 %v4253_v48, %v7515_v21  ;;  %v4274_v11 = vadd.f32 %v5497_v36, %v5327_v43  ;;  %v4432_v59 = vadd.f32 %v4431_v52, %v4304_v49  ;;  %v4476_v55 = vmul.f32 %v4307_v10, %v4307_v10  ;;  %v4448_v48 = vld [vmem:[%s7464_s6] sm:$0x1] }
 0x25b   : > { %v4503_v22 = vadd.f32 %v4502_v33, %v4472_v32  ;;  %v4265_v53 = vpop.f32.mrf.mxu1 }
 0x25c   : > { %4401 = vst [vmem:[%s5810_s30 + $0xc8] sm:$0xff] %v4305_v63  ;;  %v4474_v62 = vmul.f32 %v4305_v63, %v4305_v63  ;;  %v4310_v37 = vadd.f32 %v4274_v11, %v3170_v34  ;;  %v4266_v31 = vadd.f32 %v5321_v61, %v4265_v53  ;;  %v4433_v58 = vadd.f32 %v4432_v59, %v4305_v63  ;;  %v4408_v34 = vld [vmem:[%s7463_s5] sm:$0x1] }
 0x25d   : > { %v4504_v45 = vadd.f32 %v4503_v22, %v4473_v17  ;;  %v5498_v0 = vpop.f32.mrf.mxu1 }
 0x25e   : > { %4406 = vst [vmem:[%s5810_s30 + $0xf0] sm:$0xff] %v4310_v37  ;;  %v4308_v23 = vadd.f32 %v4266_v31, %v7517_v2  ;;  %v4277_v14 = vadd.f32 %v5498_v0, %v5330_v35  ;;  %v4434_v16 = vadd.f32 %v4433_v58, %v4306_v20  ;;  %v4479_v57 = vmul.f32 %v4310_v37, %v4310_v37 }
 0x25f   : > { %v4505_v60 = vadd.f32 %v4504_v45, %v4474_v62  ;;  %v4268_v9 = vpop.f32.mrf.mxu1 }
 0x260   : > { %4404 = vst [vmem:[%s5810_s30 + $0xe0] sm:$0xff] %v4308_v23  ;;  %v4311_v44 = vadd.f32 %v4277_v14, %v3171_v42  ;;  %v4269_v40 = vadd.f32 %v5324_v28, %v4268_v9  ;;  %v4435_v12 = vadd.f32 %v4434_v16, %v4307_v10  ;;  %v4477_v18 = vmul.f32 %v4308_v23, %v4308_v23 }
 0x261   : > { %v4506_v51 = vadd.f32 %v4505_v60, %v4475_v29 }
 0x262   : > { %4407 = vst [vmem:[%s5810_s30 + $0xf8] sm:$0xff] %v4311_v44  ;;  %v4309_v24 = vadd.f32 %v4269_v40, %v7518_v4  ;;  %v4436_v56 = vadd.f32 %v4435_v12, %v4308_v23  ;;  %v4480_v26 = vmul.f32 %v4311_v44, %v4311_v44 }
 0x263   : > { %v4507_v38 = vadd.f32 %v4506_v51, %v4476_v55 }
 0x264   : > { %4405 = vst [vmem:[%s5810_s30 + $0xe8] sm:$0xff] %v4309_v24  ;;  %v4478_v25 = vmul.f32 %v4309_v24, %v4309_v24  ;;  %v4437_v3 = vadd.f32 %v4436_v56, %v4309_v24 }
 0x265   : > { %v4508_v47 = vadd.f32 %v4507_v38, %v4477_v18 }
 0x266   : > { %v4438_v20 = vadd.f32 %v4437_v3, %v4310_v37 }
 0x267   : > { %v4509_v41 = vadd.f32 %v4508_v47, %v4478_v25 }
 0x268   : > { %v4439_v13 = vadd.f32 %v4438_v20, %v4311_v44 }
 0x269   : > { %v4510_v19 = vadd.f32 %v4509_v41, %v4479_v57 }
 0x26a   : > { %v4440_v54 = vrot.slane %v4439_v13, 4 }
 0x26b   : > { %v4511_v49 = vadd.f32 %v4510_v19, %v4480_v26 }
 0x26c   : > { %v4441_v15 = vadd.f32 %v4440_v54, %v4439_v13 }
 0x26d   : > { %v4512_v43 = vrot.slane %v4511_v49, 4 }
 0x26e   : > { %v4442_v1 = vrot.slane %v4441_v15, 2 }
 0x26f   : > { %v4513_v5 = vadd.f32 %v4512_v43, %v4511_v49 }
 0x270   : > { %v4443_v39 = vadd.f32 %v4442_v1, %v4441_v15 }
 0x271   : > { %v4514_v6 = vrot.slane %v4513_v5, 2 }
 0x272   : > { %v4444_v27 = vrot.slane %v4443_v39, 1 }
 0x273   : > { %v4515_v7 = vadd.f32 %v4514_v6, %v4513_v5 }
 0x274   : > { %v4445_v46 = vadd.f32 %v4444_v27, %v4443_v39 }
 0x275   : > { %v4516_v10 = vrot.slane %v4515_v7, 1 }
 0x276   : > { %v4446_v30 = vadd.f32 %v4445_v46, %v4408_v34 }
 0x277   : > { %v4517_v50 = vadd.f32 %v4516_v10, %v4515_v7 }
 0x278   : > { %4447 = vst [vmem:[%s7463_s5] sm:$0x1] %v4446_v30 }
 0x279   : > { %v4518_v32 = vadd.f32 %v4517_v50, %v4448_v48 }
 0x27b   : > { %4519 = vst [vmem:[%s7464_s6] sm:$0x1] %v4518_v32 }
 0x27c PF: > { %s17_s21 = sadd.s32 1, %s5755_s21  }
 0x27d   : > { %p14_p5 = scmp.ge.s32.totalorder %s17_s21, 4  }
 0x27f   :  { %16 = sbr.rel (!%p14_p5) target bundleno = 1 (0x1), region = 90 }

</bundles_post_ra>
